<compile_context>
chip_gen: v6e
topology: v6e:2x2x1
jax: 0.10.0
libtpu: 0.0.40
codegen_flags: <defaults>
</compile_context>

<pallas_src>
import functools

import jax
import jax.numpy as jnp
from jax import lax
from jax.experimental import pallas as pl
from jax.experimental.pallas import tpu as pltpu


def _round_up(v, m):
    return ((v + m - 1) // m) * m


def _stacked_gru_kernel(num_layers, hidden_pad, matmul_dtype, time_chunk,
                        x_ref, *refs):
    """refs = [wih_0, whh_0, bih_0, bhh_0, ..., wfc, bfc, out_ref, seq_ref, gx_ref]."""
    n_w = num_layers * 4
    layer_refs = refs[:n_w]
    wfc_ref = refs[n_w]              # (Hp, Op)   matmul_dtype
    bfc_ref = refs[n_w + 1]          # (1, Op)    f32
    out_ref = refs[n_w + 2]          # (Bt, Op)   f32
    seq_ref = refs[n_w + 3]          # (T, Bt, Hp)  f32 layer-to-layer activations
    gx_ref = refs[n_w + 4]           # (Tc, Bt, 3*Hp) f32 hoisted input projections

    T = x_ref.shape[0]
    Bt = x_ref.shape[1]
    Hp = hidden_pad
    G = 3 * Hp
    Tc = time_chunk
    num_chunks = (T + Tc - 1) // Tc  # static

    h_last = None
    for layer in range(num_layers):
        wih_ref = layer_refs[4 * layer]      # (in_p, 3*Hp) matmul_dtype
        whh_ref = layer_refs[4 * layer + 1]  # (Hp, 3*Hp)   matmul_dtype
        bih_ref = layer_refs[4 * layer + 2]  # (1, 3*Hp)    f32
        bhh_ref = layer_refs[4 * layer + 3]  # (1, 3*Hp)    f32

        inp_ref = x_ref if layer == 0 else seq_ref
        in_dim = inp_ref.shape[-1]
        last_layer = layer == num_layers - 1

        # Hoist everything time-invariant out of the recurrence:
        # the recurrent weight matrix and the recurrent-bias broadcast.
        whh = whh_ref[...]
        bhh_b = jnp.broadcast_to(bhh_ref[...], (Bt, G))

        h = jnp.zeros((Bt, Hp), jnp.float32)
        for c in range(num_chunks):              # static chunk loop
            t0 = c * Tc
            tc = min(Tc, T - t0)

            # Hoisted input projection for this time chunk: one tall
            # (tc*Bt, in) @ (in, 3*Hp) MXU matmul for all its timesteps.
            inp = inp_ref[pl.ds(t0, tc)].astype(matmul_dtype)
            gx_ref[pl.ds(0, tc)] = (
                jnp.dot(inp.reshape(tc * Bt, in_dim), wih_ref[...],
                        preferred_element_type=jnp.float32)
                + bih_ref[...]
            ).reshape(tc, Bt, G)

            def step(i, h):
                gx = gx_ref[i]                                   # (Bt, 3*Hp) f32
                gh = jnp.dot(h.astype(matmul_dtype), whh,
                             preferred_element_type=jnp.float32) + bhh_b
                r = jax.nn.sigmoid(gx[:, :Hp] + gh[:, :Hp])
                z = jax.nn.sigmoid(gx[:, Hp:2 * Hp] + gh[:, Hp:2 * Hp])
                n = jnp.tanh(gx[:, 2 * Hp:] + r * gh[:, 2 * Hp:])
                h_new = (1.0 - z) * n + z * h
                if not last_layer:
                    seq_ref[t0 + i] = h_new      # feed next layer's projection
                return h_new

            h = lax.fori_loop(0, tc, step, h,
                              unroll=True if tc <= 16 else 8)
        h_last = h

    # fc on the last timestep's hidden state of the top layer (lane-dense out).
    out_ref[...] = (
        jnp.dot(h_last.astype(matmul_dtype), wfc_ref[...],
                preferred_element_type=jnp.float32)
        + bfc_ref[...]
    )


def init_params(key, input_size, hidden_size, num_layers, output_size):
    """Deterministic PyTorch-style uniform(-1/sqrt(H), 1/sqrt(H)) init."""
    bound = 1.0 / jnp.sqrt(jnp.asarray(hidden_size, jnp.float32))
    params = {"layers": [], "fc": None}
    for l in range(num_layers):
        in_l = input_size if l == 0 else hidden_size
        key, k1, k2, k3, k4 = jax.random.split(key, 5)
        params["layers"].append({
            "w_ih": jax.random.uniform(k1, (3 * hidden_size, in_l),
                                       jnp.float32, -bound, bound),
            "w_hh": jax.random.uniform(k2, (3 * hidden_size, hidden_size),
                                       jnp.float32, -bound, bound),
            "b_ih": jax.random.uniform(k3, (3 * hidden_size,),
                                       jnp.float32, -bound, bound),
            "b_hh": jax.random.uniform(k4, (3 * hidden_size,),
                                       jnp.float32, -bound, bound),
        })
    fc_bound = 1.0 / jnp.sqrt(jnp.asarray(hidden_size, jnp.float32))
    key, k1, k2 = jax.random.split(key, 3)
    params["fc"] = {
        "w": jax.random.uniform(k1, (output_size, hidden_size),
                                jnp.float32, -fc_bound, fc_bound),
        "b": jax.random.uniform(k2, (output_size,),
                                jnp.float32, -fc_bound, fc_bound),
    }
    return params


def stacked_gru_forward(x, params, hidden_size, *, batch_tile=None,
                        time_chunk=128, matmul_dtype=jnp.bfloat16):
    """x: (B, T, I) float32 -> (B, output_size) float32."""
    B, T, I = x.shape
    num_layers = len(params["layers"])
    O = params["fc"]["w"].shape[0]
    H = hidden_size

    Hp = _round_up(H, 128)           # lane-padded hidden (gate blocks Hp wide)
    Ip = _round_up(I, 128)           # lane-padded input features
    Op = _round_up(O, 128)           # lane-dense fc output slab
    G = 3 * Hp

    # MXU-filling batch tile: one (or a few) large blocks; only fall back to
    # multiple grid blocks when the batch is genuinely large (>256 rows), so
    # on v7x each TensorCore gets an MXU-filling block.
    if batch_tile is None:
        batch_tile = min(_round_up(B, 8), 256)
    Bt = batch_tile
    Bp = _round_up(B, Bt)
    n_b_blocks = Bp // Bt

    Tc = min(time_chunk, T)          # gx scratch chunked over time (VMEM bound)

    # Time-major, zero-pad batch and feature dims to lane/sublane-dense shapes.
    x_tm = jnp.transpose(x.astype(jnp.float32), (1, 0, 2))       # (T, B, I)
    x_tm = jnp.pad(x_tm, ((0, 0), (0, Bp - B), (0, Ip - I)))     # (T, Bp, Ip)

    def pack_w(w, rows_p):
        # w: (3H, rows) torch layout -> (rows_p, 3*Hp) with each gate block
        # zero-padded to Hp lanes (padded h/x lanes stay exactly zero).
        wt = w.astype(jnp.float32).T                              # (rows, 3H)
        rows = wt.shape[0]
        parts = []
        for g in range(3):
            blk = wt[:, g * H:(g + 1) * H]                        # (rows, H)
            parts.append(jnp.pad(blk, ((0, rows_p - rows), (0, Hp - H))))
        return jnp.concatenate(parts, axis=1).astype(matmul_dtype)

    def pack_b(b):
        parts = [jnp.pad(b.astype(jnp.float32)[g * H:(g + 1) * H], (0, Hp - H))
                 for g in range(3)]
        return jnp.concatenate(parts).reshape(1, G)               # f32

    inputs = [x_tm]
    for l, lp in enumerate(params["layers"]):
        in_p = Ip if l == 0 else Hp
        inputs.append(pack_w(lp["w_ih"], in_p))   # (in_p, 3Hp) matmul_dtype
        inputs.append(pack_w(lp["w_hh"], Hp))     # (Hp, 3Hp)   matmul_dtype
        inputs.append(pack_b(lp["b_ih"]))         # (1, 3Hp)    f32
        inputs.append(pack_b(lp["b_hh"]))         # (1, 3Hp)    f32

    wfc_p = jnp.pad(params["fc"]["w"].astype(jnp.float32).T,
                    ((0, Hp - H), (0, Op - O))).astype(matmul_dtype)  # (Hp, Op)
    bfc_p = jnp.pad(params["fc"]["b"].astype(jnp.float32),
                    (0, Op - O)).reshape(1, Op)                       # (1, Op)
    inputs.append(wfc_p)
    inputs.append(bfc_p)

    vmem_whole = pl.BlockSpec(memory_space=pltpu.MemorySpace.VMEM)
    in_specs = [pl.BlockSpec((T, Bt, Ip), lambda b: (0, b, 0))]
    in_specs += [vmem_whole] * (len(inputs) - 1)
    out_specs = pl.BlockSpec((Bt, Op), lambda b: (b, 0))

    # VMEM budget: grid-invariant weights counted once; only the per-block x
    # slab and output block are double-buffered; cap below the device's
    # physical VMEM (v7x: 64 MiB/TC) with headroom.
    weight_bytes = sum(int(a.size) * a.dtype.itemsize for a in inputs[1:])
    x_block_bytes = T * Bt * Ip * x_tm.dtype.itemsize
    out_block_bytes = Bt * Op * 4
    scratch_bytes = (T * Bt * Hp + Tc * Bt * G) * 4
    needed = (weight_bytes + 2 * x_block_bytes + 2 * out_block_bytes
              + scratch_bytes + 8 * 1024 * 1024)
    try:
        phys_vmem = int(pltpu.get_tpu_info().vmem_capacity_bytes)
    except Exception:
        phys_vmem = 64 * 1024 * 1024        # conservative (v7x per-TC VMEM)
    vmem_limit = max(16 * 1024 * 1024,
                     min(int(needed), phys_vmem - 16 * 1024 * 1024))

    kernel = functools.partial(_stacked_gru_kernel, num_layers, Hp,
                               matmul_dtype, Tc)
    out = pl.pallas_call(
        kernel,
        out_shape=jax.ShapeDtypeStruct((Bp, Op), jnp.float32),
        grid=(n_b_blocks,),
        in_specs=in_specs,
        out_specs=out_specs,
        scratch_shapes=[
            pltpu.VMEM((T, Bt, Hp), jnp.float32),   # layer-to-layer activations
            pltpu.VMEM((Tc, Bt, G), jnp.float32),   # chunked input projections
        ],
        compiler_params=pltpu.CompilerParams(
            dimension_semantics=("parallel",),      # batch blocks -> v7x megacore
            vmem_limit_bytes=int(vmem_limit),
        ),
    )(*inputs)
    return out[:B, :O]


def stacked_gru_reference(x, params, hidden_size):
    """Pure-JAX reference (matches torch.nn.GRU semantics) for verification."""
    B, T, I = x.shape
    H = hidden_size
    seq = x.astype(jnp.float32)
    for lp in params["layers"]:
        w_ih_t = lp["w_ih"].T
        w_hh_t = lp["w_hh"].T
        b_ih = lp["b_ih"]
        b_hh = lp["b_hh"]

        def cell(h, x_t):
            gx = x_t @ w_ih_t + b_ih
            gh = h @ w_hh_t + b_hh
            r = jax.nn.sigmoid(gx[:, :H] + gh[:, :H])
            z = jax.nn.sigmoid(gx[:, H:2 * H] + gh[:, H:2 * H])
            n = jnp.tanh(gx[:, 2 * H:] + r * gh[:, 2 * H:])
            h_new = (1.0 - z) * n + z * h
            return h_new, h_new

        h0 = jnp.zeros((B, H), jnp.float32)
        _, outs = lax.scan(cell, h0, jnp.transpose(seq, (1, 0, 2)))
        seq = jnp.transpose(outs, (1, 0, 2))
    last = seq[:, -1, :]
    return last @ params["fc"]["w"].T + params["fc"]["b"]


if __name__ == "__main__":
    B, T = 2, 8
    INPUT_SIZE, HIDDEN_SIZE, NUM_LAYERS, OUTPUT_SIZE = 16, 32, 2, 8

    key = jax.random.PRNGKey(0)
    key_x, key_p = jax.random.split(key)
    x = jax.random.normal(key_x, (B, T, INPUT_SIZE), dtype=jnp.float32)
    params = init_params(key_p, INPUT_SIZE, HIDDEN_SIZE, NUM_LAYERS, OUTPUT_SIZE)

    ref = jax.block_until_ready(stacked_gru_reference(x, params, HIDDEN_SIZE))

    # Exact-path check (f32 matmul operands): must match the f32 reference.
    out_f32 = jax.block_until_ready(
        stacked_gru_forward(x, params, HIDDEN_SIZE, matmul_dtype=jnp.float32))
    assert out_f32.shape == (B, OUTPUT_SIZE)
    assert jnp.allclose(out_f32, ref, atol=1e-4, rtol=1e-4), (
        f"f32 mismatch: max abs err {jnp.max(jnp.abs(out_f32 - ref))}")

    # Optimized path (bf16 matmul operands, f32 accumulation/elementwise):
    # bf16 operand rounding bounds the tolerance.
    out_bf16 = jax.block_until_ready(
        stacked_gru_forward(x, params, HIDDEN_SIZE))
    assert out_bf16.shape == (B, OUTPUT_SIZE)
    assert jnp.allclose(out_bf16, ref, atol=2e-2, rtol=2e-2), (
        f"bf16 mismatch: max abs err {jnp.max(jnp.abs(out_bf16 - ref))}")

    print("KERNEL_OK")
</pallas_src>

<mosaic_0001>
module attributes {stable_mosaic.version = 11 : i64} {
  func.func @_stacked_gru_kernel(%arg0: i32, %arg1: memref<8x8x128xf32, #tpu.memory_space<vmem>>, %arg2: memref<128x384xf32, #tpu.memory_space<vmem>>, %arg3: memref<128x384xf32, #tpu.memory_space<vmem>>, %arg4: memref<1x384xf32, #tpu.memory_space<vmem>>, %arg5: memref<1x384xf32, #tpu.memory_space<vmem>>, %arg6: memref<128x384xf32, #tpu.memory_space<vmem>>, %arg7: memref<128x384xf32, #tpu.memory_space<vmem>>, %arg8: memref<1x384xf32, #tpu.memory_space<vmem>>, %arg9: memref<1x384xf32, #tpu.memory_space<vmem>>, %arg10: memref<128x128xf32, #tpu.memory_space<vmem>>, %arg11: memref<1x128xf32, #tpu.memory_space<vmem>>, %arg12: memref<8x128xf32, #tpu.memory_space<vmem>>, %arg13: memref<8x8x128xf32, #tpu.memory_space<vmem>>, %arg14: memref<8x8x384xf32, #tpu.memory_space<vmem>>) attributes {dimension_semantics = [#tpu.dimension_semantics<parallel>], iteration_bounds = array<i64: 1>, scalar_prefetch = 0 : i64, scratch_operands = 2 : i64, tpu.core_type = #tpu.core_type<tc>, window_params = [{transform_indices = @transform_0, window_bounds = array<i64: 8, 8, 128>}, {pipeline_mode = #tpu.pipeline_mode<synchronous>, transform_indices = @transform_1, window_bounds = array<i64: 128, 384>}, {pipeline_mode = #tpu.pipeline_mode<synchronous>, transform_indices = @transform_2, window_bounds = array<i64: 128, 384>}, {pipeline_mode = #tpu.pipeline_mode<synchronous>, transform_indices = @transform_3, window_bounds = array<i64: 1, 384>}, {pipeline_mode = #tpu.pipeline_mode<synchronous>, transform_indices = @transform_4, window_bounds = array<i64: 1, 384>}, {pipeline_mode = #tpu.pipeline_mode<synchronous>, transform_indices = @transform_5, window_bounds = array<i64: 128, 384>}, {pipeline_mode = #tpu.pipeline_mode<synchronous>, transform_indices = @transform_6, window_bounds = array<i64: 128, 384>}, {pipeline_mode = #tpu.pipeline_mode<synchronous>, transform_indices = @transform_7, window_bounds = array<i64: 1, 384>}, {pipeline_mode = #tpu.pipeline_mode<synchronous>, transform_indices = @transform_8, window_bounds = array<i64: 1, 384>}, {pipeline_mode = #tpu.pipeline_mode<synchronous>, transform_indices = @transform_9, window_bounds = array<i64: 128, 128>}, {pipeline_mode = #tpu.pipeline_mode<synchronous>, transform_indices = @transform_10, window_bounds = array<i64: 1, 128>}, {transform_indices = @transform_11, window_bounds = array<i64: 8, 128>}]} {
    %c0 = arith.constant 0 : index
    %c0_0 = arith.constant 0 : index
    %0 = vector.load %arg3[%c0, %c0_0] : memref<128x384xf32, #tpu.memory_space<vmem>>, vector<128x384xf32>
    %c0_1 = arith.constant 0 : index
    %c0_2 = arith.constant 0 : index
    %1 = vector.load %arg5[%c0_1, %c0_2] : memref<1x384xf32, #tpu.memory_space<vmem>>, vector<1x384xf32>
    %2 = vector.shape_cast %1 : vector<1x384xf32> to vector<1x384xf32>
    %3 = vector.broadcast %2 : vector<1x384xf32> to vector<8x384xf32>
    %cst = arith.constant 0.000000e+00 : f32
    %4 = vector.broadcast %cst : f32 to vector<8x128xf32>
    %c0_3 = arith.constant 0 : index
    %c0_4 = arith.constant 0 : index
    %c0_5 = arith.constant 0 : index
    %5 = vector.load %arg1[%c0_3, %c0_4, %c0_5] : memref<8x8x128xf32, #tpu.memory_space<vmem>>, vector<8x8x128xf32>
    %6 = vector.shape_cast %5 : vector<8x8x128xf32> to vector<64x128xf32>
    %c0_6 = arith.constant 0 : index
    %c0_7 = arith.constant 0 : index
    %7 = vector.load %arg2[%c0_6, %c0_7] : memref<128x384xf32, #tpu.memory_space<vmem>>, vector<128x384xf32>
    %cst_8 = arith.constant dense<0.000000e+00> : vector<64x384xf32>
    %8 = tpu.matmul %6, %7, %cst_8 {dimension_numbers = #tpu.dot_dimension_numbers<[1], [0], [0], [1], [0, 0, 1, 1], [], []>} : vector<64x128xf32>, vector<128x384xf32>, vector<64x384xf32> -> vector<64x384xf32>
    %c0_9 = arith.constant 0 : index
    %c0_10 = arith.constant 0 : index
    %9 = vector.load %arg4[%c0_9, %c0_10] : memref<1x384xf32, #tpu.memory_space<vmem>>, vector<1x384xf32>
    %10 = vector.broadcast %9 : vector<1x384xf32> to vector<64x384xf32>
    %11 = arith.addf %8, %10 : vector<64x384xf32>
    %12 = vector.shape_cast %11 : vector<64x384xf32> to vector<8x8x384xf32>
    %c0_11 = arith.constant 0 : index
    %c0_12 = arith.constant 0 : index
    %c0_13 = arith.constant 0 : index
    %13 = vector.load %arg14[%c0_11, %c0_12, %c0_13] : memref<8x8x384xf32, #tpu.memory_space<vmem>>, vector<8x8x384xf32>
    tpu.vector_store %arg14[%c0_11, %c0_12, %c0_13], %12 {strides = array<i32>} : memref<8x8x384xf32, #tpu.memory_space<vmem>>, vector<8x8x384xf32>,
    %c0_i32 = arith.constant 0 : i32
    %14 = arith.index_cast %c0_i32 : i32 to index
    %c0_14 = arith.constant 0 : index
    %c0_15 = arith.constant 0 : index
    %15 = vector.load %arg14[%14, %c0_14, %c0_15] : memref<8x8x384xf32, #tpu.memory_space<vmem>>, vector<1x8x384xf32>
    %16 = vector.shape_cast %15 : vector<1x8x384xf32> to vector<8x384xf32>
    %cst_16 = arith.constant dense<0.000000e+00> : vector<8x384xf32>
    %17 = tpu.matmul %4, %0, %cst_16 {dimension_numbers = #tpu.dot_dimension_numbers<[1], [0], [0], [1], [0, 0, 1, 1], [], []>} : vector<8x128xf32>, vector<128x384xf32>, vector<8x384xf32> -> vector<8x384xf32>
    %18 = arith.addf %17, %3 : vector<8x384xf32>
    %19 = vector.extract_strided_slice %16 {offsets = [0, 0], sizes = [8, 128], strides = [1, 1]} : vector<8x384xf32> to vector<8x128xf32>
    %20 = vector.extract_strided_slice %18 {offsets = [0, 0], sizes = [8, 128], strides = [1, 1]} : vector<8x384xf32> to vector<8x128xf32>
    %21 = arith.addf %19, %20 : vector<8x128xf32>
    %22 = arith.negf %21 : vector<8x128xf32>
    %23 = math.exp %22 : vector<8x128xf32>
    %cst_17 = arith.constant 1.000000e+00 : f32
    %24 = vector.broadcast %cst_17 : f32 to vector<8x128xf32>
    %25 = arith.addf %24, %23 : vector<8x128xf32>
    %26 = arith.divf %24, %25 : vector<8x128xf32>
    %27 = vector.extract_strided_slice %16 {offsets = [0, 128], sizes = [8, 128], strides = [1, 1]} : vector<8x384xf32> to vector<8x128xf32>
    %28 = vector.extract_strided_slice %18 {offsets = [0, 128], sizes = [8, 128], strides = [1, 1]} : vector<8x384xf32> to vector<8x128xf32>
    %29 = arith.addf %27, %28 : vector<8x128xf32>
    %30 = arith.negf %29 : vector<8x128xf32>
    %31 = math.exp %30 : vector<8x128xf32>
    %cst_18 = arith.constant 1.000000e+00 : f32
    %32 = vector.broadcast %cst_18 : f32 to vector<8x128xf32>
    %33 = arith.addf %32, %31 : vector<8x128xf32>
    %34 = arith.divf %32, %33 : vector<8x128xf32>
    %35 = vector.extract_strided_slice %16 {offsets = [0, 256], sizes = [8, 128], strides = [1, 1]} : vector<8x384xf32> to vector<8x128xf32>
    %36 = vector.extract_strided_slice %18 {offsets = [0, 256], sizes = [8, 128], strides = [1, 1]} : vector<8x384xf32> to vector<8x128xf32>
    %37 = arith.mulf %26, %36 : vector<8x128xf32>
    %38 = arith.addf %35, %37 : vector<8x128xf32>
    %39 = math.tanh %38 : vector<8x128xf32>
    %cst_19 = arith.constant 1.000000e+00 : f32
    %40 = vector.broadcast %cst_19 : f32 to vector<8x128xf32>
    %41 = arith.subf %40, %34 : vector<8x128xf32>
    %42 = arith.mulf %41, %39 : vector<8x128xf32>
    %43 = arith.mulf %34, %4 : vector<8x128xf32>
    %44 = arith.addf %42, %43 : vector<8x128xf32>
    %c0_i32_20 = arith.constant 0 : i32
    %45 = arith.addi %c0_i32_20, %c0_i32 : i32
    %46 = arith.index_cast %45 : i32 to index
    %c0_21 = arith.constant 0 : index
    %c0_22 = arith.constant 0 : index
    %47 = vector.load %arg13[%46, %c0_21, %c0_22] : memref<8x8x128xf32, #tpu.memory_space<vmem>>, vector<1x8x128xf32>
    %48 = vector.shape_cast %47 : vector<1x8x128xf32> to vector<8x128xf32>
    %49 = vector.shape_cast %44 : vector<8x128xf32> to vector<1x8x128xf32>
    tpu.vector_store %arg13[%46, %c0_21, %c0_22], %49 {strides = array<i32>} : memref<8x8x128xf32, #tpu.memory_space<vmem>>, vector<1x8x128xf32>,
    %c1_i32 = arith.constant 1 : i32
    %50 = arith.index_cast %c1_i32 : i32 to index
    %c0_23 = arith.constant 0 : index
    %c0_24 = arith.constant 0 : index
    %51 = vector.load %arg14[%50, %c0_23, %c0_24] : memref<8x8x384xf32, #tpu.memory_space<vmem>>, vector<1x8x384xf32>
    %52 = vector.shape_cast %51 : vector<1x8x384xf32> to vector<8x384xf32>
    %cst_25 = arith.constant dense<0.000000e+00> : vector<8x384xf32>
    %53 = tpu.matmul %44, %0, %cst_25 {dimension_numbers = #tpu.dot_dimension_numbers<[1], [0], [0], [1], [0, 0, 1, 1], [], []>} : vector<8x128xf32>, vector<128x384xf32>, vector<8x384xf32> -> vector<8x384xf32>
    %54 = arith.addf %53, %3 : vector<8x384xf32>
    %55 = vector.extract_strided_slice %52 {offsets = [0, 0], sizes = [8, 128], strides = [1, 1]} : vector<8x384xf32> to vector<8x128xf32>
    %56 = vector.extract_strided_slice %54 {offsets = [0, 0], sizes = [8, 128], strides = [1, 1]} : vector<8x384xf32> to vector<8x128xf32>
    %57 = arith.addf %55, %56 : vector<8x128xf32>
    %58 = arith.negf %57 : vector<8x128xf32>
    %59 = math.exp %58 : vector<8x128xf32>
    %cst_26 = arith.constant 1.000000e+00 : f32
    %60 = vector.broadcast %cst_26 : f32 to vector<8x128xf32>
    %61 = arith.addf %60, %59 : vector<8x128xf32>
    %62 = arith.divf %60, %61 : vector<8x128xf32>
    %63 = vector.extract_strided_slice %52 {offsets = [0, 128], sizes = [8, 128], strides = [1, 1]} : vector<8x384xf32> to vector<8x128xf32>
    %64 = vector.extract_strided_slice %54 {offsets = [0, 128], sizes = [8, 128], strides = [1, 1]} : vector<8x384xf32> to vector<8x128xf32>
    %65 = arith.addf %63, %64 : vector<8x128xf32>
    %66 = arith.negf %65 : vector<8x128xf32>
    %67 = math.exp %66 : vector<8x128xf32>
    %cst_27 = arith.constant 1.000000e+00 : f32
    %68 = vector.broadcast %cst_27 : f32 to vector<8x128xf32>
    %69 = arith.addf %68, %67 : vector<8x128xf32>
    %70 = arith.divf %68, %69 : vector<8x128xf32>
    %71 = vector.extract_strided_slice %52 {offsets = [0, 256], sizes = [8, 128], strides = [1, 1]} : vector<8x384xf32> to vector<8x128xf32>
    %72 = vector.extract_strided_slice %54 {offsets = [0, 256], sizes = [8, 128], strides = [1, 1]} : vector<8x384xf32> to vector<8x128xf32>
    %73 = arith.mulf %62, %72 : vector<8x128xf32>
    %74 = arith.addf %71, %73 : vector<8x128xf32>
    %75 = math.tanh %74 : vector<8x128xf32>
    %cst_28 = arith.constant 1.000000e+00 : f32
    %76 = vector.broadcast %cst_28 : f32 to vector<8x128xf32>
    %77 = arith.subf %76, %70 : vector<8x128xf32>
    %78 = arith.mulf %77, %75 : vector<8x128xf32>
    %79 = arith.mulf %70, %44 : vector<8x128xf32>
    %80 = arith.addf %78, %79 : vector<8x128xf32>
    %c0_i32_29 = arith.constant 0 : i32
    %81 = arith.addi %c0_i32_29, %c1_i32 : i32
    %82 = arith.index_cast %81 : i32 to index
    %c0_30 = arith.constant 0 : index
    %c0_31 = arith.constant 0 : index
    %83 = vector.load %arg13[%82, %c0_30, %c0_31] : memref<8x8x128xf32, #tpu.memory_space<vmem>>, vector<1x8x128xf32>
    %84 = vector.shape_cast %83 : vector<1x8x128xf32> to vector<8x128xf32>
    %85 = vector.shape_cast %80 : vector<8x128xf32> to vector<1x8x128xf32>
    tpu.vector_store %arg13[%82, %c0_30, %c0_31], %85 {strides = array<i32>} : memref<8x8x128xf32, #tpu.memory_space<vmem>>, vector<1x8x128xf32>,
    %c2_i32 = arith.constant 2 : i32
    %86 = arith.index_cast %c2_i32 : i32 to index
    %c0_32 = arith.constant 0 : index
    %c0_33 = arith.constant 0 : index
    %87 = vector.load %arg14[%86, %c0_32, %c0_33] : memref<8x8x384xf32, #tpu.memory_space<vmem>>, vector<1x8x384xf32>
    %88 = vector.shape_cast %87 : vector<1x8x384xf32> to vector<8x384xf32>
    %cst_34 = arith.constant dense<0.000000e+00> : vector<8x384xf32>
    %89 = tpu.matmul %80, %0, %cst_34 {dimension_numbers = #tpu.dot_dimension_numbers<[1], [0], [0], [1], [0, 0, 1, 1], [], []>} : vector<8x128xf32>, vector<128x384xf32>, vector<8x384xf32> -> vector<8x384xf32>
    %90 = arith.addf %89, %3 : vector<8x384xf32>
    %91 = vector.extract_strided_slice %88 {offsets = [0, 0], sizes = [8, 128], strides = [1, 1]} : vector<8x384xf32> to vector<8x128xf32>
    %92 = vector.extract_strided_slice %90 {offsets = [0, 0], sizes = [8, 128], strides = [1, 1]} : vector<8x384xf32> to vector<8x128xf32>
    %93 = arith.addf %91, %92 : vector<8x128xf32>
    %94 = arith.negf %93 : vector<8x128xf32>
    %95 = math.exp %94 : vector<8x128xf32>
    %cst_35 = arith.constant 1.000000e+00 : f32
    %96 = vector.broadcast %cst_35 : f32 to vector<8x128xf32>
    %97 = arith.addf %96, %95 : vector<8x128xf32>
    %98 = arith.divf %96, %97 : vector<8x128xf32>
    %99 = vector.extract_strided_slice %88 {offsets = [0, 128], sizes = [8, 128], strides = [1, 1]} : vector<8x384xf32> to vector<8x128xf32>
    %100 = vector.extract_strided_slice %90 {offsets = [0, 128], sizes = [8, 128], strides = [1, 1]} : vector<8x384xf32> to vector<8x128xf32>
    %101 = arith.addf %99, %100 : vector<8x128xf32>
    %102 = arith.negf %101 : vector<8x128xf32>
    %103 = math.exp %102 : vector<8x128xf32>
    %cst_36 = arith.constant 1.000000e+00 : f32
    %104 = vector.broadcast %cst_36 : f32 to vector<8x128xf32>
    %105 = arith.addf %104, %103 : vector<8x128xf32>
    %106 = arith.divf %104, %105 : vector<8x128xf32>
    %107 = vector.extract_strided_slice %88 {offsets = [0, 256], sizes = [8, 128], strides = [1, 1]} : vector<8x384xf32> to vector<8x128xf32>
    %108 = vector.extract_strided_slice %90 {offsets = [0, 256], sizes = [8, 128], strides = [1, 1]} : vector<8x384xf32> to vector<8x128xf32>
    %109 = arith.mulf %98, %108 : vector<8x128xf32>
    %110 = arith.addf %107, %109 : vector<8x128xf32>
    %111 = math.tanh %110 : vector<8x128xf32>
    %cst_37 = arith.constant 1.000000e+00 : f32
    %112 = vector.broadcast %cst_37 : f32 to vector<8x128xf32>
    %113 = arith.subf %112, %106 : vector<8x128xf32>
    %114 = arith.mulf %113, %111 : vector<8x128xf32>
    %115 = arith.mulf %106, %80 : vector<8x128xf32>
    %116 = arith.addf %114, %115 : vector<8x128xf32>
    %c0_i32_38 = arith.constant 0 : i32
    %117 = arith.addi %c0_i32_38, %c2_i32 : i32
    %118 = arith.index_cast %117 : i32 to index
    %c0_39 = arith.constant 0 : index
    %c0_40 = arith.constant 0 : index
    %119 = vector.load %arg13[%118, %c0_39, %c0_40] : memref<8x8x128xf32, #tpu.memory_space<vmem>>, vector<1x8x128xf32>
    %120 = vector.shape_cast %119 : vector<1x8x128xf32> to vector<8x128xf32>
    %121 = vector.shape_cast %116 : vector<8x128xf32> to vector<1x8x128xf32>
    tpu.vector_store %arg13[%118, %c0_39, %c0_40], %121 {strides = array<i32>} : memref<8x8x128xf32, #tpu.memory_space<vmem>>, vector<1x8x128xf32>,
    %c3_i32 = arith.constant 3 : i32
    %122 = arith.index_cast %c3_i32 : i32 to index
    %c0_41 = arith.constant 0 : index
    %c0_42 = arith.constant 0 : index
    %123 = vector.load %arg14[%122, %c0_41, %c0_42] : memref<8x8x384xf32, #tpu.memory_space<vmem>>, vector<1x8x384xf32>
    %124 = vector.shape_cast %123 : vector<1x8x384xf32> to vector<8x384xf32>
    %cst_43 = arith.constant dense<0.000000e+00> : vector<8x384xf32>
    %125 = tpu.matmul %116, %0, %cst_43 {dimension_numbers = #tpu.dot_dimension_numbers<[1], [0], [0], [1], [0, 0, 1, 1], [], []>} : vector<8x128xf32>, vector<128x384xf32>, vector<8x384xf32> -> vector<8x384xf32>
    %126 = arith.addf %125, %3 : vector<8x384xf32>
    %127 = vector.extract_strided_slice %124 {offsets = [0, 0], sizes = [8, 128], strides = [1, 1]} : vector<8x384xf32> to vector<8x128xf32>
    %128 = vector.extract_strided_slice %126 {offsets = [0, 0], sizes = [8, 128], strides = [1, 1]} : vector<8x384xf32> to vector<8x128xf32>
    %129 = arith.addf %127, %128 : vector<8x128xf32>
    %130 = arith.negf %129 : vector<8x128xf32>
    %131 = math.exp %130 : vector<8x128xf32>
    %cst_44 = arith.constant 1.000000e+00 : f32
    %132 = vector.broadcast %cst_44 : f32 to vector<8x128xf32>
    %133 = arith.addf %132, %131 : vector<8x128xf32>
    %134 = arith.divf %132, %133 : vector<8x128xf32>
    %135 = vector.extract_strided_slice %124 {offsets = [0, 128], sizes = [8, 128], strides = [1, 1]} : vector<8x384xf32> to vector<8x128xf32>
    %136 = vector.extract_strided_slice %126 {offsets = [0, 128], sizes = [8, 128], strides = [1, 1]} : vector<8x384xf32> to vector<8x128xf32>
    %137 = arith.addf %135, %136 : vector<8x128xf32>
    %138 = arith.negf %137 : vector<8x128xf32>
    %139 = math.exp %138 : vector<8x128xf32>
    %cst_45 = arith.constant 1.000000e+00 : f32
    %140 = vector.broadcast %cst_45 : f32 to vector<8x128xf32>
    %141 = arith.addf %140, %139 : vector<8x128xf32>
    %142 = arith.divf %140, %141 : vector<8x128xf32>
    %143 = vector.extract_strided_slice %124 {offsets = [0, 256], sizes = [8, 128], strides = [1, 1]} : vector<8x384xf32> to vector<8x128xf32>
    %144 = vector.extract_strided_slice %126 {offsets = [0, 256], sizes = [8, 128], strides = [1, 1]} : vector<8x384xf32> to vector<8x128xf32>
    %145 = arith.mulf %134, %144 : vector<8x128xf32>
    %146 = arith.addf %143, %145 : vector<8x128xf32>
    %147 = math.tanh %146 : vector<8x128xf32>
    %cst_46 = arith.constant 1.000000e+00 : f32
    %148 = vector.broadcast %cst_46 : f32 to vector<8x128xf32>
    %149 = arith.subf %148, %142 : vector<8x128xf32>
    %150 = arith.mulf %149, %147 : vector<8x128xf32>
    %151 = arith.mulf %142, %116 : vector<8x128xf32>
    %152 = arith.addf %150, %151 : vector<8x128xf32>
    %c0_i32_47 = arith.constant 0 : i32
    %153 = arith.addi %c0_i32_47, %c3_i32 : i32
    %154 = arith.index_cast %153 : i32 to index
    %c0_48 = arith.constant 0 : index
    %c0_49 = arith.constant 0 : index
    %155 = vector.load %arg13[%154, %c0_48, %c0_49] : memref<8x8x128xf32, #tpu.memory_space<vmem>>, vector<1x8x128xf32>
    %156 = vector.shape_cast %155 : vector<1x8x128xf32> to vector<8x128xf32>
    %157 = vector.shape_cast %152 : vector<8x128xf32> to vector<1x8x128xf32>
    tpu.vector_store %arg13[%154, %c0_48, %c0_49], %157 {strides = array<i32>} : memref<8x8x128xf32, #tpu.memory_space<vmem>>, vector<1x8x128xf32>,
    %c4_i32 = arith.constant 4 : i32
    %158 = arith.index_cast %c4_i32 : i32 to index
    %c0_50 = arith.constant 0 : index
    %c0_51 = arith.constant 0 : index
    %159 = vector.load %arg14[%158, %c0_50, %c0_51] : memref<8x8x384xf32, #tpu.memory_space<vmem>>, vector<1x8x384xf32>
    %160 = vector.shape_cast %159 : vector<1x8x384xf32> to vector<8x384xf32>
    %cst_52 = arith.constant dense<0.000000e+00> : vector<8x384xf32>
    %161 = tpu.matmul %152, %0, %cst_52 {dimension_numbers = #tpu.dot_dimension_numbers<[1], [0], [0], [1], [0, 0, 1, 1], [], []>} : vector<8x128xf32>, vector<128x384xf32>, vector<8x384xf32> -> vector<8x384xf32>
    %162 = arith.addf %161, %3 : vector<8x384xf32>
    %163 = vector.extract_strided_slice %160 {offsets = [0, 0], sizes = [8, 128], strides = [1, 1]} : vector<8x384xf32> to vector<8x128xf32>
    %164 = vector.extract_strided_slice %162 {offsets = [0, 0], sizes = [8, 128], strides = [1, 1]} : vector<8x384xf32> to vector<8x128xf32>
    %165 = arith.addf %163, %164 : vector<8x128xf32>
    %166 = arith.negf %165 : vector<8x128xf32>
    %167 = math.exp %166 : vector<8x128xf32>
    %cst_53 = arith.constant 1.000000e+00 : f32
    %168 = vector.broadcast %cst_53 : f32 to vector<8x128xf32>
    %169 = arith.addf %168, %167 : vector<8x128xf32>
    %170 = arith.divf %168, %169 : vector<8x128xf32>
    %171 = vector.extract_strided_slice %160 {offsets = [0, 128], sizes = [8, 128], strides = [1, 1]} : vector<8x384xf32> to vector<8x128xf32>
    %172 = vector.extract_strided_slice %162 {offsets = [0, 128], sizes = [8, 128], strides = [1, 1]} : vector<8x384xf32> to vector<8x128xf32>
    %173 = arith.addf %171, %172 : vector<8x128xf32>
    %174 = arith.negf %173 : vector<8x128xf32>
    %175 = math.exp %174 : vector<8x128xf32>
    %cst_54 = arith.constant 1.000000e+00 : f32
    %176 = vector.broadcast %cst_54 : f32 to vector<8x128xf32>
    %177 = arith.addf %176, %175 : vector<8x128xf32>
    %178 = arith.divf %176, %177 : vector<8x128xf32>
    %179 = vector.extract_strided_slice %160 {offsets = [0, 256], sizes = [8, 128], strides = [1, 1]} : vector<8x384xf32> to vector<8x128xf32>
    %180 = vector.extract_strided_slice %162 {offsets = [0, 256], sizes = [8, 128], strides = [1, 1]} : vector<8x384xf32> to vector<8x128xf32>
    %181 = arith.mulf %170, %180 : vector<8x128xf32>
    %182 = arith.addf %179, %181 : vector<8x128xf32>
    %183 = math.tanh %182 : vector<8x128xf32>
    %cst_55 = arith.constant 1.000000e+00 : f32
    %184 = vector.broadcast %cst_55 : f32 to vector<8x128xf32>
    %185 = arith.subf %184, %178 : vector<8x128xf32>
    %186 = arith.mulf %185, %183 : vector<8x128xf32>
    %187 = arith.mulf %178, %152 : vector<8x128xf32>
    %188 = arith.addf %186, %187 : vector<8x128xf32>
    %c0_i32_56 = arith.constant 0 : i32
    %189 = arith.addi %c0_i32_56, %c4_i32 : i32
    %190 = arith.index_cast %189 : i32 to index
    %c0_57 = arith.constant 0 : index
    %c0_58 = arith.constant 0 : index
    %191 = vector.load %arg13[%190, %c0_57, %c0_58] : memref<8x8x128xf32, #tpu.memory_space<vmem>>, vector<1x8x128xf32>
    %192 = vector.shape_cast %191 : vector<1x8x128xf32> to vector<8x128xf32>
    %193 = vector.shape_cast %188 : vector<8x128xf32> to vector<1x8x128xf32>
    tpu.vector_store %arg13[%190, %c0_57, %c0_58], %193 {strides = array<i32>} : memref<8x8x128xf32, #tpu.memory_space<vmem>>, vector<1x8x128xf32>,
    %c5_i32 = arith.constant 5 : i32
    %194 = arith.index_cast %c5_i32 : i32 to index
    %c0_59 = arith.constant 0 : index
    %c0_60 = arith.constant 0 : index
    %195 = vector.load %arg14[%194, %c0_59, %c0_60] : memref<8x8x384xf32, #tpu.memory_space<vmem>>, vector<1x8x384xf32>
    %196 = vector.shape_cast %195 : vector<1x8x384xf32> to vector<8x384xf32>
    %cst_61 = arith.constant dense<0.000000e+00> : vector<8x384xf32>
    %197 = tpu.matmul %188, %0, %cst_61 {dimension_numbers = #tpu.dot_dimension_numbers<[1], [0], [0], [1], [0, 0, 1, 1], [], []>} : vector<8x128xf32>, vector<128x384xf32>, vector<8x384xf32> -> vector<8x384xf32>
    %198 = arith.addf %197, %3 : vector<8x384xf32>
    %199 = vector.extract_strided_slice %196 {offsets = [0, 0], sizes = [8, 128], strides = [1, 1]} : vector<8x384xf32> to vector<8x128xf32>
    %200 = vector.extract_strided_slice %198 {offsets = [0, 0], sizes = [8, 128], strides = [1, 1]} : vector<8x384xf32> to vector<8x128xf32>
    %201 = arith.addf %199, %200 : vector<8x128xf32>
    %202 = arith.negf %201 : vector<8x128xf32>
    %203 = math.exp %202 : vector<8x128xf32>
    %cst_62 = arith.constant 1.000000e+00 : f32
    %204 = vector.broadcast %cst_62 : f32 to vector<8x128xf32>
    %205 = arith.addf %204, %203 : vector<8x128xf32>
    %206 = arith.divf %204, %205 : vector<8x128xf32>
    %207 = vector.extract_strided_slice %196 {offsets = [0, 128], sizes = [8, 128], strides = [1, 1]} : vector<8x384xf32> to vector<8x128xf32>
    %208 = vector.extract_strided_slice %198 {offsets = [0, 128], sizes = [8, 128], strides = [1, 1]} : vector<8x384xf32> to vector<8x128xf32>
    %209 = arith.addf %207, %208 : vector<8x128xf32>
    %210 = arith.negf %209 : vector<8x128xf32>
    %211 = math.exp %210 : vector<8x128xf32>
    %cst_63 = arith.constant 1.000000e+00 : f32
    %212 = vector.broadcast %cst_63 : f32 to vector<8x128xf32>
    %213 = arith.addf %212, %211 : vector<8x128xf32>
    %214 = arith.divf %212, %213 : vector<8x128xf32>
    %215 = vector.extract_strided_slice %196 {offsets = [0, 256], sizes = [8, 128], strides = [1, 1]} : vector<8x384xf32> to vector<8x128xf32>
    %216 = vector.extract_strided_slice %198 {offsets = [0, 256], sizes = [8, 128], strides = [1, 1]} : vector<8x384xf32> to vector<8x128xf32>
    %217 = arith.mulf %206, %216 : vector<8x128xf32>
    %218 = arith.addf %215, %217 : vector<8x128xf32>
    %219 = math.tanh %218 : vector<8x128xf32>
    %cst_64 = arith.constant 1.000000e+00 : f32
    %220 = vector.broadcast %cst_64 : f32 to vector<8x128xf32>
    %221 = arith.subf %220, %214 : vector<8x128xf32>
    %222 = arith.mulf %221, %219 : vector<8x128xf32>
    %223 = arith.mulf %214, %188 : vector<8x128xf32>
    %224 = arith.addf %222, %223 : vector<8x128xf32>
    %c0_i32_65 = arith.constant 0 : i32
    %225 = arith.addi %c0_i32_65, %c5_i32 : i32
    %226 = arith.index_cast %225 : i32 to index
    %c0_66 = arith.constant 0 : index
    %c0_67 = arith.constant 0 : index
    %227 = vector.load %arg13[%226, %c0_66, %c0_67] : memref<8x8x128xf32, #tpu.memory_space<vmem>>, vector<1x8x128xf32>
    %228 = vector.shape_cast %227 : vector<1x8x128xf32> to vector<8x128xf32>
    %229 = vector.shape_cast %224 : vector<8x128xf32> to vector<1x8x128xf32>
    tpu.vector_store %arg13[%226, %c0_66, %c0_67], %229 {strides = array<i32>} : memref<8x8x128xf32, #tpu.memory_space<vmem>>, vector<1x8x128xf32>,
    %c6_i32 = arith.constant 6 : i32
    %230 = arith.index_cast %c6_i32 : i32 to index
    %c0_68 = arith.constant 0 : index
    %c0_69 = arith.constant 0 : index
    %231 = vector.load %arg14[%230, %c0_68, %c0_69] : memref<8x8x384xf32, #tpu.memory_space<vmem>>, vector<1x8x384xf32>
    %232 = vector.shape_cast %231 : vector<1x8x384xf32> to vector<8x384xf32>
    %cst_70 = arith.constant dense<0.000000e+00> : vector<8x384xf32>
    %233 = tpu.matmul %224, %0, %cst_70 {dimension_numbers = #tpu.dot_dimension_numbers<[1], [0], [0], [1], [0, 0, 1, 1], [], []>} : vector<8x128xf32>, vector<128x384xf32>, vector<8x384xf32> -> vector<8x384xf32>
    %234 = arith.addf %233, %3 : vector<8x384xf32>
    %235 = vector.extract_strided_slice %232 {offsets = [0, 0], sizes = [8, 128], strides = [1, 1]} : vector<8x384xf32> to vector<8x128xf32>
    %236 = vector.extract_strided_slice %234 {offsets = [0, 0], sizes = [8, 128], strides = [1, 1]} : vector<8x384xf32> to vector<8x128xf32>
    %237 = arith.addf %235, %236 : vector<8x128xf32>
    %238 = arith.negf %237 : vector<8x128xf32>
    %239 = math.exp %238 : vector<8x128xf32>
    %cst_71 = arith.constant 1.000000e+00 : f32
    %240 = vector.broadcast %cst_71 : f32 to vector<8x128xf32>
    %241 = arith.addf %240, %239 : vector<8x128xf32>
    %242 = arith.divf %240, %241 : vector<8x128xf32>
    %243 = vector.extract_strided_slice %232 {offsets = [0, 128], sizes = [8, 128], strides = [1, 1]} : vector<8x384xf32> to vector<8x128xf32>
    %244 = vector.extract_strided_slice %234 {offsets = [0, 128], sizes = [8, 128], strides = [1, 1]} : vector<8x384xf32> to vector<8x128xf32>
    %245 = arith.addf %243, %244 : vector<8x128xf32>
    %246 = arith.negf %245 : vector<8x128xf32>
    %247 = math.exp %246 : vector<8x128xf32>
    %cst_72 = arith.constant 1.000000e+00 : f32
    %248 = vector.broadcast %cst_72 : f32 to vector<8x128xf32>
    %249 = arith.addf %248, %247 : vector<8x128xf32>
    %250 = arith.divf %248, %249 : vector<8x128xf32>
    %251 = vector.extract_strided_slice %232 {offsets = [0, 256], sizes = [8, 128], strides = [1, 1]} : vector<8x384xf32> to vector<8x128xf32>
    %252 = vector.extract_strided_slice %234 {offsets = [0, 256], sizes = [8, 128], strides = [1, 1]} : vector<8x384xf32> to vector<8x128xf32>
    %253 = arith.mulf %242, %252 : vector<8x128xf32>
    %254 = arith.addf %251, %253 : vector<8x128xf32>
    %255 = math.tanh %254 : vector<8x128xf32>
    %cst_73 = arith.constant 1.000000e+00 : f32
    %256 = vector.broadcast %cst_73 : f32 to vector<8x128xf32>
    %257 = arith.subf %256, %250 : vector<8x128xf32>
    %258 = arith.mulf %257, %255 : vector<8x128xf32>
    %259 = arith.mulf %250, %224 : vector<8x128xf32>
    %260 = arith.addf %258, %259 : vector<8x128xf32>
    %c0_i32_74 = arith.constant 0 : i32
    %261 = arith.addi %c0_i32_74, %c6_i32 : i32
    %262 = arith.index_cast %261 : i32 to index
    %c0_75 = arith.constant 0 : index
    %c0_76 = arith.constant 0 : index
    %263 = vector.load %arg13[%262, %c0_75, %c0_76] : memref<8x8x128xf32, #tpu.memory_space<vmem>>, vector<1x8x128xf32>
    %264 = vector.shape_cast %263 : vector<1x8x128xf32> to vector<8x128xf32>
    %265 = vector.shape_cast %260 : vector<8x128xf32> to vector<1x8x128xf32>
    tpu.vector_store %arg13[%262, %c0_75, %c0_76], %265 {strides = array<i32>} : memref<8x8x128xf32, #tpu.memory_space<vmem>>, vector<1x8x128xf32>,
    %c7_i32 = arith.constant 7 : i32
    %266 = arith.index_cast %c7_i32 : i32 to index
    %c0_77 = arith.constant 0 : index
    %c0_78 = arith.constant 0 : index
    %267 = vector.load %arg14[%266, %c0_77, %c0_78] : memref<8x8x384xf32, #tpu.memory_space<vmem>>, vector<1x8x384xf32>
    %268 = vector.shape_cast %267 : vector<1x8x384xf32> to vector<8x384xf32>
    %cst_79 = arith.constant dense<0.000000e+00> : vector<8x384xf32>
    %269 = tpu.matmul %260, %0, %cst_79 {dimension_numbers = #tpu.dot_dimension_numbers<[1], [0], [0], [1], [0, 0, 1, 1], [], []>} : vector<8x128xf32>, vector<128x384xf32>, vector<8x384xf32> -> vector<8x384xf32>
    %270 = arith.addf %269, %3 : vector<8x384xf32>
    %271 = vector.extract_strided_slice %268 {offsets = [0, 0], sizes = [8, 128], strides = [1, 1]} : vector<8x384xf32> to vector<8x128xf32>
    %272 = vector.extract_strided_slice %270 {offsets = [0, 0], sizes = [8, 128], strides = [1, 1]} : vector<8x384xf32> to vector<8x128xf32>
    %273 = arith.addf %271, %272 : vector<8x128xf32>
    %274 = arith.negf %273 : vector<8x128xf32>
    %275 = math.exp %274 : vector<8x128xf32>
    %cst_80 = arith.constant 1.000000e+00 : f32
    %276 = vector.broadcast %cst_80 : f32 to vector<8x128xf32>
    %277 = arith.addf %276, %275 : vector<8x128xf32>
    %278 = arith.divf %276, %277 : vector<8x128xf32>
    %279 = vector.extract_strided_slice %268 {offsets = [0, 128], sizes = [8, 128], strides = [1, 1]} : vector<8x384xf32> to vector<8x128xf32>
    %280 = vector.extract_strided_slice %270 {offsets = [0, 128], sizes = [8, 128], strides = [1, 1]} : vector<8x384xf32> to vector<8x128xf32>
    %281 = arith.addf %279, %280 : vector<8x128xf32>
    %282 = arith.negf %281 : vector<8x128xf32>
    %283 = math.exp %282 : vector<8x128xf32>
    %cst_81 = arith.constant 1.000000e+00 : f32
    %284 = vector.broadcast %cst_81 : f32 to vector<8x128xf32>
    %285 = arith.addf %284, %283 : vector<8x128xf32>
    %286 = arith.divf %284, %285 : vector<8x128xf32>
    %287 = vector.extract_strided_slice %268 {offsets = [0, 256], sizes = [8, 128], strides = [1, 1]} : vector<8x384xf32> to vector<8x128xf32>
    %288 = vector.extract_strided_slice %270 {offsets = [0, 256], sizes = [8, 128], strides = [1, 1]} : vector<8x384xf32> to vector<8x128xf32>
    %289 = arith.mulf %278, %288 : vector<8x128xf32>
    %290 = arith.addf %287, %289 : vector<8x128xf32>
    %291 = math.tanh %290 : vector<8x128xf32>
    %cst_82 = arith.constant 1.000000e+00 : f32
    %292 = vector.broadcast %cst_82 : f32 to vector<8x128xf32>
    %293 = arith.subf %292, %286 : vector<8x128xf32>
    %294 = arith.mulf %293, %291 : vector<8x128xf32>
    %295 = arith.mulf %286, %260 : vector<8x128xf32>
    %296 = arith.addf %294, %295 : vector<8x128xf32>
    %c0_i32_83 = arith.constant 0 : i32
    %297 = arith.addi %c0_i32_83, %c7_i32 : i32
    %298 = arith.index_cast %297 : i32 to index
    %c0_84 = arith.constant 0 : index
    %c0_85 = arith.constant 0 : index
    %299 = vector.load %arg13[%298, %c0_84, %c0_85] : memref<8x8x128xf32, #tpu.memory_space<vmem>>, vector<1x8x128xf32>
    %300 = vector.shape_cast %299 : vector<1x8x128xf32> to vector<8x128xf32>
    %301 = vector.shape_cast %296 : vector<8x128xf32> to vector<1x8x128xf32>
    tpu.vector_store %arg13[%298, %c0_84, %c0_85], %301 {strides = array<i32>} : memref<8x8x128xf32, #tpu.memory_space<vmem>>, vector<1x8x128xf32>,
    %c8_i32 = arith.constant 8 : i32
    %c0_86 = arith.constant 0 : index
    %c0_87 = arith.constant 0 : index
    %302 = vector.load %arg7[%c0_86, %c0_87] : memref<128x384xf32, #tpu.memory_space<vmem>>, vector<128x384xf32>
    %c0_88 = arith.constant 0 : index
    %c0_89 = arith.constant 0 : index
    %303 = vector.load %arg9[%c0_88, %c0_89] : memref<1x384xf32, #tpu.memory_space<vmem>>, vector<1x384xf32>
    %304 = vector.shape_cast %303 : vector<1x384xf32> to vector<1x384xf32>
    %305 = vector.broadcast %304 : vector<1x384xf32> to vector<8x384xf32>
    %cst_90 = arith.constant 0.000000e+00 : f32
    %306 = vector.broadcast %cst_90 : f32 to vector<8x128xf32>
    %c0_91 = arith.constant 0 : index
    %c0_92 = arith.constant 0 : index
    %c0_93 = arith.constant 0 : index
    %307 = vector.load %arg13[%c0_91, %c0_92, %c0_93] : memref<8x8x128xf32, #tpu.memory_space<vmem>>, vector<8x8x128xf32>
    %308 = vector.shape_cast %307 : vector<8x8x128xf32> to vector<64x128xf32>
    %c0_94 = arith.constant 0 : index
    %c0_95 = arith.constant 0 : index
    %309 = vector.load %arg6[%c0_94, %c0_95] : memref<128x384xf32, #tpu.memory_space<vmem>>, vector<128x384xf32>
    %cst_96 = arith.constant dense<0.000000e+00> : vector<64x384xf32>
    %310 = tpu.matmul %308, %309, %cst_96 {dimension_numbers = #tpu.dot_dimension_numbers<[1], [0], [0], [1], [0, 0, 1, 1], [], []>} : vector<64x128xf32>, vector<128x384xf32>, vector<64x384xf32> -> vector<64x384xf32>
    %c0_97 = arith.constant 0 : index
    %c0_98 = arith.constant 0 : index
    %311 = vector.load %arg8[%c0_97, %c0_98] : memref<1x384xf32, #tpu.memory_space<vmem>>, vector<1x384xf32>
    %312 = vector.broadcast %311 : vector<1x384xf32> to vector<64x384xf32>
    %313 = arith.addf %310, %312 : vector<64x384xf32>
    %314 = vector.shape_cast %313 : vector<64x384xf32> to vector<8x8x384xf32>
    %c0_99 = arith.constant 0 : index
    %c0_100 = arith.constant 0 : index
    %c0_101 = arith.constant 0 : index
    %315 = vector.load %arg14[%c0_99, %c0_100, %c0_101] : memref<8x8x384xf32, #tpu.memory_space<vmem>>, vector<8x8x384xf32>
    tpu.vector_store %arg14[%c0_99, %c0_100, %c0_101], %314 {strides = array<i32>} : memref<8x8x384xf32, #tpu.memory_space<vmem>>, vector<8x8x384xf32>,
    %c0_i32_102 = arith.constant 0 : i32
    %316 = arith.index_cast %c0_i32_102 : i32 to index
    %c0_103 = arith.constant 0 : index
    %c0_104 = arith.constant 0 : index
    %317 = vector.load %arg14[%316, %c0_103, %c0_104] : memref<8x8x384xf32, #tpu.memory_space<vmem>>, vector<1x8x384xf32>
    %318 = vector.shape_cast %317 : vector<1x8x384xf32> to vector<8x384xf32>
    %cst_105 = arith.constant dense<0.000000e+00> : vector<8x384xf32>
    %319 = tpu.matmul %306, %302, %cst_105 {dimension_numbers = #tpu.dot_dimension_numbers<[1], [0], [0], [1], [0, 0, 1, 1], [], []>} : vector<8x128xf32>, vector<128x384xf32>, vector<8x384xf32> -> vector<8x384xf32>
    %320 = arith.addf %319, %305 : vector<8x384xf32>
    %321 = vector.extract_strided_slice %318 {offsets = [0, 0], sizes = [8, 128], strides = [1, 1]} : vector<8x384xf32> to vector<8x128xf32>
    %322 = vector.extract_strided_slice %320 {offsets = [0, 0], sizes = [8, 128], strides = [1, 1]} : vector<8x384xf32> to vector<8x128xf32>
    %323 = arith.addf %321, %322 : vector<8x128xf32>
    %324 = arith.negf %323 : vector<8x128xf32>
    %325 = math.exp %324 : vector<8x128xf32>
    %cst_106 = arith.constant 1.000000e+00 : f32
    %326 = vector.broadcast %cst_106 : f32 to vector<8x128xf32>
    %327 = arith.addf %326, %325 : vector<8x128xf32>
    %328 = arith.divf %326, %327 : vector<8x128xf32>
    %329 = vector.extract_strided_slice %318 {offsets = [0, 128], sizes = [8, 128], strides = [1, 1]} : vector<8x384xf32> to vector<8x128xf32>
    %330 = vector.extract_strided_slice %320 {offsets = [0, 128], sizes = [8, 128], strides = [1, 1]} : vector<8x384xf32> to vector<8x128xf32>
    %331 = arith.addf %329, %330 : vector<8x128xf32>
    %332 = arith.negf %331 : vector<8x128xf32>
    %333 = math.exp %332 : vector<8x128xf32>
    %cst_107 = arith.constant 1.000000e+00 : f32
    %334 = vector.broadcast %cst_107 : f32 to vector<8x128xf32>
    %335 = arith.addf %334, %333 : vector<8x128xf32>
    %336 = arith.divf %334, %335 : vector<8x128xf32>
    %337 = vector.extract_strided_slice %318 {offsets = [0, 256], sizes = [8, 128], strides = [1, 1]} : vector<8x384xf32> to vector<8x128xf32>
    %338 = vector.extract_strided_slice %320 {offsets = [0, 256], sizes = [8, 128], strides = [1, 1]} : vector<8x384xf32> to vector<8x128xf32>
    %339 = arith.mulf %328, %338 : vector<8x128xf32>
    %340 = arith.addf %337, %339 : vector<8x128xf32>
    %341 = math.tanh %340 : vector<8x128xf32>
    %cst_108 = arith.constant 1.000000e+00 : f32
    %342 = vector.broadcast %cst_108 : f32 to vector<8x128xf32>
    %343 = arith.subf %342, %336 : vector<8x128xf32>
    %344 = arith.mulf %343, %341 : vector<8x128xf32>
    %345 = arith.mulf %336, %306 : vector<8x128xf32>
    %346 = arith.addf %344, %345 : vector<8x128xf32>
    %c1_i32_109 = arith.constant 1 : i32
    %347 = arith.index_cast %c1_i32_109 : i32 to index
    %c0_110 = arith.constant 0 : index
    %c0_111 = arith.constant 0 : index
    %348 = vector.load %arg14[%347, %c0_110, %c0_111] : memref<8x8x384xf32, #tpu.memory_space<vmem>>, vector<1x8x384xf32>
    %349 = vector.shape_cast %348 : vector<1x8x384xf32> to vector<8x384xf32>
    %cst_112 = arith.constant dense<0.000000e+00> : vector<8x384xf32>
    %350 = tpu.matmul %346, %302, %cst_112 {dimension_numbers = #tpu.dot_dimension_numbers<[1], [0], [0], [1], [0, 0, 1, 1], [], []>} : vector<8x128xf32>, vector<128x384xf32>, vector<8x384xf32> -> vector<8x384xf32>
    %351 = arith.addf %350, %305 : vector<8x384xf32>
    %352 = vector.extract_strided_slice %349 {offsets = [0, 0], sizes = [8, 128], strides = [1, 1]} : vector<8x384xf32> to vector<8x128xf32>
    %353 = vector.extract_strided_slice %351 {offsets = [0, 0], sizes = [8, 128], strides = [1, 1]} : vector<8x384xf32> to vector<8x128xf32>
    %354 = arith.addf %352, %353 : vector<8x128xf32>
    %355 = arith.negf %354 : vector<8x128xf32>
    %356 = math.exp %355 : vector<8x128xf32>
    %cst_113 = arith.constant 1.000000e+00 : f32
    %357 = vector.broadcast %cst_113 : f32 to vector<8x128xf32>
    %358 = arith.addf %357, %356 : vector<8x128xf32>
    %359 = arith.divf %357, %358 : vector<8x128xf32>
    %360 = vector.extract_strided_slice %349 {offsets = [0, 128], sizes = [8, 128], strides = [1, 1]} : vector<8x384xf32> to vector<8x128xf32>
    %361 = vector.extract_strided_slice %351 {offsets = [0, 128], sizes = [8, 128], strides = [1, 1]} : vector<8x384xf32> to vector<8x128xf32>
    %362 = arith.addf %360, %361 : vector<8x128xf32>
    %363 = arith.negf %362 : vector<8x128xf32>
    %364 = math.exp %363 : vector<8x128xf32>
    %cst_114 = arith.constant 1.000000e+00 : f32
    %365 = vector.broadcast %cst_114 : f32 to vector<8x128xf32>
    %366 = arith.addf %365, %364 : vector<8x128xf32>
    %367 = arith.divf %365, %366 : vector<8x128xf32>
    %368 = vector.extract_strided_slice %349 {offsets = [0, 256], sizes = [8, 128], strides = [1, 1]} : vector<8x384xf32> to vector<8x128xf32>
    %369 = vector.extract_strided_slice %351 {offsets = [0, 256], sizes = [8, 128], strides = [1, 1]} : vector<8x384xf32> to vector<8x128xf32>
    %370 = arith.mulf %359, %369 : vector<8x128xf32>
    %371 = arith.addf %368, %370 : vector<8x128xf32>
    %372 = math.tanh %371 : vector<8x128xf32>
    %cst_115 = arith.constant 1.000000e+00 : f32
    %373 = vector.broadcast %cst_115 : f32 to vector<8x128xf32>
    %374 = arith.subf %373, %367 : vector<8x128xf32>
    %375 = arith.mulf %374, %372 : vector<8x128xf32>
    %376 = arith.mulf %367, %346 : vector<8x128xf32>
    %377 = arith.addf %375, %376 : vector<8x128xf32>
    %c2_i32_116 = arith.constant 2 : i32
    %378 = arith.index_cast %c2_i32_116 : i32 to index
    %c0_117 = arith.constant 0 : index
    %c0_118 = arith.constant 0 : index
    %379 = vector.load %arg14[%378, %c0_117, %c0_118] : memref<8x8x384xf32, #tpu.memory_space<vmem>>, vector<1x8x384xf32>
    %380 = vector.shape_cast %379 : vector<1x8x384xf32> to vector<8x384xf32>
    %cst_119 = arith.constant dense<0.000000e+00> : vector<8x384xf32>
    %381 = tpu.matmul %377, %302, %cst_119 {dimension_numbers = #tpu.dot_dimension_numbers<[1], [0], [0], [1], [0, 0, 1, 1], [], []>} : vector<8x128xf32>, vector<128x384xf32>, vector<8x384xf32> -> vector<8x384xf32>
    %382 = arith.addf %381, %305 : vector<8x384xf32>
    %383 = vector.extract_strided_slice %380 {offsets = [0, 0], sizes = [8, 128], strides = [1, 1]} : vector<8x384xf32> to vector<8x128xf32>
    %384 = vector.extract_strided_slice %382 {offsets = [0, 0], sizes = [8, 128], strides = [1, 1]} : vector<8x384xf32> to vector<8x128xf32>
    %385 = arith.addf %383, %384 : vector<8x128xf32>
    %386 = arith.negf %385 : vector<8x128xf32>
    %387 = math.exp %386 : vector<8x128xf32>
    %cst_120 = arith.constant 1.000000e+00 : f32
    %388 = vector.broadcast %cst_120 : f32 to vector<8x128xf32>
    %389 = arith.addf %388, %387 : vector<8x128xf32>
    %390 = arith.divf %388, %389 : vector<8x128xf32>
    %391 = vector.extract_strided_slice %380 {offsets = [0, 128], sizes = [8, 128], strides = [1, 1]} : vector<8x384xf32> to vector<8x128xf32>
    %392 = vector.extract_strided_slice %382 {offsets = [0, 128], sizes = [8, 128], strides = [1, 1]} : vector<8x384xf32> to vector<8x128xf32>
    %393 = arith.addf %391, %392 : vector<8x128xf32>
    %394 = arith.negf %393 : vector<8x128xf32>
    %395 = math.exp %394 : vector<8x128xf32>
    %cst_121 = arith.constant 1.000000e+00 : f32
    %396 = vector.broadcast %cst_121 : f32 to vector<8x128xf32>
    %397 = arith.addf %396, %395 : vector<8x128xf32>
    %398 = arith.divf %396, %397 : vector<8x128xf32>
    %399 = vector.extract_strided_slice %380 {offsets = [0, 256], sizes = [8, 128], strides = [1, 1]} : vector<8x384xf32> to vector<8x128xf32>
    %400 = vector.extract_strided_slice %382 {offsets = [0, 256], sizes = [8, 128], strides = [1, 1]} : vector<8x384xf32> to vector<8x128xf32>
    %401 = arith.mulf %390, %400 : vector<8x128xf32>
    %402 = arith.addf %399, %401 : vector<8x128xf32>
    %403 = math.tanh %402 : vector<8x128xf32>
    %cst_122 = arith.constant 1.000000e+00 : f32
    %404 = vector.broadcast %cst_122 : f32 to vector<8x128xf32>
    %405 = arith.subf %404, %398 : vector<8x128xf32>
    %406 = arith.mulf %405, %403 : vector<8x128xf32>
    %407 = arith.mulf %398, %377 : vector<8x128xf32>
    %408 = arith.addf %406, %407 : vector<8x128xf32>
    %c3_i32_123 = arith.constant 3 : i32
    %409 = arith.index_cast %c3_i32_123 : i32 to index
    %c0_124 = arith.constant 0 : index
    %c0_125 = arith.constant 0 : index
    %410 = vector.load %arg14[%409, %c0_124, %c0_125] : memref<8x8x384xf32, #tpu.memory_space<vmem>>, vector<1x8x384xf32>
    %411 = vector.shape_cast %410 : vector<1x8x384xf32> to vector<8x384xf32>
    %cst_126 = arith.constant dense<0.000000e+00> : vector<8x384xf32>
    %412 = tpu.matmul %408, %302, %cst_126 {dimension_numbers = #tpu.dot_dimension_numbers<[1], [0], [0], [1], [0, 0, 1, 1], [], []>} : vector<8x128xf32>, vector<128x384xf32>, vector<8x384xf32> -> vector<8x384xf32>
    %413 = arith.addf %412, %305 : vector<8x384xf32>
    %414 = vector.extract_strided_slice %411 {offsets = [0, 0], sizes = [8, 128], strides = [1, 1]} : vector<8x384xf32> to vector<8x128xf32>
    %415 = vector.extract_strided_slice %413 {offsets = [0, 0], sizes = [8, 128], strides = [1, 1]} : vector<8x384xf32> to vector<8x128xf32>
    %416 = arith.addf %414, %415 : vector<8x128xf32>
    %417 = arith.negf %416 : vector<8x128xf32>
    %418 = math.exp %417 : vector<8x128xf32>
    %cst_127 = arith.constant 1.000000e+00 : f32
    %419 = vector.broadcast %cst_127 : f32 to vector<8x128xf32>
    %420 = arith.addf %419, %418 : vector<8x128xf32>
    %421 = arith.divf %419, %420 : vector<8x128xf32>
    %422 = vector.extract_strided_slice %411 {offsets = [0, 128], sizes = [8, 128], strides = [1, 1]} : vector<8x384xf32> to vector<8x128xf32>
    %423 = vector.extract_strided_slice %413 {offsets = [0, 128], sizes = [8, 128], strides = [1, 1]} : vector<8x384xf32> to vector<8x128xf32>
    %424 = arith.addf %422, %423 : vector<8x128xf32>
    %425 = arith.negf %424 : vector<8x128xf32>
    %426 = math.exp %425 : vector<8x128xf32>
    %cst_128 = arith.constant 1.000000e+00 : f32
    %427 = vector.broadcast %cst_128 : f32 to vector<8x128xf32>
    %428 = arith.addf %427, %426 : vector<8x128xf32>
    %429 = arith.divf %427, %428 : vector<8x128xf32>
    %430 = vector.extract_strided_slice %411 {offsets = [0, 256], sizes = [8, 128], strides = [1, 1]} : vector<8x384xf32> to vector<8x128xf32>
    %431 = vector.extract_strided_slice %413 {offsets = [0, 256], sizes = [8, 128], strides = [1, 1]} : vector<8x384xf32> to vector<8x128xf32>
    %432 = arith.mulf %421, %431 : vector<8x128xf32>
    %433 = arith.addf %430, %432 : vector<8x128xf32>
    %434 = math.tanh %433 : vector<8x128xf32>
    %cst_129 = arith.constant 1.000000e+00 : f32
    %435 = vector.broadcast %cst_129 : f32 to vector<8x128xf32>
    %436 = arith.subf %435, %429 : vector<8x128xf32>
    %437 = arith.mulf %436, %434 : vector<8x128xf32>
    %438 = arith.mulf %429, %408 : vector<8x128xf32>
    %439 = arith.addf %437, %438 : vector<8x128xf32>
    %c4_i32_130 = arith.constant 4 : i32
    %440 = arith.index_cast %c4_i32_130 : i32 to index
    %c0_131 = arith.constant 0 : index
    %c0_132 = arith.constant 0 : index
    %441 = vector.load %arg14[%440, %c0_131, %c0_132] : memref<8x8x384xf32, #tpu.memory_space<vmem>>, vector<1x8x384xf32>
    %442 = vector.shape_cast %441 : vector<1x8x384xf32> to vector<8x384xf32>
    %cst_133 = arith.constant dense<0.000000e+00> : vector<8x384xf32>
    %443 = tpu.matmul %439, %302, %cst_133 {dimension_numbers = #tpu.dot_dimension_numbers<[1], [0], [0], [1], [0, 0, 1, 1], [], []>} : vector<8x128xf32>, vector<128x384xf32>, vector<8x384xf32> -> vector<8x384xf32>
    %444 = arith.addf %443, %305 : vector<8x384xf32>
    %445 = vector.extract_strided_slice %442 {offsets = [0, 0], sizes = [8, 128], strides = [1, 1]} : vector<8x384xf32> to vector<8x128xf32>
    %446 = vector.extract_strided_slice %444 {offsets = [0, 0], sizes = [8, 128], strides = [1, 1]} : vector<8x384xf32> to vector<8x128xf32>
    %447 = arith.addf %445, %446 : vector<8x128xf32>
    %448 = arith.negf %447 : vector<8x128xf32>
    %449 = math.exp %448 : vector<8x128xf32>
    %cst_134 = arith.constant 1.000000e+00 : f32
    %450 = vector.broadcast %cst_134 : f32 to vector<8x128xf32>
    %451 = arith.addf %450, %449 : vector<8x128xf32>
    %452 = arith.divf %450, %451 : vector<8x128xf32>
    %453 = vector.extract_strided_slice %442 {offsets = [0, 128], sizes = [8, 128], strides = [1, 1]} : vector<8x384xf32> to vector<8x128xf32>
    %454 = vector.extract_strided_slice %444 {offsets = [0, 128], sizes = [8, 128], strides = [1, 1]} : vector<8x384xf32> to vector<8x128xf32>
    %455 = arith.addf %453, %454 : vector<8x128xf32>
    %456 = arith.negf %455 : vector<8x128xf32>
    %457 = math.exp %456 : vector<8x128xf32>
    %cst_135 = arith.constant 1.000000e+00 : f32
    %458 = vector.broadcast %cst_135 : f32 to vector<8x128xf32>
    %459 = arith.addf %458, %457 : vector<8x128xf32>
    %460 = arith.divf %458, %459 : vector<8x128xf32>
    %461 = vector.extract_strided_slice %442 {offsets = [0, 256], sizes = [8, 128], strides = [1, 1]} : vector<8x384xf32> to vector<8x128xf32>
    %462 = vector.extract_strided_slice %444 {offsets = [0, 256], sizes = [8, 128], strides = [1, 1]} : vector<8x384xf32> to vector<8x128xf32>
    %463 = arith.mulf %452, %462 : vector<8x128xf32>
    %464 = arith.addf %461, %463 : vector<8x128xf32>
    %465 = math.tanh %464 : vector<8x128xf32>
    %cst_136 = arith.constant 1.000000e+00 : f32
    %466 = vector.broadcast %cst_136 : f32 to vector<8x128xf32>
    %467 = arith.subf %466, %460 : vector<8x128xf32>
    %468 = arith.mulf %467, %465 : vector<8x128xf32>
    %469 = arith.mulf %460, %439 : vector<8x128xf32>
    %470 = arith.addf %468, %469 : vector<8x128xf32>
    %c5_i32_137 = arith.constant 5 : i32
    %471 = arith.index_cast %c5_i32_137 : i32 to index
    %c0_138 = arith.constant 0 : index
    %c0_139 = arith.constant 0 : index
    %472 = vector.load %arg14[%471, %c0_138, %c0_139] : memref<8x8x384xf32, #tpu.memory_space<vmem>>, vector<1x8x384xf32>
    %473 = vector.shape_cast %472 : vector<1x8x384xf32> to vector<8x384xf32>
    %cst_140 = arith.constant dense<0.000000e+00> : vector<8x384xf32>
    %474 = tpu.matmul %470, %302, %cst_140 {dimension_numbers = #tpu.dot_dimension_numbers<[1], [0], [0], [1], [0, 0, 1, 1], [], []>} : vector<8x128xf32>, vector<128x384xf32>, vector<8x384xf32> -> vector<8x384xf32>
    %475 = arith.addf %474, %305 : vector<8x384xf32>
    %476 = vector.extract_strided_slice %473 {offsets = [0, 0], sizes = [8, 128], strides = [1, 1]} : vector<8x384xf32> to vector<8x128xf32>
    %477 = vector.extract_strided_slice %475 {offsets = [0, 0], sizes = [8, 128], strides = [1, 1]} : vector<8x384xf32> to vector<8x128xf32>
    %478 = arith.addf %476, %477 : vector<8x128xf32>
    %479 = arith.negf %478 : vector<8x128xf32>
    %480 = math.exp %479 : vector<8x128xf32>
    %cst_141 = arith.constant 1.000000e+00 : f32
    %481 = vector.broadcast %cst_141 : f32 to vector<8x128xf32>
    %482 = arith.addf %481, %480 : vector<8x128xf32>
    %483 = arith.divf %481, %482 : vector<8x128xf32>
    %484 = vector.extract_strided_slice %473 {offsets = [0, 128], sizes = [8, 128], strides = [1, 1]} : vector<8x384xf32> to vector<8x128xf32>
    %485 = vector.extract_strided_slice %475 {offsets = [0, 128], sizes = [8, 128], strides = [1, 1]} : vector<8x384xf32> to vector<8x128xf32>
    %486 = arith.addf %484, %485 : vector<8x128xf32>
    %487 = arith.negf %486 : vector<8x128xf32>
    %488 = math.exp %487 : vector<8x128xf32>
    %cst_142 = arith.constant 1.000000e+00 : f32
    %489 = vector.broadcast %cst_142 : f32 to vector<8x128xf32>
    %490 = arith.addf %489, %488 : vector<8x128xf32>
    %491 = arith.divf %489, %490 : vector<8x128xf32>
    %492 = vector.extract_strided_slice %473 {offsets = [0, 256], sizes = [8, 128], strides = [1, 1]} : vector<8x384xf32> to vector<8x128xf32>
    %493 = vector.extract_strided_slice %475 {offsets = [0, 256], sizes = [8, 128], strides = [1, 1]} : vector<8x384xf32> to vector<8x128xf32>
    %494 = arith.mulf %483, %493 : vector<8x128xf32>
    %495 = arith.addf %492, %494 : vector<8x128xf32>
    %496 = math.tanh %495 : vector<8x128xf32>
    %cst_143 = arith.constant 1.000000e+00 : f32
    %497 = vector.broadcast %cst_143 : f32 to vector<8x128xf32>
    %498 = arith.subf %497, %491 : vector<8x128xf32>
    %499 = arith.mulf %498, %496 : vector<8x128xf32>
    %500 = arith.mulf %491, %470 : vector<8x128xf32>
    %501 = arith.addf %499, %500 : vector<8x128xf32>
    %c6_i32_144 = arith.constant 6 : i32
    %502 = arith.index_cast %c6_i32_144 : i32 to index
    %c0_145 = arith.constant 0 : index
    %c0_146 = arith.constant 0 : index
    %503 = vector.load %arg14[%502, %c0_145, %c0_146] : memref<8x8x384xf32, #tpu.memory_space<vmem>>, vector<1x8x384xf32>
    %504 = vector.shape_cast %503 : vector<1x8x384xf32> to vector<8x384xf32>
    %cst_147 = arith.constant dense<0.000000e+00> : vector<8x384xf32>
    %505 = tpu.matmul %501, %302, %cst_147 {dimension_numbers = #tpu.dot_dimension_numbers<[1], [0], [0], [1], [0, 0, 1, 1], [], []>} : vector<8x128xf32>, vector<128x384xf32>, vector<8x384xf32> -> vector<8x384xf32>
    %506 = arith.addf %505, %305 : vector<8x384xf32>
    %507 = vector.extract_strided_slice %504 {offsets = [0, 0], sizes = [8, 128], strides = [1, 1]} : vector<8x384xf32> to vector<8x128xf32>
    %508 = vector.extract_strided_slice %506 {offsets = [0, 0], sizes = [8, 128], strides = [1, 1]} : vector<8x384xf32> to vector<8x128xf32>
    %509 = arith.addf %507, %508 : vector<8x128xf32>
    %510 = arith.negf %509 : vector<8x128xf32>
    %511 = math.exp %510 : vector<8x128xf32>
    %cst_148 = arith.constant 1.000000e+00 : f32
    %512 = vector.broadcast %cst_148 : f32 to vector<8x128xf32>
    %513 = arith.addf %512, %511 : vector<8x128xf32>
    %514 = arith.divf %512, %513 : vector<8x128xf32>
    %515 = vector.extract_strided_slice %504 {offsets = [0, 128], sizes = [8, 128], strides = [1, 1]} : vector<8x384xf32> to vector<8x128xf32>
    %516 = vector.extract_strided_slice %506 {offsets = [0, 128], sizes = [8, 128], strides = [1, 1]} : vector<8x384xf32> to vector<8x128xf32>
    %517 = arith.addf %515, %516 : vector<8x128xf32>
    %518 = arith.negf %517 : vector<8x128xf32>
    %519 = math.exp %518 : vector<8x128xf32>
    %cst_149 = arith.constant 1.000000e+00 : f32
    %520 = vector.broadcast %cst_149 : f32 to vector<8x128xf32>
    %521 = arith.addf %520, %519 : vector<8x128xf32>
    %522 = arith.divf %520, %521 : vector<8x128xf32>
    %523 = vector.extract_strided_slice %504 {offsets = [0, 256], sizes = [8, 128], strides = [1, 1]} : vector<8x384xf32> to vector<8x128xf32>
    %524 = vector.extract_strided_slice %506 {offsets = [0, 256], sizes = [8, 128], strides = [1, 1]} : vector<8x384xf32> to vector<8x128xf32>
    %525 = arith.mulf %514, %524 : vector<8x128xf32>
    %526 = arith.addf %523, %525 : vector<8x128xf32>
    %527 = math.tanh %526 : vector<8x128xf32>
    %cst_150 = arith.constant 1.000000e+00 : f32
    %528 = vector.broadcast %cst_150 : f32 to vector<8x128xf32>
    %529 = arith.subf %528, %522 : vector<8x128xf32>
    %530 = arith.mulf %529, %527 : vector<8x128xf32>
    %531 = arith.mulf %522, %501 : vector<8x128xf32>
    %532 = arith.addf %530, %531 : vector<8x128xf32>
    %c7_i32_151 = arith.constant 7 : i32
    %533 = arith.index_cast %c7_i32_151 : i32 to index
    %c0_152 = arith.constant 0 : index
    %c0_153 = arith.constant 0 : index
    %534 = vector.load %arg14[%533, %c0_152, %c0_153] : memref<8x8x384xf32, #tpu.memory_space<vmem>>, vector<1x8x384xf32>
    %535 = vector.shape_cast %534 : vector<1x8x384xf32> to vector<8x384xf32>
    %cst_154 = arith.constant dense<0.000000e+00> : vector<8x384xf32>
    %536 = tpu.matmul %532, %302, %cst_154 {dimension_numbers = #tpu.dot_dimension_numbers<[1], [0], [0], [1], [0, 0, 1, 1], [], []>} : vector<8x128xf32>, vector<128x384xf32>, vector<8x384xf32> -> vector<8x384xf32>
    %537 = arith.addf %536, %305 : vector<8x384xf32>
    %538 = vector.extract_strided_slice %535 {offsets = [0, 0], sizes = [8, 128], strides = [1, 1]} : vector<8x384xf32> to vector<8x128xf32>
    %539 = vector.extract_strided_slice %537 {offsets = [0, 0], sizes = [8, 128], strides = [1, 1]} : vector<8x384xf32> to vector<8x128xf32>
    %540 = arith.addf %538, %539 : vector<8x128xf32>
    %541 = arith.negf %540 : vector<8x128xf32>
    %542 = math.exp %541 : vector<8x128xf32>
    %cst_155 = arith.constant 1.000000e+00 : f32
    %543 = vector.broadcast %cst_155 : f32 to vector<8x128xf32>
    %544 = arith.addf %543, %542 : vector<8x128xf32>
    %545 = arith.divf %543, %544 : vector<8x128xf32>
    %546 = vector.extract_strided_slice %535 {offsets = [0, 128], sizes = [8, 128], strides = [1, 1]} : vector<8x384xf32> to vector<8x128xf32>
    %547 = vector.extract_strided_slice %537 {offsets = [0, 128], sizes = [8, 128], strides = [1, 1]} : vector<8x384xf32> to vector<8x128xf32>
    %548 = arith.addf %546, %547 : vector<8x128xf32>
    %549 = arith.negf %548 : vector<8x128xf32>
    %550 = math.exp %549 : vector<8x128xf32>
    %cst_156 = arith.constant 1.000000e+00 : f32
    %551 = vector.broadcast %cst_156 : f32 to vector<8x128xf32>
    %552 = arith.addf %551, %550 : vector<8x128xf32>
    %553 = arith.divf %551, %552 : vector<8x128xf32>
    %554 = vector.extract_strided_slice %535 {offsets = [0, 256], sizes = [8, 128], strides = [1, 1]} : vector<8x384xf32> to vector<8x128xf32>
    %555 = vector.extract_strided_slice %537 {offsets = [0, 256], sizes = [8, 128], strides = [1, 1]} : vector<8x384xf32> to vector<8x128xf32>
    %556 = arith.mulf %545, %555 : vector<8x128xf32>
    %557 = arith.addf %554, %556 : vector<8x128xf32>
    %558 = math.tanh %557 : vector<8x128xf32>
    %cst_157 = arith.constant 1.000000e+00 : f32
    %559 = vector.broadcast %cst_157 : f32 to vector<8x128xf32>
    %560 = arith.subf %559, %553 : vector<8x128xf32>
    %561 = arith.mulf %560, %558 : vector<8x128xf32>
    %562 = arith.mulf %553, %532 : vector<8x128xf32>
    %563 = arith.addf %561, %562 : vector<8x128xf32>
    %c8_i32_158 = arith.constant 8 : i32
    %c0_159 = arith.constant 0 : index
    %c0_160 = arith.constant 0 : index
    %564 = vector.load %arg10[%c0_159, %c0_160] : memref<128x128xf32, #tpu.memory_space<vmem>>, vector<128x128xf32>
    %cst_161 = arith.constant dense<0.000000e+00> : vector<8x128xf32>
    %565 = tpu.matmul %563, %564, %cst_161 {dimension_numbers = #tpu.dot_dimension_numbers<[1], [0], [0], [1], [0, 0, 1, 1], [], []>} : vector<8x128xf32>, vector<128x128xf32>, vector<8x128xf32> -> vector<8x128xf32>
    %c0_162 = arith.constant 0 : index
    %c0_163 = arith.constant 0 : index
    %566 = vector.load %arg11[%c0_162, %c0_163] : memref<1x128xf32, #tpu.memory_space<vmem>>, vector<1x128xf32>
    %567 = vector.broadcast %566 : vector<1x128xf32> to vector<8x128xf32>
    %568 = arith.addf %565, %567 : vector<8x128xf32>
    %c0_164 = arith.constant 0 : index
    %c0_165 = arith.constant 0 : index
    %569 = vector.load %arg12[%c0_164, %c0_165] : memref<8x128xf32, #tpu.memory_space<vmem>>, vector<8x128xf32>
    tpu.vector_store %arg12[%c0_164, %c0_165], %568 {strides = array<i32>} : memref<8x128xf32, #tpu.memory_space<vmem>>, vector<8x128xf32>,
    return
  }
  func.func @transform_0(%arg0: i32) -> (i32, i32, i32) {
    %c0_i32 = arith.constant 0 : i32
    %c0_i32_0 = arith.constant 0 : i32
    %c0_i32_1 = arith.constant 0 : i32
    return %c0_i32, %arg0, %c0_i32_0 : i32, i32, i32
  }
  func.func @transform_1(%arg0: i32) -> (i32, i32) {
    %c0_i32 = arith.constant 0 : i32
    %c0_i32_0 = arith.constant 0 : i32
    %c0_i32_1 = arith.constant 0 : i32
    return %c0_i32, %c0_i32_0 : i32, i32
  }
  func.func @transform_2(%arg0: i32) -> (i32, i32) {
    %c0_i32 = arith.constant 0 : i32
    %c0_i32_0 = arith.constant 0 : i32
    %c0_i32_1 = arith.constant 0 : i32
    return %c0_i32, %c0_i32_0 : i32, i32
  }
  func.func @transform_3(%arg0: i32) -> (i32, i32) {
    %c0_i32 = arith.constant 0 : i32
    %c0_i32_0 = arith.constant 0 : i32
    %c0_i32_1 = arith.constant 0 : i32
    return %c0_i32, %c0_i32_0 : i32, i32
  }
  func.func @transform_4(%arg0: i32) -> (i32, i32) {
    %c0_i32 = arith.constant 0 : i32
    %c0_i32_0 = arith.constant 0 : i32
    %c0_i32_1 = arith.constant 0 : i32
    return %c0_i32, %c0_i32_0 : i32, i32
  }
  func.func @transform_5(%arg0: i32) -> (i32, i32) {
    %c0_i32 = arith.constant 0 : i32
    %c0_i32_0 = arith.constant 0 : i32
    %c0_i32_1 = arith.constant 0 : i32
    return %c0_i32, %c0_i32_0 : i32, i32
  }
  func.func @transform_6(%arg0: i32) -> (i32, i32) {
    %c0_i32 = arith.constant 0 : i32
    %c0_i32_0 = arith.constant 0 : i32
    %c0_i32_1 = arith.constant 0 : i32
    return %c0_i32, %c0_i32_0 : i32, i32
  }
  func.func @transform_7(%arg0: i32) -> (i32, i32) {
    %c0_i32 = arith.constant 0 : i32
    %c0_i32_0 = arith.constant 0 : i32
    %c0_i32_1 = arith.constant 0 : i32
    return %c0_i32, %c0_i32_0 : i32, i32
  }
  func.func @transform_8(%arg0: i32) -> (i32, i32) {
    %c0_i32 = arith.constant 0 : i32
    %c0_i32_0 = arith.constant 0 : i32
    %c0_i32_1 = arith.constant 0 : i32
    return %c0_i32, %c0_i32_0 : i32, i32
  }
  func.func @transform_9(%arg0: i32) -> (i32, i32) {
    %c0_i32 = arith.constant 0 : i32
    %c0_i32_0 = arith.constant 0 : i32
    %c0_i32_1 = arith.constant 0 : i32
    return %c0_i32, %c0_i32_0 : i32, i32
  }
  func.func @transform_10(%arg0: i32) -> (i32, i32) {
    %c0_i32 = arith.constant 0 : i32
    %c0_i32_0 = arith.constant 0 : i32
    %c0_i32_1 = arith.constant 0 : i32
    return %c0_i32, %c0_i32_0 : i32, i32
  }
  func.func @transform_11(%arg0: i32) -> (i32, i32) {
    %c0_i32 = arith.constant 0 : i32
    %c0_i32_0 = arith.constant 0 : i32
    return %arg0, %c0_i32 : i32, i32
  }
}

</mosaic_0001>

<bundles_post_ra>
// kernel: tpu_custom_call.1
= control target key start
LH: loop header
LB: loop body
LE: loop exit
PB: predicated region body
PF: predicated region fallthrough
CT: control target
= control target key end

     0   :  { %16 = vsyncpa [#allocation5], 0  ;;  %s7086_s0 = inlined_call_operand.hbm [shape: f32[8,8,128], index: 0, kind: input, shape index: {}]   ;;  %s7087_s1 = inlined_call_operand.hbm [shape: f32[128,384], index: 1, kind: input, shape index: {}]   ;;  %s7088_s2 = inlined_call_operand.hbm [shape: f32[128,384], index: 2, kind: input, shape index: {}]   ;;  %s7089_s3 = inlined_call_operand.vmem [shape: f32[1,384], index: 3, kind: input, shape index: {}]   ;;  %s7090_s4 = inlined_call_operand.vmem [shape: f32[1,384], index: 4, kind: input, shape index: {}]   ;;  %s7091_s5 = inlined_call_operand.hbm [shape: f32[128,384], index: 5, kind: input, shape index: {}]   ;;  %s7092_s6 = inlined_call_operand.hbm [shape: f32[128,384], index: 6, kind: input, shape index: {}]   ;;  %s7093_s7 = inlined_call_operand.vmem [shape: f32[1,384], index: 7, kind: input, shape index: {}]   ;;  %s7094_s8 = inlined_call_operand.vmem [shape: f32[1,384], index: 8, kind: input, shape index: {}]   ;;  %s7095_s9 = inlined_call_operand.hbm [shape: f32[128,128], index: 9, kind: input, shape index: {}]   ;;  %s7096_s10 = inlined_call_operand.vmem [shape: f32[1,128], index: 10, kind: input, shape index: {}]   ;;  %s7097_s11 = inlined_call_operand.hbm [shape: f32[8,128], index: 11, kind: output, shape index: {}]  }
   0x1   :  { %17 = vsyncpa [#allocation8], 0 }
   0x2   :  { %18 = vsyncpa [#allocation11], 0 }
   0x3   :  { %19 = vsyncpa [#allocation14], 0 }
   0x4   :  { %20 = vsyncpa [#allocation6], 0  ;;  %s5127_s17 = smov [#allocation7]  }
   0x5   :  { %s38_s18 = sshll.u32 %s5127_s17, 4  ;;  %s39_s18 = int_to_ptr.vmem [resolvable:$true] %s38_s18 }
   0x6   :  { %s4985_s19 = scalar_lea.vmem %s39_s18, 6144  ;;  %p4990_p1 = scmp.lt.s32.totalorder %s39_s18, %s39_s18 }
   0x7   :  { %p4986_p0 = scmp.ne.s32.totalorder %s39_s18, %s4985_s19  ;;  %p4991_p2 = scmp.lt.s32.totalorder %s4985_s19, %s4985_s19 }
   0x9   :  { %p4992_p3 = por %p4991_p2, %p4990_p1 }
   0xb   :  { %p4993_p4 = pnand %p4992_p3, %p4986_p0 }
   0xd   :  { %4996 = shalt.err (!%p4993_p4)
}
   0xe   :  { %s5128_s20 = smov 384   ;;  %s5129_s21 = smov 24  }
   0xf   :  { %44 = dma.hbm_to_vmem [thread:$0]  %s7087_s1, 6144, %s39_s18, [#allocation8], %s5128_s20, %s5128_s20, %s5129_s21  }
  0x10   :  { %s5130_s24 = smov [#allocation10]   ;;  %s5131_s26 = smov [#allocation4]  }
  0x11   :  { %s66_s25 = sshll.u32 %s5130_s24, 4  ;;  %s26_s27 = sshll.u32 %s5131_s26, 4  ;;  %s67_s25 = int_to_ptr.vmem [resolvable:$true] %s66_s25  ;;  %s27_s27 = int_to_ptr.vmem [resolvable:$true] %s26_s27 }
  0x12   :  { %s5005_s28 = scalar_lea.vmem %s67_s25, 6144  ;;  %p5010_p6 = scmp.lt.s32.totalorder %s67_s25, %s67_s25 }
  0x13   :  { %p5006_p5 = scmp.ne.s32.totalorder %s67_s25, %s5005_s28  ;;  %p5011_p7 = scmp.lt.s32.totalorder %s5005_s28, %s5005_s28 }
  0x15   :  { %p5012_p8 = por %p5011_p7, %p5010_p6 }
  0x17   :  { %p5013_p9 = pnand %p5012_p8, %p5006_p5 }
  0x19   :  { %5016 = shalt.err (!%p5013_p9)
}
  0x1a   :  { %72 = dma.hbm_to_vmem [thread:$0]  %s7091_s5, 6144, %s67_s25, [#allocation11], %s5128_s20, %s5128_s20, %s5129_s21  }
  0x1b   :  { %s5025_s1 = scalar_lea.vmem %s27_s27, 1024  ;;  %p5030_p11 = scmp.lt.s32.totalorder %s27_s27, %s27_s27 }
  0x1c   :  { %p5026_p10 = scmp.ne.s32.totalorder %s27_s27, %s5025_s1  ;;  %p5031_p12 = scmp.lt.s32.totalorder %s5025_s1, %s5025_s1 }
  0x1e   :  { %p5032_p13 = por %p5031_p12, %p5030_p11 }
  0x20   :  { %p5033_p0 = pnand %p5032_p13, %p5026_p10 }
  0x22   :  { %5036 = shalt.err (!%p5033_p0)
}
  0x23   :  { %s5132_s12 = smov 128   ;;  %s5133_s13 = smov 8  }
  0x24   :  { %32 = dma.hbm_to_vmem [thread:$0]  %s7086_s0, 1024, %s27_s27, [#allocation5], %s5132_s12, %s5132_s12, %s5133_s13  }
  0x25   :  { %s5134_s16 = smov [#allocation9]   ;;  %s5135_s5 = smov [#allocation12]  }
  0x26   :  { %s50_s17 = sshll.u32 %s5134_s16, 4  ;;  %s78_s18 = sshll.u32 %s5135_s5, 4  ;;  %s51_s17 = int_to_ptr.vmem [resolvable:$true] %s50_s17  ;;  %s79_s18 = int_to_ptr.vmem [resolvable:$true] %s78_s18 }
  0x27   :  { %s5045_s19 = scalar_lea.vmem %s51_s17, 6144  ;;  %p5050_p2 = scmp.lt.s32.totalorder %s51_s17, %s51_s17 }
  0x28   :  { %p5046_p1 = scmp.ne.s32.totalorder %s51_s17, %s5045_s19  ;;  %p5051_p3 = scmp.lt.s32.totalorder %s5045_s19, %s5045_s19 }
  0x2a   :  { %p5052_p4 = por %p5051_p3, %p5050_p2 }
  0x2c   :  { %p5053_p5 = pnand %p5052_p4, %p5046_p1 }
  0x2e   :  { %5056 = shalt.err (!%p5053_p5)
}
  0x2f   :  { %56 = dma.hbm_to_vmem [thread:$0]  %s7088_s2, 6144, %s51_s17, [#allocation8], %s5128_s20, %s5128_s20, %s5129_s21  }
  0x30   :  { %s5065_s0 = scalar_lea.vmem %s79_s18, 6144  ;;  %p5070_p7 = scmp.lt.s32.totalorder %s79_s18, %s79_s18 }
  0x31   :  { %p5066_p6 = scmp.ne.s32.totalorder %s79_s18, %s5065_s0  ;;  %p5071_p8 = scmp.lt.s32.totalorder %s5065_s0, %s5065_s0 }
  0x33   :  { %p5072_p9 = por %p5071_p8, %p5070_p7 }
  0x35   :  { %p5073_p10 = pnand %p5072_p9, %p5066_p6 }
  0x37   :  { %5076 = shalt.err (!%p5073_p10)
}
  0x38   :  { %84 = dma.hbm_to_vmem [thread:$0]  %s7092_s6, 6144, %s79_s18, [#allocation11], %s5128_s20, %s5128_s20, %s5129_s21  }
  0x39   :  { %s5136_s26 = smov [#allocation13]  }
  0x3a   :  { %s94_s27 = sshll.u32 %s5136_s26, 4  ;;  %s95_s27 = int_to_ptr.vmem [resolvable:$true] %s94_s27 }
  0x3b   :  { %s5085_s28 = scalar_lea.vmem %s95_s27, 2048  ;;  %p5090_p12 = scmp.lt.s32.totalorder %s95_s27, %s95_s27 }
  0x3c   :  { %p5086_p11 = scmp.ne.s32.totalorder %s95_s27, %s5085_s28  ;;  %p5091_p13 = scmp.lt.s32.totalorder %s5085_s28, %s5085_s28 }
  0x3e   :  { %p5092_p0 = por %p5091_p13, %p5090_p12 }
  0x40   :  { %p5093_p1 = pnand %p5092_p0, %p5086_p11 }
  0x42   :  { %5096 = shalt.err (!%p5093_p1)
}
  0x43   :  { %100 = dma.hbm_to_vmem [thread:$0]  %s7095_s9, 2048, %s95_s27, [#allocation14], %s5132_s12, %s5132_s12, %s5133_s13  }
  0x44   :  { %5117 = dma.done.wait [#allocation5], 1024  }
  0x45   :  { %5118 = vsyncadd [#allocation5], 4294966272 }
  0x46   :  { %5119 = dma.done.wait [#allocation8], 12288  }
  0x47   :  { %5120 = vsyncadd [#allocation8], 4294955008 }
  0x48   :  { %5121 = dma.done.wait [#allocation11], 12288  }
  0x49   :  { %5122 = vsyncadd [#allocation11], 4294955008 }
  0x4a   :  { %5123 = dma.done.wait [#allocation14], 2048  }
  0x4b   :  { %5124 = vsyncadd [#allocation14], 4294965248  ;;  %v7098_v0 = vmov 0.0   ;;  %v240_v1 = vld [vmem:[#allocation7 + $0x170] sm:$0xff]  ;;  %v239_v2 = vld [vmem:[#allocation7 + $0x168] sm:$0xff]  ;;  %vm5138_vm0 = vmmov 0  }
  0x4c   :  { %323 = vmatprep.mubr.f32.mxu0 %v7098_v0  ;;  %v237_v3 = vld [vmem:[#allocation7 + $0x158] sm:$0xff]  ;;  %259 = vmatprep.subr.mxu0 %v240_v1  ;;  %v236_v4 = vld [vmem:[#allocation7 + $0x150] sm:$0xff]  ;;  %v234_v5 = vld [vmem:[#allocation7 + $0x140] sm:$0xff]  ;;  %s5139_s12 = smov [#allocation15]  }
  0x4d   :  { %260 = vmatpush1.msra.mxu0 %v239_v2  ;;  %v233_v6 = vld [vmem:[#allocation7 + $0x138] sm:$0xff]  ;;  %v231_v7 = vld [vmem:[#allocation7 + $0x128] sm:$0xff]  ;;  %v230_v8 = vld [vmem:[#allocation7 + $0x120] sm:$0xff]  ;;  %s3643_s13 = sshll.u32 %s5139_s12, 4  ;;  %s3644_s13 = int_to_ptr.vmem [resolvable:$true] %s3643_s13 }
  0x4e   :  { %261 = vmatprep.subr.mxu0 %v237_v3  ;;  %v228_v9 = vld [vmem:[#allocation7 + $0x110] sm:$0xff]  ;;  %v227_v10 = vld [vmem:[#allocation7 + $0x108] sm:$0xff]  ;;  %v225_v11 = vld [vmem:[#allocation7 + $0xf8] sm:$0xff]  ;;  %s5097_s14 = scalar_lea.vmem %s3644_s13, 128  ;;  %p5102_p3 = scmp.lt.s32.totalorder %s3644_s13, %s3644_s13 }
  0x4f   :  { %262 = vmatpush1.msra.mxu0 %v236_v4  ;;  %v224_v12 = vld [vmem:[#allocation7 + $0xf0] sm:$0xff]  ;;  %v222_v13 = vld [vmem:[#allocation7 + $0xe0] sm:$0xff]  ;;  %v221_v15 = vld [vmem:[#allocation7 + $0xd8] sm:$0xff]  ;;  %p5098_p2 = scmp.ne.s32.totalorder %s3644_s13, %s5097_s14  ;;  %p5103_p4 = scmp.lt.s32.totalorder %s5097_s14, %s5097_s14 }
  0x50   :  { %263 = vmatprep.subr.mxu0 %v234_v5  ;;  %v5237_v14 = vld [vmem:[#allocation4] sm:$0xff]  ;;  %v241_v16 = vld [vmem:[#allocation7 + $0x178] sm:$0xff]  ;;  %v219_v17 = vld [vmem:[#allocation7 + $0xc8] sm:$0xff] }
  0x51   :  { %264 = vmatpush1.msra.mxu0 %v233_v6  ;;  %4057 = vmatprep.mubr.f32.mxu1 %v5237_v14  ;;  %v238_v18 = vld [vmem:[#allocation7 + $0x160] sm:$0xff]  ;;  %v235_v20 = vld [vmem:[#allocation7 + $0x148] sm:$0xff]  ;;  %v216_v21 = vld [vmem:[#allocation7 + $0xb0] sm:$0xff]  ;;  %p5104_p5 = por %p5103_p4, %p5102_p3 }
  0x52   :  { %265 = vmatprep.subr.mxu0 %v231_v7  ;;  %4025 = vmatprep.subr.mxu1 %v241_v16  ;;  %v218_v19 = vld [vmem:[#allocation7 + $0xc0] sm:$0xff]  ;;  %v215_v22 = vld [vmem:[#allocation7 + $0xa8] sm:$0xff]  ;;  %v232_v23 = vld [vmem:[#allocation7 + $0x130] sm:$0xff] }
  0x53   :  { %266 = vmatpush1.msra.mxu0 %v230_v8  ;;  %4026 = vmatpush3.msra.mxu1 %v241_v16  ;;  %v213_v24 = vld [vmem:[#allocation7 + $0x98] sm:$0xff]  ;;  %v212_v25 = vld [vmem:[#allocation7 + $0x90] sm:$0xff]  ;;  %v210_v27 = vld [vmem:[#allocation7 + $0x80] sm:$0xff]  ;;  %p5105_p6 = pnand %p5104_p5, %p5098_p2 }
  0x54   :  { %267 = vmatprep.subr.mxu0 %v228_v9  ;;  %4027 = vmatprep.subr.mxu1 %v238_v18  ;;  %v229_v26 = vld [vmem:[#allocation7 + $0x118] sm:$0xff]  ;;  %v226_v29 = vld [vmem:[#allocation7 + $0x100] sm:$0xff]  ;;  %v207_v30 = vld [vmem:[#allocation7 + $0x68] sm:$0xff] }
  0x55   :  { %268 = vmatpush1.msra.mxu0 %v227_v10  ;;  %4028 = vmatpush3.msra.mxu1 %v238_v18  ;;  %v209_v28 = vld [vmem:[#allocation7 + $0x78] sm:$0xff]  ;;  %v206_v31 = vld [vmem:[#allocation7 + $0x60] sm:$0xff]  ;;  %v223_v32 = vld [vmem:[#allocation7 + $0xe8] sm:$0xff] }
  0x56   :  { %269 = vmatprep.subr.mxu0 %v225_v11  ;;  %4029 = vmatprep.subr.mxu1 %v235_v20  ;;  %v204_v33 = vld [vmem:[#allocation7 + $0x50] sm:$0xff]  ;;  %v203_v34 = vld [vmem:[#allocation7 + $0x48] sm:$0xff]  ;;  %v201_v36 = vld [vmem:[#allocation7 + $0x38] sm:$0xff] }
  0x57   :  { %270 = vmatpush1.msra.mxu0 %v224_v12  ;;  %4030 = vmatpush3.msra.mxu1 %v235_v20  ;;  %v220_v35 = vld [vmem:[#allocation7 + $0xd0] sm:$0xff]  ;;  %v217_v38 = vld [vmem:[#allocation7 + $0xb8] sm:$0xff]  ;;  %v198_v39 = vld [vmem:[#allocation7 + $0x20] sm:$0xff] }
  0x58   :  { %271 = vmatprep.subr.mxu0 %v222_v13  ;;  %4031 = vmatprep.subr.mxu1 %v232_v23  ;;  %v200_v37 = vld [vmem:[#allocation7 + $0x30] sm:$0xff]  ;;  %v197_v40 = vld [vmem:[#allocation7 + $0x18] sm:$0xff]  ;;  %v214_v41 = vld [vmem:[#allocation7 + $0xa0] sm:$0xff] }
  0x59   :  { %272 = vmatpush1.msra.mxu0 %v221_v15  ;;  %4032 = vmatpush3.msra.mxu1 %v232_v23  ;;  %v195_v42 = vld [vmem:[#allocation7 + $0x8] sm:$0xff]  ;;  %v194_v43 = vld [vmem:[#allocation7] sm:$0xff]  ;;  %v5240_v45 = vld [vmem:[#allocation9 + $0x170] sm:$0xff] }
  0x5a   :  { %273 = vmatprep.subr.mxu0 %v219_v17  ;;  %4033 = vmatprep.subr.mxu1 %v229_v26  ;;  %v211_v44 = vld [vmem:[#allocation7 + $0x88] sm:$0xff]  ;;  %7180 = vst [vmem:[#allocation21_spill] sm:$0xff] %v5240_v45  ;;  %v5244_v47 = vld [vmem:[#allocation9 + $0x158] sm:$0xff]  ;;  %v5248_v48 = vld [vmem:[#allocation9 + $0x150] sm:$0xff] }
  0x5b   :  { %274 = vmatpush1.msra.mxu0 %v218_v19  ;;  %4034 = vmatpush3.msra.mxu1 %v229_v26  ;;  %v5242_v46 = vld [vmem:[#allocation9 + $0x168] sm:$0xff]  ;;  %v208_v49 = vld [vmem:[#allocation7 + $0x70] sm:$0xff]  ;;  %v5254_v51 = vld [vmem:[#allocation9 + $0x140] sm:$0xff] }
  0x5c   :  { %275 = vmatprep.subr.mxu0 %v216_v21  ;;  %4035 = vmatprep.subr.mxu1 %v226_v29  ;;  %v5252_v50 = vld [vmem:[#allocation4 + $0x8] sm:$0xff]  ;;  %v5257_v52 = vld [vmem:[#allocation9 + $0x138] sm:$0xff]  ;;  %v5264_v54 = vld [vmem:[#allocation9 + $0x120] sm:$0xff] }
  0x5d   :  { %276 = vmatpush1.msra.mxu0 %v215_v22  ;;  %4036 = vmatpush3.msra.mxu1 %v226_v29  ;;  %v5260_v53 = vld [vmem:[#allocation9 + $0x128] sm:$0xff]  ;;  %v205_v55 = vld [vmem:[#allocation7 + $0x58] sm:$0xff]  ;;  %v5268_v56 = vld [vmem:[#allocation4 + $0x10] sm:$0xff] }
  0x5e   :  { %277 = vmatprep.subr.mxu0 %v213_v24  ;;  %4037 = vmatprep.subr.mxu1 %v223_v32  ;;  %v5270_v57 = vld [vmem:[#allocation9 + $0x110] sm:$0xff]  ;;  %v5273_v58 = vld [vmem:[#allocation9 + $0x108] sm:$0xff]  ;;  %v5276_v59 = vld [vmem:[#allocation9 + $0xf8] sm:$0xff] }
  0x5f   :  { %278 = vmatpush1.msra.mxu0 %v212_v25  ;;  %4038 = vmatpush3.msra.mxu1 %v223_v32  ;;  %v5280_v60 = vld [vmem:[#allocation9 + $0xf0] sm:$0xff]  ;;  %v202_v61 = vld [vmem:[#allocation7 + $0x40] sm:$0xff]  ;;  %v5284_v62 = vld [vmem:[#allocation4 + $0x18] sm:$0xff] }
  0x60   :  { %279 = vmatprep.subr.mxu0 %v210_v27  ;;  %4039 = vmatprep.subr.mxu1 %v220_v35  ;;  %v5286_v63 = vld [vmem:[#allocation9 + $0xe0] sm:$0xff]  ;;  %v5289_v1 = vld [vmem:[#allocation9 + $0xd8] sm:$0xff]  ;;  %v5292_v2 = vld [vmem:[#allocation9 + $0xc8] sm:$0xff] }
  0x61   :  { %280 = vmatpush1.msra.mxu0 %v209_v28  ;;  %4040 = vmatpush3.msra.mxu1 %v220_v35  ;;  %v5296_v3 = vld [vmem:[#allocation9 + $0xc0] sm:$0xff]  ;;  %v199_v4 = vld [vmem:[#allocation7 + $0x28] sm:$0xff]  ;;  %v5302_v6 = vld [vmem:[#allocation9 + $0xb0] sm:$0xff] }
  0x62   :  { %281 = vmatprep.subr.mxu0 %v207_v30  ;;  %4041 = vmatprep.subr.mxu1 %v217_v38  ;;  %v5300_v5 = vld [vmem:[#allocation4 + $0x20] sm:$0xff]  ;;  %v5305_v7 = vld [vmem:[#allocation9 + $0xa8] sm:$0xff]  ;;  %v5308_v8 = vld [vmem:[#allocation9 + $0x98] sm:$0xff] }
  0x63   :  { %282 = vmatpush1.msra.mxu0 %v206_v31  ;;  %4042 = vmatpush3.msra.mxu1 %v217_v38  ;;  %v5312_v9 = vld [vmem:[#allocation9 + $0x90] sm:$0xff]  ;;  %v191_v11 = vld [vmem:[#allocation4 + $0x28] sm:$0xff]  ;;  %v5316_v12 = vld [vmem:[#allocation9 + $0x80] sm:$0xff] }
  0x64   :  { %283 = vmatprep.subr.mxu0 %v204_v33  ;;  %4043 = vmatprep.subr.mxu1 %v214_v41  ;;  %v196_v10 = vld [vmem:[#allocation7 + $0x10] sm:$0xff]  ;;  %v5319_v13 = vld [vmem:[#allocation9 + $0x78] sm:$0xff]  ;;  %v5325_v15 = vld [vmem:[#allocation9 + $0x60] sm:$0xff] }
  0x65   :  { %284 = vmatpush1.msra.mxu0 %v203_v34  ;;  %4044 = vmatpush3.msra.mxu1 %v214_v41  ;;  %v192_v16 = vld [vmem:[#allocation4 + $0x30] sm:$0xff]  ;;  %v5332_v18 = vld [vmem:[#allocation9 + $0x48] sm:$0xff]  ;;  %v5335_v19 = vld [vmem:[#allocation9 + $0x38] sm:$0xff] }
  0x66   :  { %285 = vmatprep.subr.mxu0 %v201_v36  ;;  %4045 = vmatprep.subr.mxu1 %v211_v44  ;;  %v5329_v17 = vld [vmem:[#allocation9 + $0x50] sm:$0xff]  ;;  %v5341_v21 = vld [vmem:[#allocation9 + $0x178] sm:$0xff]  ;;  %v5345_v23 = vld [vmem:[#allocation9 + $0x20] sm:$0xff] }
  0x67   :  { %286 = vmatpush1.msra.mxu0 %v200_v37  ;;  %4046 = vmatpush3.msra.mxu1 %v211_v44  ;;  %v5339_v20 = vld [vmem:[#allocation9 + $0x30] sm:$0xff]  ;;  %v193_v22 = vld [vmem:[#allocation4 + $0x38] sm:$0xff]  ;;  %7182 = vst [vmem:[#allocation23_spill] sm:$0xff] %v5345_v23  ;;  %v5352_v25 = vld [vmem:[#allocation9 + $0x8] sm:$0xff] }
  0x68   :  { %287 = vmatprep.subr.mxu0 %v198_v39  ;;  %4047 = vmatprep.subr.mxu1 %v208_v49  ;;  %7181 = vst [vmem:[#allocation22_spill] sm:$0xff] %v5339_v20  ;;  %v5348_v24 = vld [vmem:[#allocation9 + $0x18] sm:$0xff]  ;;  %7184 = vst [vmem:[#allocation25_spill] sm:$0xff] %v5352_v25  ;;  %v5356_v26 = vld [vmem:[#allocation9] sm:$0xff] }
  0x69   :  { %288 = vmatpush1.msra.mxu0 %v197_v40  ;;  %4048 = vmatpush3.msra.mxu1 %v208_v49  ;;  %7183 = vst [vmem:[#allocation24_spill] sm:$0xff] %v5348_v24  ;;  %7185 = vst [vmem:[#allocation26_spill] sm:$0xff] %v5356_v26  ;;  %v5358_v27 = vld [vmem:[#allocation9 + $0x160] sm:$0xff]  ;;  %v5364_v28 = vld [vmem:[#allocation9 + $0x148] sm:$0xff] }
  0x6a   :  { %289 = vmatprep.subr.mxu0 %v195_v42  ;;  %4049 = vmatprep.subr.mxu1 %v205_v55  ;;  %v5370_v29 = vld [vmem:[#allocation9 + $0x130] sm:$0xff]  ;;  %v5375_v30 = vld [vmem:[#allocation9 + $0x118] sm:$0xff]  ;;  %v5381_v31 = vld [vmem:[#allocation9 + $0x100] sm:$0xff]  ;;  %v171_v42 = vlaneseq }
  0x6b   :  { %290 = vmatpush1.msra.mxu0 %v194_v43  ;;  %4050 = vmatpush3.msra.mxu1 %v205_v55  ;;  %v5387_v32 = vld [vmem:[#allocation9 + $0xe8] sm:$0xff]  ;;  %v5391_v33 = vld [vmem:[#allocation9 + $0xd0] sm:$0xff]  ;;  %v5397_v34 = vld [vmem:[#allocation9 + $0xb8] sm:$0xff] }
  0x6c   :  { %324 = vmatmul.mubr.f32.vlgmr.msra.gmra.mxu0 %v5237_v14  ;;  %504 = vmatprep.subr.mxu0 %v5240_v45  ;;  %v5322_v14 = vld [vmem:[#allocation9 + $0x68] sm:$0xff]  ;;  %v5403_v35 = vld [vmem:[#allocation9 + $0xa0] sm:$0xff]  ;;  %v5415_v37 = vld [vmem:[#allocation9 + $0x70] sm:$0xff]  ;;  %v172_v43 = vshrl.u32 %v171_v42, 7 }
  0x6d   :  { %505 = vmatpush1.msra.mxu0 %v5242_v46  ;;  %329 = vmatprep.mubr.f32.mxu0 %v7098_v0  ;;  %v5409_v36 = vld [vmem:[#allocation9 + $0x88] sm:$0xff]  ;;  %v5421_v38 = vld [vmem:[#allocation9 + $0x58] sm:$0xff]  ;;  %v5427_v39 = vld [vmem:[#allocation9 + $0x40] sm:$0xff] }
  0x6e   :  { %506 = vmatprep.subr.mxu0 %v5244_v47  ;;  %4051 = vmatprep.subr.mxu1 %v202_v61  ;;  %7186 = vst [vmem:[#allocation27_spill] sm:$0xff] %v5427_v39  ;;  %v5433_v40 = vld [vmem:[#allocation9 + $0x28] sm:$0xff]  ;;  %v5439_v41 = vld [vmem:[#allocation9 + $0x10] sm:$0xff]  ;;  %v5498_v44 = vsub.s32 0, %v172_v43  ;;  %v242_v49 = vld [vmem:[%s7089_s3] sm:$0x7] }
  0x6f   :  { %507 = vmatpush1.msra.mxu0 %v5248_v48  ;;  %4052 = vmatpush3.msra.mxu1 %v202_v61  ;;  %7187 = vst [vmem:[#allocation28_spill] sm:$0xff] %v5433_v40  ;;  %7188 = vst [vmem:[#allocation29_spill] sm:$0xff] %v5439_v41  ;;  %v5503_v55 = vsub.s32 1, %v172_v43 }
  0x70   :  { %330 = vmatmul.mubr.f32.gmra.mxu0 %v5252_v50  ;;  %508 = vmatprep.subr.mxu0 %v5254_v51  ;;  %7189 = vst [vmem:[#allocation30_spill] sm:$0xff] %v5498_v44  ;;  %v247_v61 = vrot.slane %v242_v49, %v5498_v44 }
  0x71   :  { %509 = vmatpush1.msra.mxu0 %v5257_v52  ;;  %335 = vmatprep.mubr.f32.mxu0 %v7098_v0  ;;  %7190 = vst [vmem:[#allocation31_spill] sm:$0xff] %v5503_v55 }
  0x72   :  { %510 = vmatprep.subr.mxu0 %v5260_v53  ;;  %4053 = vmatprep.subr.mxu1 %v199_v4 }
  0x73   :  { %511 = vmatpush1.msra.mxu0 %v5264_v54  ;;  %4054 = vmatpush3.msra.mxu1 %v199_v4  ;;  %v251_v4 = vrot.slane %v242_v49, %v5503_v55 }
  0x74   :  { %336 = vmatmul.mubr.f32.gmra.mxu0 %v5268_v56  ;;  %512 = vmatprep.subr.mxu0 %v5270_v57 }
  0x75   :  { %513 = vmatpush1.msra.mxu0 %v5273_v58  ;;  %341 = vmatprep.mubr.f32.mxu0 %v7098_v0 }
  0x76   :  { %514 = vmatprep.subr.mxu0 %v5276_v59  ;;  %4055 = vmatprep.subr.mxu1 %v196_v10 }
  0x77   :  { %515 = vmatpush1.msra.mxu0 %v5280_v60  ;;  %4056 = vmatpush3.msra.mxu1 %v196_v10 }
  0x78   :  { %342 = vmatmul.mubr.f32.gmra.mxu0 %v5284_v62  ;;  %516 = vmatprep.subr.mxu0 %v5286_v63 }
  0x79   :  { %517 = vmatpush1.msra.mxu0 %v5289_v1  ;;  %347 = vmatprep.mubr.f32.mxu0 %v7098_v0 }
  0x7a   :  { %518 = vmatprep.subr.mxu0 %v5292_v2  ;;  %4069 = vmatprep.subr.mxu1 %v7098_v0 }
  0x7b   :  { %519 = vmatpush1.msra.mxu0 %v5296_v3  ;;  %4058 = vmatmul.mubr.f32.vlgmr.msra.gmra.mxu1 %v5252_v50 }
  0x7c   :  { %348 = vmatmul.mubr.f32.gmra.mxu0 %v5300_v5  ;;  %520 = vmatprep.subr.mxu0 %v5302_v6 }
  0x7d   :  { %521 = vmatpush1.msra.mxu0 %v5305_v7  ;;  %353 = vmatprep.mubr.f32.mxu0 %v7098_v0 }
  0x7e   :  { %522 = vmatprep.subr.mxu0 %v5308_v8  ;;  %4070 = vmatpush3.msra.mxu1 %v5341_v21 }
  0x7f   :  { %523 = vmatpush1.msra.mxu0 %v5312_v9  ;;  %4071 = vmatprep.subr.mxu1 %v7098_v0 }
  0x80   :  { %354 = vmatmul.mubr.f32.gmra.mxu0 %v191_v11  ;;  %524 = vmatprep.subr.mxu0 %v5316_v12 }
  0x81   :  { %525 = vmatpush1.msra.mxu0 %v5319_v13  ;;  %359 = vmatprep.mubr.f32.mxu0 %v7098_v0 }
  0x82   :  { %526 = vmatprep.subr.mxu0 %v5322_v14  ;;  %4072 = vmatpush3.msra.mxu1 %v5358_v27 }
  0x83   :  { %527 = vmatpush1.msra.mxu0 %v5325_v15  ;;  %4073 = vmatprep.subr.mxu1 %v7098_v0 }
  0x84   :  { %360 = vmatmul.mubr.f32.gmra.mxu0 %v192_v16  ;;  %528 = vmatprep.subr.mxu0 %v5329_v17 }
  0x85   :  { %529 = vmatpush1.msra.mxu0 %v5332_v18  ;;  %365 = vmatprep.mubr.f32.mxu0 %v7098_v0 }
  0x86   :  { %530 = vmatprep.subr.mxu0 %v5335_v19  ;;  %4074 = vmatpush3.msra.mxu1 %v5364_v28 }
  0x87   :  { %531 = vmatpush1.msra.mxu0 %v5339_v20  ;;  %4060 = vmatprep.mubr.f32.mxu1 %v5268_v56 }
  0x88   :  { %366 = vmatmul.mubr.f32.gmra.mxu0 %v193_v22  ;;  %532 = vmatprep.subr.mxu0 %v5345_v23 }
  0x89   :  { %533 = vmatpush1.msra.mxu0 %v5348_v24  ;;  %568 = vmatprep.mubr.f32.mxu0 %v7098_v0 }
  0x8a   :  { %534 = vmatprep.subr.mxu0 %v5352_v25  ;;  %4075 = vmatprep.subr.mxu1 %v7098_v0 }
  0x8b   :  { %535 = vmatpush1.msra.mxu0 %v5356_v26  ;;  %4061 = vmatmul.mubr.f32.gmra.mxu1 %v5284_v62 }
  0x8c   :  { %569 = vmatmul.mubr.f32.vlgmr.msra.gmra.mxu0 %v7098_v0  ;;  %4076 = vmatpush3.msra.mxu1 %v5370_v29 }
  0x8d   :  { %4063 = vmatprep.mubr.f32.mxu1 %v5300_v5  ;;  %4077 = vmatprep.subr.mxu1 %v7098_v0 }
  0x8e   :  { %671 = vmatprep.subr.mxu0 %v5240_v45  ;;  %4078 = vmatpush3.msra.mxu1 %v5375_v30 }
  0x8f   :  { %672 = vmatpush1.msra.mxu0 %v5242_v46  ;;  %4079 = vmatprep.subr.mxu1 %v7098_v0 }
  0x90   :  { %4064 = vmatmul.mubr.f32.gmra.mxu1 %v191_v11  ;;  %673 = vmatprep.subr.mxu0 %v5244_v47 }
  0x91   :  { %4080 = vmatpush3.msra.mxu1 %v5381_v31  ;;  %4066 = vmatprep.mubr.f32.mxu1 %v192_v16 }
  0x92   :  { %4081 = vmatprep.subr.mxu1 %v7098_v0  ;;  %674 = vmatpush1.msra.mxu0 %v5248_v48 }
  0x93   :  { %4082 = vmatpush3.msra.mxu1 %v5387_v32  ;;  %675 = vmatprep.subr.mxu0 %v5254_v51 }
  0x94   :  { %4083 = vmatprep.subr.mxu1 %v7098_v0  ;;  %4067 = vmatmul.mubr.f32.gmra.mxu1 %v193_v22 }
  0x95   :  { %4084 = vmatpush3.msra.mxu1 %v5391_v33  ;;  %4101 = vmatprep.mubr.msk.f32.mxu1 %vm5138_vm0, %v7098_v0 }
  0x96   :  { %4085 = vmatprep.subr.mxu1 %v7098_v0  ;;  %676 = vmatpush1.msra.mxu0 %v5257_v52 }
  0x97   :  { %4086 = vmatpush3.msra.mxu1 %v5397_v34  ;;  %677 = vmatprep.subr.mxu0 %v5260_v53 }
  0x98   :  { %4087 = vmatprep.subr.mxu1 %v7098_v0  ;;  %678 = vmatpush1.msra.mxu0 %v5264_v54 }
  0x99   :  { %4088 = vmatpush3.msra.mxu1 %v5403_v35  ;;  %679 = vmatprep.subr.mxu0 %v5270_v57 }
  0x9a   :  { %4089 = vmatprep.subr.mxu1 %v7098_v0  ;;  %680 = vmatpush1.msra.mxu0 %v5273_v58 }
  0x9b   :  { %4090 = vmatpush3.msra.mxu1 %v5409_v36  ;;  %681 = vmatprep.subr.mxu0 %v5276_v59 }
  0x9c   :  { %4091 = vmatprep.subr.mxu1 %v7098_v0  ;;  %682 = vmatpush1.msra.mxu0 %v5280_v60 }
  0x9d   :  { %4092 = vmatpush3.msra.mxu1 %v5415_v37  ;;  %683 = vmatprep.subr.mxu0 %v5286_v63 }
  0x9e   :  { %4093 = vmatprep.subr.mxu1 %v7098_v0  ;;  %684 = vmatpush1.msra.mxu0 %v5289_v1 }
  0x9f   :  { %4094 = vmatpush3.msra.mxu1 %v5421_v38  ;;  %685 = vmatprep.subr.mxu0 %v5292_v2 }
  0xa0   :  { %4095 = vmatprep.subr.mxu1 %v7098_v0  ;;  %686 = vmatpush1.msra.mxu0 %v5296_v3 }
  0xa1   :  { %4096 = vmatpush3.msra.mxu1 %v5427_v39  ;;  %687 = vmatprep.subr.mxu0 %v5302_v6 }
  0xa2   :  { %4097 = vmatprep.subr.mxu1 %v7098_v0  ;;  %688 = vmatpush1.msra.mxu0 %v5305_v7 }
  0xa3   :  { %4098 = vmatpush3.msra.mxu1 %v5433_v40  ;;  %689 = vmatprep.subr.mxu0 %v5308_v8 }
  0xa4   :  { %4099 = vmatprep.subr.mxu1 %v7098_v0  ;;  %690 = vmatpush1.msra.mxu0 %v5312_v9 }
  0xa5   :  { %4100 = vmatpush3.msra.mxu1 %v5439_v41  ;;  %691 = vmatprep.subr.mxu0 %v5316_v12 }
  0xa6   :  { %4102 = vmatmul.mubr.f32.vlgmr.msra.gmra.mxu1 %v7098_v0  ;;  %4104 = vmatprep.subr.mxu1 %v7098_v0 }
  0xa7   :  { %4105 = vmatpush3.msra.mxu1 %v5341_v21  ;;  %692 = vmatpush1.msra.mxu0 %v5319_v13 }
  0xa8   :  { %4106 = vmatprep.subr.mxu1 %v7098_v0  ;;  %693 = vmatprep.subr.mxu0 %v5322_v14 }
  0xa9   :  { %4107 = vmatpush3.msra.mxu1 %v5358_v27  ;;  %694 = vmatpush1.msra.mxu0 %v5325_v15 }
  0xaa   :  { %4108 = vmatprep.subr.mxu1 %v7098_v0  ;;  %695 = vmatprep.subr.mxu0 %v5329_v17 }
  0xab   :  { %4109 = vmatpush3.msra.mxu1 %v5364_v28  ;;  %696 = vmatpush1.msra.mxu0 %v5332_v18 }
  0xac   :  { %4110 = vmatprep.subr.mxu1 %v7098_v0  ;;  %697 = vmatprep.subr.mxu0 %v5335_v19 }
  0xad   :  { %4111 = vmatpush3.msra.mxu1 %v5370_v29  ;;  %698 = vmatpush1.msra.mxu0 %v5339_v20 }
  0xae   :  { %4112 = vmatprep.subr.mxu1 %v7098_v0  ;;  %699 = vmatprep.subr.mxu0 %v5345_v23 }
  0xaf   :  { %4113 = vmatpush3.msra.mxu1 %v5375_v30  ;;  %700 = vmatpush1.msra.mxu0 %v5348_v24 }
  0xb0   :  { %4114 = vmatprep.subr.mxu1 %v7098_v0  ;;  %701 = vmatprep.subr.mxu0 %v5352_v25 }
  0xb1   :  { %4115 = vmatpush3.msra.mxu1 %v5381_v31  ;;  %702 = vmatpush1.msra.mxu0 %v5356_v26 }
  0xb2   :  { %4116 = vmatprep.subr.mxu1 %v7098_v0  ;;  %735 = vmatprep.mubr.f32.mxu0 %v7098_v0 }
  0xb3   :  { %4117 = vmatpush3.msra.mxu1 %v5387_v32  ;;  %4136 = vmatprep.mubr.msk.f32.mxu1 %vm5138_vm0, %v7098_v0 }
  0xb4   :  { %4118 = vmatprep.subr.mxu1 %v7098_v0  ;;  %839 = vmatprep.subr.mxu0 %v5240_v45 }
  0xb5   :  { %4119 = vmatpush3.msra.mxu1 %v5391_v33 }
  0xb6   :  { %4120 = vmatprep.subr.mxu1 %v7098_v0 }
  0xb7   :  { %4121 = vmatpush3.msra.mxu1 %v5397_v34 }
  0xb8   :  { %4122 = vmatprep.subr.mxu1 %v7098_v0 }
  0xb9   :  { %4123 = vmatpush3.msra.mxu1 %v5403_v35 }
  0xba   :  { %4124 = vmatprep.subr.mxu1 %v7098_v0 }
  0xbb   :  { %4125 = vmatpush3.msra.mxu1 %v5409_v36 }
  0xbc   :  { %4126 = vmatprep.subr.mxu1 %v7098_v0 }
  0xbd   :  { %4127 = vmatpush3.msra.mxu1 %v5415_v37 }
  0xbe   :  { %4128 = vmatprep.subr.mxu1 %v7098_v0 }
  0xbf   :  { %4129 = vmatpush3.msra.mxu1 %v5421_v38 }
  0xc0   :  { %4130 = vmatprep.subr.mxu1 %v7098_v0 }
  0xc1   :  { %4131 = vmatpush3.msra.mxu1 %v5427_v39 }
  0xc2   :  { %4132 = vmatprep.subr.mxu1 %v7098_v0 }
  0xc3   :  { %4133 = vmatpush3.msra.mxu1 %v5433_v40 }
  0xc4   :  { %4134 = vmatprep.subr.mxu1 %v7098_v0 }
  0xc5   :  { %4135 = vmatpush3.msra.mxu1 %v5439_v41 }
  0xc6   :  { %4139 = vmatprep.subr.mxu1 %v7098_v0 }
 0x12c   :  { %v325_v50 = vpop.f32.mrf.mxu0 }
 0x12e   :  { %v327_v56 = vpop.f32.mrf.mxu0 }
 0x130   :  { %v331_v62 = vpop.f32.mrf.mxu0 }
 0x131   :  { %v5507_v5 = vadd.f32 %v331_v62, %v247_v61 }
 0x132   :  { %v333_v10 = vpop.f32.mrf.mxu0 }
 0x133   :  { %7191 = vst [vmem:[#allocation32_spill] sm:$0xff] %v5507_v5  ;;  %v5509_v11 = vadd.f32 %v333_v10, %v251_v4  ;;  %v5523_v10 = vsub.s32 2, %v172_v43 }
 0x134   :  { %v337_v16 = vpop.f32.mrf.mxu0 }
 0x135   :  { %7192 = vst [vmem:[#allocation33_spill] sm:$0xff] %v5509_v11  ;;  %v5511_v22 = vadd.f32 %v337_v16, %v247_v61  ;;  %7199 = vst [vmem:[#allocation40_spill] sm:$0xff] %v5523_v10 }
 0x136   :  { %v339_v42 = vpop.f32.mrf.mxu0 }
 0x137   :  { %7193 = vst [vmem:[#allocation34_spill] sm:$0xff] %v5511_v22  ;;  %v5513_v0 = vadd.f32 %v339_v42, %v251_v4 }
 0x138   :  { %v343_v45 = vpop.f32.mrf.mxu0 }
 0x139   :  { %7194 = vst [vmem:[#allocation35_spill] sm:$0xff] %v5513_v0  ;;  %v5515_v41 = vadd.f32 %v343_v45, %v247_v61  ;;  %v255_v45 = vrot.slane %v242_v49, %v5523_v10 }
 0x13a   :  { %v345_v26 = vpop.f32.mrf.mxu0 }
 0x13b   :  { %7195 = vst [vmem:[#allocation36_spill] sm:$0xff] %v5515_v41  ;;  %v5517_v25 = vadd.f32 %v345_v26, %v251_v4 }
 0x13c   :  { %v349_v40 = vpop.f32.mrf.mxu0 }
 0x13d   :  { %7196 = vst [vmem:[#allocation37_spill] sm:$0xff] %v5517_v25  ;;  %v5519_v24 = vadd.f32 %v349_v40, %v247_v61  ;;  %v169_v40 = vld [vmem:[%s7090_s4] sm:$0x7] }
 0x13e   :  { %v351_v62 = vpop.f32.mrf.mxu0  ;;  %v5548_v23 = vrot.slane %v169_v40, %v5503_v55 }
 0x13f   :  { %7197 = vst [vmem:[#allocation38_spill] sm:$0xff] %v5519_v24  ;;  %v5521_v5 = vadd.f32 %v351_v62, %v251_v4  ;;  %v4059_v62 = vpop.f32.mrf.mxu1  ;;  %v326_v24 = vadd.f32 %v325_v50, %v247_v61 }
 0x140   :  { %v355_v11 = vpop.f32.mrf.mxu0  ;;  %v5537_v43 = vadd.f32 %v4059_v62, %v255_v45 }
 0x141   :  { %7198 = vst [vmem:[#allocation39_spill] sm:$0xff] %v5521_v5  ;;  %v5525_v16 = vadd.f32 %v355_v11, %v247_v61 }
 0x142   :  { %v357_v22 = vpop.f32.mrf.mxu0  ;;  %7204 = vst [vmem:[#allocation45_spill] sm:$0xff] %v5537_v43 }
 0x143   :  { %7200 = vst [vmem:[#allocation41_spill] sm:$0xff] %v5525_v16  ;;  %v5527_v42 = vadd.f32 %v357_v22, %v251_v4  ;;  %v5542_v22 = vrot.slane %v169_v40, %v5498_v44 }
 0x144   :  { %v361_v41 = vpop.f32.mrf.mxu0 }
 0x145   :  { %7201 = vst [vmem:[#allocation42_spill] sm:$0xff] %v5527_v42  ;;  %v5530_v0 = vadd.f32 %v361_v41, %v247_v61  ;;  %7206 = vst [vmem:[#allocation47_spill] sm:$0xff] %v5542_v22 }
 0x146   :  { %v363_v26 = vpop.f32.mrf.mxu0 }
 0x147   :  { %7202 = vst [vmem:[#allocation43_spill] sm:$0xff] %v5530_v0  ;;  %v5535_v5 = vadd.f32 %v363_v26, %v251_v4  ;;  %v438_v0 = vpop.f32.mrf.mxu1 }
 0x148   :  { %v367_v11 = vpop.f32.mrf.mxu0 }
 0x149   :  { %7203 = vst [vmem:[#allocation44_spill] sm:$0xff] %v5535_v5  ;;  %v5539_v16 = vadd.f32 %v367_v11, %v247_v61 }
 0x14a   :  { %v369_v49 = vpop.f32.mrf.mxu0 }
 0x14b   :  { %7205 = vst [vmem:[#allocation46_spill] sm:$0xff] %v5539_v16  ;;  %v5544_v42 = vadd.f32 %v369_v49, %v251_v4  ;;  %v4062_v62 = vpop.f32.mrf.mxu1 }
 0x14c   :  { %v570_v41 = vpop.f32.mrf.mxu0  ;;  %v5550_v43 = vadd.f32 %v4062_v62, %v255_v45 }
 0x14d   :  { %7207 = vst [vmem:[#allocation48_spill] sm:$0xff] %v5544_v42  ;;  %v571_v25 = vadd.f32 %v570_v41, %v5542_v22  ;;  %v448_v11 = vpop.f32.mrf.mxu1  ;;  %v328_v42 = vadd.f32 %v327_v56, %v251_v4  ;;  %v5564_v56 = vrot.slane %v169_v40, %v5523_v10  ;;  %v7218_v40 = vld [vmem:[#allocation23_spill] sm:$0xff] }
 0x14e   :  { %v572_v26 = vpop.f32.mrf.mxu0  ;;  %7208 = vst [vmem:[#allocation49_spill] sm:$0xff] %v5550_v43  ;;  %v5553_v39 = vadd.f32 %v448_v11, %v255_v45  ;;  %v7227_v43 = vld [vmem:[#allocation33_spill] sm:$0xff] }
 0x14f   :  { %v645_v5 = vadd.f32 %v571_v25, %v326_v24  ;;  %v573_v44 = vadd.f32 %v572_v26, %v5548_v23 }
 0x150   :  { %7209 = vst [vmem:[#allocation50_spill] sm:$0xff] %v5553_v39  ;;  %v4065_v49 = vpop.f32.mrf.mxu1 }
 0x151   :  { %v3655_v16 = vmul.f32 -1.442695, %v645_v5  ;;  %v5555_v50 = vadd.f32 %v4065_v49, %v255_v45  ;;  %v652_v41 = vadd.f32 %v573_v44, %v328_v42 }
 0x152   :  { %v458_v61 = vpop.f32.mrf.mxu1 }
 0x153   :  { %4721 = vpow2.f32 %v3655_v16  ;;  %7210 = vst [vmem:[#allocation51_spill] sm:$0xff] %v5555_v50  ;;  %v5557_v55 = vadd.f32 %v458_v61, %v255_v45  ;;  %v3656_v25 = vmul.f32 -1.442695, %v652_v41 }
 0x154   :  { %v4068_v22 = vpop.f32.mrf.mxu1 }
 0x155   :  { %7211 = vst [vmem:[#allocation52_spill] sm:$0xff] %v5557_v55  ;;  %v5559_v20 = vadd.f32 %v4068_v22, %v255_v45  ;;  %4723 = vpow2.f32 %v3656_v25  ;;  %v439_v22 = vadd.f32 %v438_v0, %v255_v45  ;;  %v7215_v0 = vmov 0.0  }
 0x156   :  { %v468_v24 = vpop.f32.mrf.mxu1 }
 0x157   :  { %7212 = vst [vmem:[#allocation53_spill] sm:$0xff] %v5559_v20  ;;  %v5561_v62 = vadd.f32 %v468_v24, %v255_v45  ;;  %v7217_v45 = vld [vmem:[#allocation27_spill] sm:$0xff] }
 0x159   :  { %7213 = vst [vmem:[#allocation54_spill] sm:$0xff] %v5561_v62 }
 0x160   :  { %v4722_v5 = vpop.eup %4721 }
 0x161   :  { %v649_v26 = vadd.f32 1.0, %v4722_v5 }
 0x162   :  { %v4724_v4 = vpop.eup %4723 }
 0x163   :  { %4725 = vrcp.f32 %v649_v26  ;;  %v656_v44 = vadd.f32 1.0, %v4724_v4  ;;  %v7220_v4 = vld [vmem:[#allocation28_spill] sm:$0xff] }
 0x165   :  { %4727 = vrcp.f32 %v656_v44  ;;  %v7222_v44 = vld [vmem:[#allocation26_spill] sm:$0xff] }
 0x166   :  { %v641_v11 = vpop.f32.mrf.mxu1 }
 0x167   :  { %v642_v42 = vadd.f32 %v641_v11, %v5564_v56  ;;  %v7219_v11 = vld [vmem:[#allocation24_spill] sm:$0xff] }
 0x168   :  { %v4103_v16 = vpop.f32.mrf.mxu1 }
 0x169   :  { %v7221_v16 = vld [vmem:[#allocation25_spill] sm:$0xff] }
 0x170   :  { %v4726_v49 = vpop.eup %4725 }
 0x171   :  { %v659_v61 = vmul.f32 %v4726_v49, %v642_v42  ;;  %v7223_v42 = vld [vmem:[#allocation29_spill] sm:$0xff] }
 0x172   :  { %v4728_v24 = vpop.eup %4727  ;;  %v7224_v49 = vld [vmem:[#allocation21_spill] sm:$0xff] }
 0x173   :  { %v660_v41 = vadd.f32 %v659_v61, %v439_v22  ;;  %v662_v25 = vsub.f32 1.0, %v4728_v24  ;;  %v664_v26 = vmul.f32 0.0, %v4728_v24 }
 0x175   :  { %4729 = vtanh.f32 %v660_v41  ;;  %v7225_v41 = vld [vmem:[#allocation47_spill] sm:$0xff] }
 0x182   :  { %v4730_v20 = vpop.eup %4729 }
 0x183   :  { %v663_v5 = vmul.f32 %v4730_v20, %v662_v25  ;;  %v7216_v20 = vld [vmem:[#allocation22_spill] sm:$0xff] }
 0x185   :  { %v5567_v62 = vadd.f32 %v664_v26, %v663_v5  ;;  %v7226_v26 = vld [vmem:[#allocation32_spill] sm:$0xff] }
 0x187   :  { %7214 = vst [vmem:[#allocation55_spill] sm:$0xff] %v5567_v62  ;;  %736 = vmatmul.mubr.f32.vlgmr.msra.gmra.mxu0 %v5567_v62  ;;  %4137 = vmatmul.mubr.f32.vlgmr.msra.gmra.mxu1 %v5567_v62 }
 0x188   :  { %840 = vmatpush1.msra.mxu0 %v5242_v46  ;;  %4140 = vmatpush3.msra.mxu1 %v5341_v21 }
 0x189   :  { %841 = vmatprep.subr.mxu0 %v5244_v47  ;;  %4141 = vmatprep.subr.mxu1 %v7215_v0 }
 0x18a   :  { %842 = vmatpush1.msra.mxu0 %v5248_v48  ;;  %4142 = vmatpush3.msra.mxu1 %v5358_v27 }
 0x18b   :  { %843 = vmatprep.subr.mxu0 %v5254_v51  ;;  %4143 = vmatprep.subr.mxu1 %v7215_v0 }
 0x18c   :  { %844 = vmatpush1.msra.mxu0 %v5257_v52  ;;  %4144 = vmatpush3.msra.mxu1 %v5364_v28 }
 0x18d   :  { %845 = vmatprep.subr.mxu0 %v5260_v53  ;;  %4145 = vmatprep.subr.mxu1 %v7215_v0 }
 0x18e   :  { %846 = vmatpush1.msra.mxu0 %v5264_v54  ;;  %4146 = vmatpush3.msra.mxu1 %v5370_v29 }
 0x18f   :  { %847 = vmatprep.subr.mxu0 %v5270_v57  ;;  %4147 = vmatprep.subr.mxu1 %v7215_v0 }
 0x190   :  { %848 = vmatpush1.msra.mxu0 %v5273_v58  ;;  %4148 = vmatpush3.msra.mxu1 %v5375_v30 }
 0x191   :  { %849 = vmatprep.subr.mxu0 %v5276_v59  ;;  %4149 = vmatprep.subr.mxu1 %v7215_v0 }
 0x192   :  { %850 = vmatpush1.msra.mxu0 %v5280_v60  ;;  %4150 = vmatpush3.msra.mxu1 %v5381_v31 }
 0x193   :  { %851 = vmatprep.subr.mxu0 %v5286_v63  ;;  %4151 = vmatprep.subr.mxu1 %v7215_v0 }
 0x194   :  { %852 = vmatpush1.msra.mxu0 %v5289_v1  ;;  %4152 = vmatpush3.msra.mxu1 %v5387_v32 }
 0x195   :  { %853 = vmatprep.subr.mxu0 %v5292_v2  ;;  %4153 = vmatprep.subr.mxu1 %v7215_v0 }
 0x196   :  { %854 = vmatpush1.msra.mxu0 %v5296_v3  ;;  %4154 = vmatpush3.msra.mxu1 %v5391_v33 }
 0x197   :  { %855 = vmatprep.subr.mxu0 %v5302_v6  ;;  %4155 = vmatprep.subr.mxu1 %v7215_v0 }
 0x198   :  { %856 = vmatpush1.msra.mxu0 %v5305_v7  ;;  %4156 = vmatpush3.msra.mxu1 %v5397_v34 }
 0x199   :  { %857 = vmatprep.subr.mxu0 %v5308_v8  ;;  %4157 = vmatprep.subr.mxu1 %v7215_v0 }
 0x19a   :  { %858 = vmatpush1.msra.mxu0 %v5312_v9  ;;  %4158 = vmatpush3.msra.mxu1 %v5403_v35 }
 0x19b   :  { %859 = vmatprep.subr.mxu0 %v5316_v12  ;;  %4159 = vmatprep.subr.mxu1 %v7215_v0 }
 0x19c   :  { %860 = vmatpush1.msra.mxu0 %v5319_v13  ;;  %4160 = vmatpush3.msra.mxu1 %v5409_v36 }
 0x19d   :  { %861 = vmatprep.subr.mxu0 %v5322_v14  ;;  %4161 = vmatprep.subr.mxu1 %v7215_v0 }
 0x19e   :  { %862 = vmatpush1.msra.mxu0 %v5325_v15  ;;  %4162 = vmatpush3.msra.mxu1 %v5415_v37 }
 0x19f   :  { %863 = vmatprep.subr.mxu0 %v5329_v17  ;;  %4163 = vmatprep.subr.mxu1 %v7215_v0 }
 0x1a0   :  { %864 = vmatpush1.msra.mxu0 %v5332_v18  ;;  %4164 = vmatpush3.msra.mxu1 %v5421_v38 }
 0x1a1   :  { %865 = vmatprep.subr.mxu0 %v5335_v19  ;;  %4165 = vmatprep.subr.mxu1 %v7215_v0 }
 0x1a2   :  { %866 = vmatpush1.msra.mxu0 %v7216_v20  ;;  %4166 = vmatpush3.msra.mxu1 %v7217_v45 }
 0x1a3   :  { %867 = vmatprep.subr.mxu0 %v7218_v40  ;;  %4167 = vmatprep.subr.mxu1 %v7215_v0 }
 0x1a4   :  { %868 = vmatpush1.msra.mxu0 %v7219_v11  ;;  %4168 = vmatpush3.msra.mxu1 %v7220_v4 }
 0x1a5   :  { %869 = vmatprep.subr.mxu0 %v7221_v16  ;;  %4169 = vmatprep.subr.mxu1 %v7215_v0 }
 0x1a6   :  { %870 = vmatpush1.msra.mxu0 %v7222_v44  ;;  %903 = vmatprep.mubr.f32.mxu0 %v7215_v0 }
 0x1a7   :  { %4170 = vmatpush3.msra.mxu1 %v7223_v42  ;;  %4171 = vmatprep.mubr.msk.f32.mxu1 %vm5138_vm0, %v7215_v0 }
 0x1a8   :  { %1007 = vmatprep.subr.mxu0 %v7224_v49  ;;  %4174 = vmatprep.subr.mxu1 %v7215_v0 }
 0x247   :  { %v737_v22 = vpop.f32.mrf.mxu0  ;;  %v808_v61 = vpop.f32.mrf.mxu1 }
 0x248   :  { %v738_v24 = vadd.f32 %v737_v22, %v7225_v41  ;;  %v809_v11 = vadd.f32 %v808_v61, %v5564_v56  ;;  %v7237_v61 = vld [vmem:[#allocation34_spill] sm:$0xff] }
 0x249   :  { %v739_v25 = vpop.f32.mrf.mxu0  ;;  %v4138_v5 = vpop.f32.mrf.mxu1 }
 0x24a   :  { %v812_v10 = vadd.f32 %v738_v24, %v7226_v26  ;;  %v740_v55 = vadd.f32 %v739_v25, %v5548_v23  ;;  %v7228_v5 = vld [vmem:[#allocation45_spill] sm:$0xff] }
 0x24c   :  { %v3657_v50 = vmul.f32 -1.442695, %v812_v10  ;;  %v819_v39 = vadd.f32 %v740_v55, %v7227_v43  ;;  %v7235_v43 = vld [vmem:[#allocation21_spill] sm:$0xff] }
 0x24e   :  { %4731 = vpow2.f32 %v3657_v50  ;;  %v3658_v42 = vmul.f32 -1.442695, %v819_v39 }
 0x250   :  { %4733 = vpow2.f32 %v3658_v42 }
 0x25b   :  { %v4732_v44 = vpop.eup %4731 }
 0x25c   :  { %v816_v49 = vadd.f32 1.0, %v4732_v44 }
 0x25d   :  { %v4734_v16 = vpop.eup %4733 }
 0x25e   :  { %4735 = vrcp.f32 %v816_v49  ;;  %v823_v4 = vadd.f32 1.0, %v4734_v16  ;;  %v7236_v16 = vld [vmem:[#allocation47_spill] sm:$0xff] }
 0x260   :  { %4737 = vrcp.f32 %v823_v4 }
 0x26b   :  { %v4736_v22 = vpop.eup %4735 }
 0x26c   :  { %v826_v41 = vmul.f32 %v4736_v22, %v809_v11 }
 0x26d   :  { %v4738_v10 = vpop.eup %4737 }
 0x26e   :  { %v827_v24 = vadd.f32 %v826_v41, %v7228_v5  ;;  %v829_v25 = vsub.f32 1.0, %v4738_v10  ;;  %v831_v39 = vmul.f32 %v4738_v10, %v5567_v62 }
 0x270   :  { %4739 = vtanh.f32 %v827_v24  ;;  %v7238_v24 = vld [vmem:[#allocation35_spill] sm:$0xff] }
 0x27d   :  { %v4740_v50 = vpop.eup %4739 }
 0x27e   :  { %v830_v26 = vmul.f32 %v4740_v50, %v829_v25 }
 0x280   :  { %v5645_v55 = vadd.f32 %v831_v39, %v830_v26 }
 0x282   :  { %7229 = vst [vmem:[#allocation22_spill] sm:$0xff] %v5645_v55  ;;  %904 = vmatmul.mubr.f32.vlgmr.msra.gmra.mxu0 %v5645_v55  ;;  %4172 = vmatmul.mubr.f32.vlgmr.msra.gmra.mxu1 %v5645_v55 }
 0x283   :  { %1008 = vmatpush1.msra.mxu0 %v5242_v46  ;;  %4175 = vmatpush3.msra.mxu1 %v5341_v21  ;;  %v7230_v46 = vld [vmem:[#allocation24_spill] sm:$0xff] }
 0x284   :  { %1009 = vmatprep.subr.mxu0 %v5244_v47  ;;  %4176 = vmatprep.subr.mxu1 %v7215_v0  ;;  %v7231_v47 = vld [vmem:[#allocation28_spill] sm:$0xff] }
 0x285   :  { %1010 = vmatpush1.msra.mxu0 %v5248_v48  ;;  %4177 = vmatpush3.msra.mxu1 %v5358_v27  ;;  %v7232_v48 = vld [vmem:[#allocation25_spill] sm:$0xff] }
 0x286   :  { %1011 = vmatprep.subr.mxu0 %v5254_v51  ;;  %4178 = vmatprep.subr.mxu1 %v7215_v0  ;;  %v7233_v51 = vld [vmem:[#allocation26_spill] sm:$0xff] }
 0x287   :  { %1012 = vmatpush1.msra.mxu0 %v5257_v52  ;;  %4179 = vmatpush3.msra.mxu1 %v5364_v28  ;;  %v7234_v52 = vld [vmem:[#allocation29_spill] sm:$0xff] }
 0x288   :  { %1013 = vmatprep.subr.mxu0 %v5260_v53  ;;  %4180 = vmatprep.subr.mxu1 %v7215_v0 }
 0x289   :  { %1014 = vmatpush1.msra.mxu0 %v5264_v54  ;;  %4181 = vmatpush3.msra.mxu1 %v5370_v29 }
 0x28a   :  { %1015 = vmatprep.subr.mxu0 %v5270_v57  ;;  %4182 = vmatprep.subr.mxu1 %v7215_v0 }
 0x28b   :  { %1016 = vmatpush1.msra.mxu0 %v5273_v58  ;;  %4183 = vmatpush3.msra.mxu1 %v5375_v30 }
 0x28c   :  { %1017 = vmatprep.subr.mxu0 %v5276_v59  ;;  %4184 = vmatprep.subr.mxu1 %v7215_v0 }
 0x28d   :  { %1018 = vmatpush1.msra.mxu0 %v5280_v60  ;;  %4185 = vmatpush3.msra.mxu1 %v5381_v31 }
 0x28e   :  { %1019 = vmatprep.subr.mxu0 %v5286_v63  ;;  %4186 = vmatprep.subr.mxu1 %v7215_v0 }
 0x28f   :  { %1020 = vmatpush1.msra.mxu0 %v5289_v1  ;;  %4187 = vmatpush3.msra.mxu1 %v5387_v32 }
 0x290   :  { %1021 = vmatprep.subr.mxu0 %v5292_v2  ;;  %4188 = vmatprep.subr.mxu1 %v7215_v0 }
 0x291   :  { %1022 = vmatpush1.msra.mxu0 %v5296_v3  ;;  %4189 = vmatpush3.msra.mxu1 %v5391_v33 }
 0x292   :  { %1023 = vmatprep.subr.mxu0 %v5302_v6  ;;  %4190 = vmatprep.subr.mxu1 %v7215_v0 }
 0x293   :  { %1024 = vmatpush1.msra.mxu0 %v5305_v7  ;;  %4191 = vmatpush3.msra.mxu1 %v5397_v34 }
 0x294   :  { %1025 = vmatprep.subr.mxu0 %v5308_v8  ;;  %4192 = vmatprep.subr.mxu1 %v7215_v0 }
 0x295   :  { %1026 = vmatpush1.msra.mxu0 %v5312_v9  ;;  %4193 = vmatpush3.msra.mxu1 %v5403_v35 }
 0x296   :  { %1027 = vmatprep.subr.mxu0 %v5316_v12  ;;  %4194 = vmatprep.subr.mxu1 %v7215_v0 }
 0x297   :  { %1028 = vmatpush1.msra.mxu0 %v5319_v13  ;;  %4195 = vmatpush3.msra.mxu1 %v5409_v36 }
 0x298   :  { %1029 = vmatprep.subr.mxu0 %v5322_v14  ;;  %4196 = vmatprep.subr.mxu1 %v7215_v0 }
 0x299   :  { %1030 = vmatpush1.msra.mxu0 %v5325_v15  ;;  %4197 = vmatpush3.msra.mxu1 %v5415_v37 }
 0x29a   :  { %1031 = vmatprep.subr.mxu0 %v5329_v17  ;;  %4198 = vmatprep.subr.mxu1 %v7215_v0 }
 0x29b   :  { %1032 = vmatpush1.msra.mxu0 %v5332_v18  ;;  %4199 = vmatpush3.msra.mxu1 %v5421_v38 }
 0x29c   :  { %1033 = vmatprep.subr.mxu0 %v5335_v19  ;;  %4200 = vmatprep.subr.mxu1 %v7215_v0 }
 0x29d   :  { %1034 = vmatpush1.msra.mxu0 %v7216_v20  ;;  %4201 = vmatpush3.msra.mxu1 %v7217_v45 }
 0x29e   :  { %1035 = vmatprep.subr.mxu0 %v7218_v40  ;;  %4202 = vmatprep.subr.mxu1 %v7215_v0 }
 0x29f   :  { %1036 = vmatpush1.msra.mxu0 %v7230_v46  ;;  %4203 = vmatpush3.msra.mxu1 %v7231_v47 }
 0x2a0   :  { %1037 = vmatprep.subr.mxu0 %v7232_v48  ;;  %4204 = vmatprep.subr.mxu1 %v7215_v0 }
 0x2a1   :  { %1038 = vmatpush1.msra.mxu0 %v7233_v51  ;;  %1071 = vmatprep.mubr.f32.mxu0 %v7215_v0 }
 0x2a2   :  { %4205 = vmatpush3.msra.mxu1 %v7234_v52  ;;  %4206 = vmatprep.mubr.msk.f32.mxu1 %vm5138_vm0, %v7215_v0 }
 0x2a3   :  { %1175 = vmatprep.subr.mxu0 %v7235_v43  ;;  %4209 = vmatprep.subr.mxu1 %v7215_v0 }
 0x342   :  { %v905_v11 = vpop.f32.mrf.mxu0  ;;  %v976_v4 = vpop.f32.mrf.mxu1 }
 0x343   :  { %v906_v44 = vadd.f32 %v905_v11, %v7236_v16  ;;  %v977_v62 = vadd.f32 %v976_v4, %v5564_v56  ;;  %v5735_v4 = vld [vmem:[#allocation9 + $0x150] sm:$0xff] }
 0x344   :  { %v907_v42 = vpop.f32.mrf.mxu0  ;;  %v4173_v49 = vpop.f32.mrf.mxu1 }
 0x345   :  { %v980_v41 = vadd.f32 %v906_v44, %v7237_v61  ;;  %v908_v5 = vadd.f32 %v907_v42, %v5548_v23  ;;  %v7239_v49 = vld [vmem:[#allocation50_spill] sm:$0xff] }
 0x347   :  { %v3659_v22 = vmul.f32 -1.442695, %v980_v41  ;;  %v987_v10 = vadd.f32 %v908_v5, %v7238_v24 }
 0x349   :  { %4741 = vpow2.f32 %v3659_v22  ;;  %v3660_v25 = vmul.f32 -1.442695, %v987_v10  ;;  %v5727_v10 = vld [vmem:[#allocation9 + $0x168] sm:$0xff] }
 0x34b   :  { %4743 = vpow2.f32 %v3660_v25  ;;  %v5743_v25 = vld [vmem:[#allocation9 + $0x138] sm:$0xff] }
 0x356   :  { %v4742_v50 = vpop.eup %4741 }
 0x357   :  { %v984_v26 = vadd.f32 1.0, %v4742_v50  ;;  %v5833_v50 = vld [vmem:[#allocation9 + $0x128] sm:$0xff] }
 0x358   :  { %v4744_v39 = vpop.eup %4743 }
 0x359   :  { %4745 = vrcp.f32 %v984_v26  ;;  %v991_v43 = vadd.f32 1.0, %v4744_v39  ;;  %v5837_v26 = vld [vmem:[#allocation9 + $0x120] sm:$0xff]  ;;  %v5840_v39 = vld [vmem:[#allocation9 + $0x130] sm:$0xff] }
 0x35b   :  { %4747 = vrcp.f32 %v991_v43  ;;  %v5843_v43 = vld [vmem:[#allocation9 + $0x110] sm:$0xff] }
 0x366   :  { %v4746_v11 = vpop.eup %4745 }
 0x367   :  { %v994_v16 = vmul.f32 %v4746_v11, %v977_v62  ;;  %v5731_v62 = vld [vmem:[#allocation9 + $0x158] sm:$0xff]  ;;  %v5847_v11 = vld [vmem:[#allocation9 + $0x108] sm:$0xff] }
 0x368   :  { %v4748_v61 = vpop.eup %4747 }
 0x369   :  { %v995_v44 = vadd.f32 %v994_v16, %v7239_v49  ;;  %v997_v42 = vsub.f32 1.0, %v4748_v61  ;;  %v999_v5 = vmul.f32 %v4748_v61, %v5645_v55  ;;  %v5739_v16 = vld [vmem:[#allocation9 + $0x140] sm:$0xff]  ;;  %v5850_v49 = vld [vmem:[#allocation9 + $0x118] sm:$0xff]  ;;  %v5857_v61 = vld [vmem:[#allocation9 + $0xf0] sm:$0xff] }
 0x36b   :  { %4749 = vtanh.f32 %v995_v44  ;;  %v5853_v44 = vld [vmem:[#allocation9 + $0xf8] sm:$0xff] }
 0x378   :  { %v4750_v41 = vpop.eup %4749 }
 0x379   :  { %v998_v22 = vmul.f32 %v4750_v41, %v997_v42  ;;  %v5860_v42 = vld [vmem:[#allocation9 + $0x100] sm:$0xff] }
 0x37a   :  { %v5863_v41 = vld [vmem:[#allocation9 + $0xe0] sm:$0xff] }
 0x37b   :  { %v5723_v24 = vadd.f32 %v999_v5, %v998_v22  ;;  %v5867_v22 = vld [vmem:[#allocation9 + $0xd8] sm:$0xff]  ;;  %v5871_v5 = vld [vmem:[#allocation9 + $0xc8] sm:$0xff] }
 0x37d   :  { %7240 = vst [vmem:[#allocation27_spill] sm:$0xff] %v5723_v24  ;;  %1072 = vmatmul.mubr.f32.vlgmr.msra.gmra.mxu0 %v5723_v24  ;;  %4207 = vmatmul.mubr.f32.vlgmr.msra.gmra.mxu1 %v5723_v24 }
 0x37e   :  { %1176 = vmatpush1.msra.mxu0 %v5727_v10  ;;  %4210 = vmatpush3.msra.mxu1 %v5341_v21  ;;  %v7244_v21 = vld [vmem:[#allocation49_spill] sm:$0xff] }
 0x37f   :  { %1177 = vmatprep.subr.mxu0 %v5731_v62  ;;  %4211 = vmatprep.subr.mxu1 %v7215_v0 }
 0x380   :  { %1178 = vmatpush1.msra.mxu0 %v5735_v4  ;;  %4212 = vmatpush3.msra.mxu1 %v5358_v27 }
 0x381   :  { %1179 = vmatprep.subr.mxu0 %v5739_v16  ;;  %4213 = vmatprep.subr.mxu1 %v7215_v0 }
 0x382   :  { %1180 = vmatpush1.msra.mxu0 %v5743_v25  ;;  %4214 = vmatpush3.msra.mxu1 %v5364_v28 }
 0x383   :  { %1181 = vmatprep.subr.mxu0 %v5260_v53  ;;  %4215 = vmatprep.subr.mxu1 %v7215_v0  ;;  %v5802_v53 = vld [vmem:[#allocation9 + $0x170] sm:$0xff] }
 0x384   :  { %1182 = vmatpush1.msra.mxu0 %v5264_v54  ;;  %4216 = vmatpush3.msra.mxu1 %v5370_v29 }
 0x385   :  { %1183 = vmatprep.subr.mxu0 %v5270_v57  ;;  %4217 = vmatprep.subr.mxu1 %v7215_v0 }
 0x386   :  { %1184 = vmatpush1.msra.mxu0 %v5273_v58  ;;  %4218 = vmatpush3.msra.mxu1 %v5375_v30  ;;  %v7241_v58 = vld [vmem:[#allocation47_spill] sm:$0xff] }
 0x387   :  { %1185 = vmatprep.subr.mxu0 %v5276_v59  ;;  %4219 = vmatprep.subr.mxu1 %v7215_v0 }
 0x388   :  { %1186 = vmatpush1.msra.mxu0 %v5280_v60  ;;  %4220 = vmatpush3.msra.mxu1 %v5381_v31 }
 0x389   :  { %1187 = vmatprep.subr.mxu0 %v5286_v63  ;;  %4221 = vmatprep.subr.mxu1 %v7215_v0 }
 0x38a   :  { %1188 = vmatpush1.msra.mxu0 %v5289_v1  ;;  %4222 = vmatpush3.msra.mxu1 %v5387_v32  ;;  %v7242_v1 = vld [vmem:[#allocation36_spill] sm:$0xff] }
 0x38b   :  { %1189 = vmatprep.subr.mxu0 %v5292_v2  ;;  %4223 = vmatprep.subr.mxu1 %v7215_v0 }
 0x38c   :  { %1190 = vmatpush1.msra.mxu0 %v5296_v3  ;;  %4224 = vmatpush3.msra.mxu1 %v5391_v33 }
 0x38d   :  { %1191 = vmatprep.subr.mxu0 %v5302_v6  ;;  %4225 = vmatprep.subr.mxu1 %v7215_v0 }
 0x38e   :  { %1192 = vmatpush1.msra.mxu0 %v5305_v7  ;;  %4226 = vmatpush3.msra.mxu1 %v5397_v34  ;;  %v7243_v7 = vld [vmem:[#allocation37_spill] sm:$0xff] }
 0x38f   :  { %1193 = vmatprep.subr.mxu0 %v5308_v8  ;;  %4227 = vmatprep.subr.mxu1 %v7215_v0 }
 0x390   :  { %1194 = vmatpush1.msra.mxu0 %v5312_v9  ;;  %4228 = vmatpush3.msra.mxu1 %v5403_v35 }
 0x391   :  { %1195 = vmatprep.subr.mxu0 %v5316_v12  ;;  %4229 = vmatprep.subr.mxu1 %v7215_v0 }
 0x392   :  { %1196 = vmatpush1.msra.mxu0 %v5319_v13  ;;  %4230 = vmatpush3.msra.mxu1 %v5409_v36 }
 0x393   :  { %1197 = vmatprep.subr.mxu0 %v5322_v14  ;;  %4231 = vmatprep.subr.mxu1 %v7215_v0 }
 0x394   :  { %1198 = vmatpush1.msra.mxu0 %v5325_v15  ;;  %4232 = vmatpush3.msra.mxu1 %v5415_v37 }
 0x395   :  { %1199 = vmatprep.subr.mxu0 %v5329_v17  ;;  %4233 = vmatprep.subr.mxu1 %v7215_v0 }
 0x396   :  { %1200 = vmatpush1.msra.mxu0 %v5332_v18  ;;  %4234 = vmatpush3.msra.mxu1 %v5421_v38 }
 0x397   :  { %1201 = vmatprep.subr.mxu0 %v5335_v19  ;;  %4235 = vmatprep.subr.mxu1 %v7215_v0 }
 0x398   :  { %1202 = vmatpush1.msra.mxu0 %v7216_v20  ;;  %4236 = vmatpush3.msra.mxu1 %v7217_v45 }
 0x399   :  { %1203 = vmatprep.subr.mxu0 %v7218_v40  ;;  %4237 = vmatprep.subr.mxu1 %v7215_v0 }
 0x39a   :  { %1204 = vmatpush1.msra.mxu0 %v7230_v46  ;;  %4238 = vmatpush3.msra.mxu1 %v7231_v47  ;;  %v5818_v46 = vld [vmem:[#allocation9 + $0x178] sm:$0xff] }
 0x39b   :  { %1205 = vmatprep.subr.mxu0 %v7232_v48  ;;  %4239 = vmatprep.subr.mxu1 %v7215_v0  ;;  %v5824_v48 = vld [vmem:[#allocation9 + $0x160] sm:$0xff] }
 0x39c   :  { %1206 = vmatpush1.msra.mxu0 %v7233_v51  ;;  %1239 = vmatprep.mubr.f32.mxu0 %v7215_v0  ;;  %v5830_v51 = vld [vmem:[#allocation9 + $0x148] sm:$0xff] }
 0x39d   :  { %4240 = vmatpush3.msra.mxu1 %v7234_v52  ;;  %4241 = vmatprep.mubr.msk.f32.mxu1 %vm5138_vm0, %v7215_v0 }
 0x39e   :  { %1343 = vmatprep.subr.mxu0 %v5802_v53  ;;  %4244 = vmatprep.subr.mxu1 %v7215_v0 }
 0x43d   :  { %v1073_v54 = vpop.f32.mrf.mxu0  ;;  %v1144_v57 = vpop.f32.mrf.mxu1 }
 0x43e   :  { %v1074_v59 = vadd.f32 %v1073_v54, %v7241_v58  ;;  %v1145_v17 = vadd.f32 %v1144_v57, %v5564_v56  ;;  %v5875_v54 = vld [vmem:[#allocation9 + $0xc0] sm:$0xff]  ;;  %v5879_v57 = vld [vmem:[#allocation9 + $0xb0] sm:$0xff] }
 0x43f   :  { %v1075_v60 = vpop.f32.mrf.mxu0  ;;  %v4208_v63 = vpop.f32.mrf.mxu1 }
 0x440   :  { %v1148_v2 = vadd.f32 %v1074_v59, %v7242_v1  ;;  %v1076_v6 = vadd.f32 %v1075_v60, %v5548_v23  ;;  %v5883_v59 = vld [vmem:[#allocation9 + $0xa8] sm:$0xff]  ;;  %v5891_v60 = vld [vmem:[#allocation9 + $0x90] sm:$0xff]  ;;  %v5899_v63 = vld [vmem:[#allocation9 + $0x78] sm:$0xff] }
 0x441   :  { %v5907_v1 = vld [vmem:[#allocation9 + $0x60] sm:$0xff] }
 0x442   :  { %v3661_v3 = vmul.f32 -1.442695, %v1148_v2  ;;  %v1155_v8 = vadd.f32 %v1076_v6, %v7243_v7  ;;  %v5915_v2 = vld [vmem:[#allocation9 + $0x48] sm:$0xff]  ;;  %v5931_v6 = vld [vmem:[#allocation9 + $0x18] sm:$0xff]  ;;  %v5939_v7 = vld [vmem:[#allocation9] sm:$0xff] }
 0x443   :  { %7246 = vst [vmem:[#allocation32_spill] sm:$0xff] %v5931_v6  ;;  %7248 = vst [vmem:[#allocation45_spill] sm:$0xff] %v5939_v7 }
 0x444   :  { %4751 = vpow2.f32 %v3661_v3  ;;  %v3662_v9 = vmul.f32 -1.442695, %v1155_v8  ;;  %v5923_v3 = vld [vmem:[#allocation9 + $0x30] sm:$0xff] }
 0x446   :  { %4753 = vpow2.f32 %v3662_v9 }
 0x451   :  { %v4752_v12 = vpop.eup %4751 }
 0x452   :  { %v1152_v13 = vadd.f32 1.0, %v4752_v12 }
 0x453   :  { %v4754_v14 = vpop.eup %4753 }
 0x454   :  { %4755 = vrcp.f32 %v1152_v13  ;;  %v1159_v15 = vadd.f32 1.0, %v4754_v14  ;;  %v7249_v13 = vld [vmem:[#allocation38_spill] sm:$0xff] }
 0x456   :  { %4757 = vrcp.f32 %v1159_v15 }
 0x461   :  { %v4756_v18 = vpop.eup %4755 }
 0x462   :  { %v1162_v19 = vmul.f32 %v4756_v18, %v1145_v17 }
 0x463   :  { %v4758_v28 = vpop.eup %4757 }
 0x464   :  { %v1163_v27 = vadd.f32 %v1162_v19, %v7244_v21  ;;  %v1165_v29 = vsub.f32 1.0, %v4758_v28  ;;  %v1167_v20 = vmul.f32 %v4758_v28, %v5723_v24  ;;  %v7255_v24 = vld [vmem:[#allocation42_spill] sm:$0xff] }
 0x466   :  { %4759 = vtanh.f32 %v1163_v27 }
 0x473   :  { %v4760_v30 = vpop.eup %4759 }
 0x474   :  { %v1166_v31 = vmul.f32 %v4760_v30, %v1165_v29 }
 0x476   :  { %v5813_v40 = vadd.f32 %v1167_v20, %v1166_v31 }
 0x478   :  { %7245 = vst [vmem:[#allocation23_spill] sm:$0xff] %v5813_v40  ;;  %1240 = vmatmul.mubr.f32.vlgmr.msra.gmra.mxu0 %v5813_v40  ;;  %4242 = vmatmul.mubr.f32.vlgmr.msra.gmra.mxu1 %v5813_v40 }
 0x479   :  { %1344 = vmatpush1.msra.mxu0 %v5727_v10  ;;  %4245 = vmatpush3.msra.mxu1 %v5818_v46 }
 0x47a   :  { %1345 = vmatprep.subr.mxu0 %v5731_v62  ;;  %4246 = vmatprep.subr.mxu1 %v7215_v0 }
 0x47b   :  { %1346 = vmatpush1.msra.mxu0 %v5735_v4  ;;  %4247 = vmatpush3.msra.mxu1 %v5824_v48 }
 0x47c   :  { %1347 = vmatprep.subr.mxu0 %v5739_v16  ;;  %4248 = vmatprep.subr.mxu1 %v7215_v0 }
 0x47d   :  { %1348 = vmatpush1.msra.mxu0 %v5743_v25  ;;  %4249 = vmatpush3.msra.mxu1 %v5830_v51 }
 0x47e   :  { %1349 = vmatprep.subr.mxu0 %v5833_v50  ;;  %4250 = vmatprep.subr.mxu1 %v7215_v0 }
 0x47f   :  { %1350 = vmatpush1.msra.mxu0 %v5837_v26  ;;  %4251 = vmatpush3.msra.mxu1 %v5840_v39 }
 0x480   :  { %1351 = vmatprep.subr.mxu0 %v5843_v43  ;;  %4252 = vmatprep.subr.mxu1 %v7215_v0 }
 0x481   :  { %1352 = vmatpush1.msra.mxu0 %v5847_v11  ;;  %4253 = vmatpush3.msra.mxu1 %v5850_v49 }
 0x482   :  { %1353 = vmatprep.subr.mxu0 %v5853_v44  ;;  %4254 = vmatprep.subr.mxu1 %v7215_v0 }
 0x483   :  { %1354 = vmatpush1.msra.mxu0 %v5857_v61  ;;  %4255 = vmatpush3.msra.mxu1 %v5860_v42 }
 0x484   :  { %1355 = vmatprep.subr.mxu0 %v5863_v41  ;;  %4256 = vmatprep.subr.mxu1 %v7215_v0 }
 0x485   :  { %1356 = vmatpush1.msra.mxu0 %v5867_v22  ;;  %4257 = vmatpush3.msra.mxu1 %v5387_v32  ;;  %v5887_v32 = vld [vmem:[#allocation9 + $0x98] sm:$0xff] }
 0x486   :  { %1357 = vmatprep.subr.mxu0 %v5871_v5  ;;  %4258 = vmatprep.subr.mxu1 %v7215_v0 }
 0x487   :  { %1358 = vmatpush1.msra.mxu0 %v5875_v54  ;;  %4259 = vmatpush3.msra.mxu1 %v5391_v33  ;;  %v5895_v33 = vld [vmem:[#allocation9 + $0x80] sm:$0xff] }
 0x488   :  { %1359 = vmatprep.subr.mxu0 %v5879_v57  ;;  %4260 = vmatprep.subr.mxu1 %v7215_v0 }
 0x489   :  { %1360 = vmatpush1.msra.mxu0 %v5883_v59  ;;  %4261 = vmatpush3.msra.mxu1 %v5397_v34  ;;  %v5903_v34 = vld [vmem:[#allocation9 + $0x68] sm:$0xff] }
 0x48a   :  { %1361 = vmatprep.subr.mxu0 %v5887_v32  ;;  %4262 = vmatprep.subr.mxu1 %v7215_v0 }
 0x48b   :  { %1362 = vmatpush1.msra.mxu0 %v5891_v60  ;;  %4263 = vmatpush3.msra.mxu1 %v5403_v35  ;;  %v5911_v35 = vld [vmem:[#allocation9 + $0x50] sm:$0xff] }
 0x48c   :  { %1363 = vmatprep.subr.mxu0 %v5895_v33  ;;  %4264 = vmatprep.subr.mxu1 %v7215_v0 }
 0x48d   :  { %1364 = vmatpush1.msra.mxu0 %v5899_v63  ;;  %4265 = vmatpush3.msra.mxu1 %v5409_v36  ;;  %v5919_v36 = vld [vmem:[#allocation9 + $0x38] sm:$0xff] }
 0x48e   :  { %1365 = vmatprep.subr.mxu0 %v5903_v34  ;;  %4266 = vmatprep.subr.mxu1 %v7215_v0 }
 0x48f   :  { %1366 = vmatpush1.msra.mxu0 %v5907_v1  ;;  %4267 = vmatpush3.msra.mxu1 %v5415_v37  ;;  %v5927_v37 = vld [vmem:[#allocation9 + $0x20] sm:$0xff] }
 0x490   :  { %1367 = vmatprep.subr.mxu0 %v5911_v35  ;;  %4268 = vmatprep.subr.mxu1 %v7215_v0 }
 0x491   :  { %1368 = vmatpush1.msra.mxu0 %v5915_v2  ;;  %4269 = vmatpush3.msra.mxu1 %v5421_v38  ;;  %v5935_v38 = vld [vmem:[#allocation9 + $0x8] sm:$0xff] }
 0x492   :  { %1369 = vmatprep.subr.mxu0 %v5919_v36  ;;  %4270 = vmatprep.subr.mxu1 %v7215_v0  ;;  %7247 = vst [vmem:[#allocation33_spill] sm:$0xff] %v5935_v38 }
 0x493   :  { %1370 = vmatpush1.msra.mxu0 %v5923_v3  ;;  %4271 = vmatpush3.msra.mxu1 %v7217_v45 }
 0x494   :  { %1371 = vmatprep.subr.mxu0 %v5927_v37  ;;  %4272 = vmatprep.subr.mxu1 %v7215_v0 }
 0x495   :  { %1372 = vmatpush1.msra.mxu0 %v5931_v6  ;;  %4273 = vmatpush3.msra.mxu1 %v7231_v47 }
 0x496   :  { %1373 = vmatprep.subr.mxu0 %v5935_v38  ;;  %4274 = vmatprep.subr.mxu1 %v7215_v0 }
 0x497   :  { %1374 = vmatpush1.msra.mxu0 %v5939_v7  ;;  %1407 = vmatprep.mubr.f32.mxu0 %v7215_v0 }
 0x498   :  { %4275 = vmatpush3.msra.mxu1 %v7234_v52  ;;  %4276 = vmatprep.mubr.msk.f32.mxu1 %vm5138_vm0, %v7215_v0  ;;  %v7250_v52 = vld [vmem:[#allocation39_spill] sm:$0xff] }
 0x499   :  { %1511 = vmatprep.subr.mxu0 %v5802_v53  ;;  %4279 = vmatprep.subr.mxu1 %v7215_v0 }
 0x538   :  { %v1241_v45 = vpop.f32.mrf.mxu0  ;;  %v1312_v47 = vpop.f32.mrf.mxu1 }
 0x539   :  { %v1242_v8 = vadd.f32 %v1241_v45, %v7241_v58  ;;  %v1313_v30 = vadd.f32 %v1312_v47, %v5564_v56  ;;  %v7251_v45 = vld [vmem:[#allocation52_spill] sm:$0xff]  ;;  %v5984_v47 = vld [vmem:[#allocation9 + $0xe8] sm:$0xff] }
 0x53a   :  { %v1243_v9 = vpop.f32.mrf.mxu0  ;;  %v4243_v12 = vpop.f32.mrf.mxu1 }
 0x53b   :  { %v1316_v14 = vadd.f32 %v1242_v8, %v7249_v13  ;;  %v1244_v17 = vadd.f32 %v1243_v9, %v5548_v23 }
 0x53d   :  { %v3663_v15 = vmul.f32 -1.442695, %v1316_v14  ;;  %v1323_v18 = vadd.f32 %v1244_v17, %v7250_v52  ;;  %v5990_v52 = vld [vmem:[#allocation9 + $0xd0] sm:$0xff] }
 0x53f   :  { %4761 = vpow2.f32 %v3663_v15  ;;  %v3664_v19 = vmul.f32 -1.442695, %v1323_v18  ;;  %v5996_v18 = vld [vmem:[#allocation9 + $0xb8] sm:$0xff] }
 0x541   :  { %4763 = vpow2.f32 %v3664_v19  ;;  %v6002_v19 = vld [vmem:[#allocation9 + $0xa0] sm:$0xff] }
 0x54c   :  { %v4762_v21 = vpop.eup %4761 }
 0x54d   :  { %v1320_v27 = vadd.f32 1.0, %v4762_v21  ;;  %v6008_v21 = vld [vmem:[#allocation9 + $0x88] sm:$0xff] }
 0x54e   :  { %v4764_v28 = vpop.eup %4763 }
 0x54f   :  { %4765 = vrcp.f32 %v1320_v27  ;;  %v1327_v29 = vadd.f32 1.0, %v4764_v28  ;;  %v6014_v27 = vld [vmem:[#allocation9 + $0x70] sm:$0xff]  ;;  %v6020_v28 = vld [vmem:[#allocation9 + $0x58] sm:$0xff] }
 0x551   :  { %4767 = vrcp.f32 %v1327_v29  ;;  %v6026_v29 = vld [vmem:[#allocation9 + $0x40] sm:$0xff] }
 0x55c   :  { %v4766_v31 = vpop.eup %4765 }
 0x55d   :  { %v1330_v20 = vmul.f32 %v4766_v31, %v1313_v30  ;;  %v6032_v30 = vld [vmem:[#allocation9 + $0x28] sm:$0xff]  ;;  %v6039_v31 = vld [vmem:[#allocation9 + $0x10] sm:$0xff] }
 0x55e   :  { %v4768_v12 = vpop.eup %4767  ;;  %7252 = vst [vmem:[#allocation24_spill] sm:$0xff] %v6032_v30  ;;  %7253 = vst [vmem:[#allocation28_spill] sm:$0xff] %v6039_v31 }
 0x55f   :  { %v1331_v8 = vadd.f32 %v1330_v20, %v7251_v45  ;;  %v1333_v9 = vsub.f32 1.0, %v4768_v12  ;;  %v1335_v15 = vmul.f32 %v4768_v12, %v5813_v40 }
 0x561   :  { %4769 = vtanh.f32 %v1331_v8 }
 0x56e   :  { %v4770_v13 = vpop.eup %4769 }
 0x56f   :  { %v1334_v14 = vmul.f32 %v4770_v13, %v1333_v9  ;;  %v7254_v13 = vld [vmem:[#allocation41_spill] sm:$0xff] }
 0x571   :  { %v5955_v17 = vadd.f32 %v1335_v15, %v1334_v14 }
 0x573   :  { %1408 = vmatmul.mubr.f32.vlgmr.msra.gmra.mxu0 %v5955_v17  ;;  %4277 = vmatmul.mubr.f32.vlgmr.msra.gmra.mxu1 %v5955_v17 }
 0x574   :  { %1512 = vmatpush1.msra.mxu0 %v5727_v10  ;;  %4280 = vmatpush3.msra.mxu1 %v5818_v46 }
 0x575   :  { %1513 = vmatprep.subr.mxu0 %v5731_v62  ;;  %4281 = vmatprep.subr.mxu1 %v7215_v0 }
 0x576   :  { %1514 = vmatpush1.msra.mxu0 %v5735_v4  ;;  %4282 = vmatpush3.msra.mxu1 %v5824_v48 }
 0x577   :  { %1515 = vmatprep.subr.mxu0 %v5739_v16  ;;  %4283 = vmatprep.subr.mxu1 %v7215_v0 }
 0x578   :  { %1516 = vmatpush1.msra.mxu0 %v5743_v25  ;;  %4284 = vmatpush3.msra.mxu1 %v5830_v51 }
 0x579   :  { %1517 = vmatprep.subr.mxu0 %v5833_v50  ;;  %4285 = vmatprep.subr.mxu1 %v7215_v0 }
 0x57a   :  { %1518 = vmatpush1.msra.mxu0 %v5837_v26  ;;  %4286 = vmatpush3.msra.mxu1 %v5840_v39 }
 0x57b   :  { %1519 = vmatprep.subr.mxu0 %v5843_v43  ;;  %4287 = vmatprep.subr.mxu1 %v7215_v0 }
 0x57c   :  { %1520 = vmatpush1.msra.mxu0 %v5847_v11  ;;  %4288 = vmatpush3.msra.mxu1 %v5850_v49 }
 0x57d   :  { %1521 = vmatprep.subr.mxu0 %v5853_v44  ;;  %4289 = vmatprep.subr.mxu1 %v7215_v0 }
 0x57e   :  { %1522 = vmatpush1.msra.mxu0 %v5857_v61  ;;  %4290 = vmatpush3.msra.mxu1 %v5860_v42 }
 0x57f   :  { %1523 = vmatprep.subr.mxu0 %v5863_v41  ;;  %4291 = vmatprep.subr.mxu1 %v7215_v0 }
 0x580   :  { %1524 = vmatpush1.msra.mxu0 %v5867_v22  ;;  %4292 = vmatpush3.msra.mxu1 %v5984_v47 }
 0x581   :  { %1525 = vmatprep.subr.mxu0 %v5871_v5  ;;  %4293 = vmatprep.subr.mxu1 %v7215_v0 }
 0x582   :  { %1526 = vmatpush1.msra.mxu0 %v5875_v54  ;;  %4294 = vmatpush3.msra.mxu1 %v5990_v52 }
 0x583   :  { %1527 = vmatprep.subr.mxu0 %v5879_v57  ;;  %4295 = vmatprep.subr.mxu1 %v7215_v0 }
 0x584   :  { %1528 = vmatpush1.msra.mxu0 %v5883_v59  ;;  %4296 = vmatpush3.msra.mxu1 %v5996_v18 }
 0x585   :  { %1529 = vmatprep.subr.mxu0 %v5887_v32  ;;  %4297 = vmatprep.subr.mxu1 %v7215_v0 }
 0x586   :  { %1530 = vmatpush1.msra.mxu0 %v5891_v60  ;;  %4298 = vmatpush3.msra.mxu1 %v6002_v19 }
 0x587   :  { %1531 = vmatprep.subr.mxu0 %v5895_v33  ;;  %4299 = vmatprep.subr.mxu1 %v7215_v0 }
 0x588   :  { %1532 = vmatpush1.msra.mxu0 %v5899_v63  ;;  %4300 = vmatpush3.msra.mxu1 %v6008_v21 }
 0x589   :  { %1533 = vmatprep.subr.mxu0 %v5903_v34  ;;  %4301 = vmatprep.subr.mxu1 %v7215_v0 }
 0x58a   :  { %1534 = vmatpush1.msra.mxu0 %v5907_v1  ;;  %4302 = vmatpush3.msra.mxu1 %v6014_v27 }
 0x58b   :  { %1535 = vmatprep.subr.mxu0 %v5911_v35  ;;  %4303 = vmatprep.subr.mxu1 %v7215_v0 }
 0x58c   :  { %1536 = vmatpush1.msra.mxu0 %v5915_v2  ;;  %4304 = vmatpush3.msra.mxu1 %v6020_v28 }
 0x58d   :  { %1537 = vmatprep.subr.mxu0 %v5919_v36  ;;  %4305 = vmatprep.subr.mxu1 %v7215_v0 }
 0x58e   :  { %1538 = vmatpush1.msra.mxu0 %v5923_v3  ;;  %4306 = vmatpush3.msra.mxu1 %v6026_v29 }
 0x58f   :  { %1539 = vmatprep.subr.mxu0 %v5927_v37  ;;  %4307 = vmatprep.subr.mxu1 %v7215_v0 }
 0x590   :  { %1540 = vmatpush1.msra.mxu0 %v5931_v6  ;;  %4308 = vmatpush3.msra.mxu1 %v6032_v30 }
 0x591   :  { %1541 = vmatprep.subr.mxu0 %v5935_v38  ;;  %4309 = vmatprep.subr.mxu1 %v7215_v0 }
 0x592   :  { %1542 = vmatpush1.msra.mxu0 %v5939_v7  ;;  %1575 = vmatprep.mubr.f32.mxu0 %v7215_v0 }
 0x593   :  { %4310 = vmatpush3.msra.mxu1 %v6039_v31  ;;  %4311 = vmatprep.mubr.msk.f32.mxu1 %vm5138_vm0, %v7215_v0 }
 0x594   :  { %1679 = vmatprep.subr.mxu0 %v5802_v53  ;;  %4314 = vmatprep.subr.mxu1 %v7215_v0 }
 0x633   :  { %v1409_v20 = vpop.f32.mrf.mxu0  ;;  %v1480_v45 = vpop.f32.mrf.mxu1 }
 0x634   :  { %v1410_v8 = vadd.f32 %v1409_v20, %v7241_v58  ;;  %v1481_v6 = vadd.f32 %v1480_v45, %v5564_v56  ;;  %v1947_v45 = vld [vmem:[#allocation10 + $0xf8] sm:$0xff] }
 0x635   :  { %v1411_v12 = vpop.f32.mrf.mxu0  ;;  %v4278_v9 = vpop.f32.mrf.mxu1 }
 0x636   :  { %v1484_v14 = vadd.f32 %v1410_v8, %v7254_v13  ;;  %v1412_v40 = vadd.f32 %v1411_v12, %v5548_v23  ;;  %v7256_v9 = vld [vmem:[#allocation51_spill] sm:$0xff] }
 0x638   :  { %v3665_v15 = vmul.f32 -1.442695, %v1484_v14  ;;  %v1491_v55 = vadd.f32 %v1412_v40, %v7255_v24  ;;  %v1963_v40 = vld [vmem:[#allocation10 + $0x178] sm:$0xff] }
 0x63a   :  { %4771 = vpow2.f32 %v3665_v15  ;;  %v3666_v31 = vmul.f32 -1.442695, %v1491_v55 }
 0x63c   :  { %4773 = vpow2.f32 %v3666_v31  ;;  %v1949_v31 = vld [vmem:[#allocation10 + $0x108] sm:$0xff] }
 0x647   :  { %v4772_v7 = vpop.eup %4771 }
 0x648   :  { %v1488_v53 = vadd.f32 1.0, %v4772_v7  ;;  %v1958_v7 = vld [vmem:[#allocation10 + $0x150] sm:$0xff] }
 0x649   :  { %v4774_v38 = vpop.eup %4773 }
 0x64a   :  { %4775 = vrcp.f32 %v1488_v53  ;;  %v1495_v30 = vadd.f32 1.0, %v4774_v38  ;;  %v1960_v38 = vld [vmem:[#allocation10 + $0x160] sm:$0xff] }
 0x64b   :  { %v1948_v53 = vld [vmem:[#allocation10 + $0x100] sm:$0xff] }
 0x64c   :  { %4777 = vrcp.f32 %v1495_v30  ;;  %v1951_v30 = vld [vmem:[#allocation10 + $0x118] sm:$0xff] }
 0x657   :  { %v4776_v20 = vpop.eup %4775 }
 0x658   :  { %v1498_v58 = vmul.f32 %v4776_v20, %v1481_v6  ;;  %v1959_v6 = vld [vmem:[#allocation10 + $0x158] sm:$0xff]  ;;  %v1946_v20 = vld [vmem:[#allocation10 + $0xf0] sm:$0xff] }
 0x659   :  { %v4778_v13 = vpop.eup %4777 }
 0x65a   :  { %v1499_v8 = vadd.f32 %v1498_v58, %v7256_v9  ;;  %v1501_v12 = vsub.f32 1.0, %v4778_v13  ;;  %v1503_v55 = vmul.f32 %v4778_v13, %v5955_v17  ;;  %v1962_v58 = vld [vmem:[#allocation10 + $0x170] sm:$0xff]  ;;  %v1944_v9 = vld [vmem:[#allocation10 + $0xe0] sm:$0xff]  ;;  %v1943_v13 = vld [vmem:[#allocation10 + $0xd8] sm:$0xff] }
 0x65c   :  { %4779 = vtanh.f32 %v1499_v8  ;;  %v1945_v8 = vld [vmem:[#allocation10 + $0xe8] sm:$0xff] }
 0x669   :  { %v4780_v14 = vpop.eup %4779 }
 0x66a   :  { %v1502_v15 = vmul.f32 %v4780_v14, %v1501_v12  ;;  %v1941_v12 = vld [vmem:[#allocation10 + $0xc8] sm:$0xff]  ;;  %v1942_v14 = vld [vmem:[#allocation10 + $0xd0] sm:$0xff] }
 0x66c   :  { %v6053_v24 = vadd.f32 %v1503_v55, %v1502_v15  ;;  %v1940_v15 = vld [vmem:[#allocation10 + $0xc0] sm:$0xff]  ;;  %v1938_v55 = vld [vmem:[#allocation10 + $0xb0] sm:$0xff] }
 0x66e   :  { %1576 = vmatmul.mubr.f32.vlgmr.msra.gmra.mxu0 %v6053_v24  ;;  %4312 = vmatmul.mubr.f32.vlgmr.msra.gmra.mxu1 %v6053_v24 }
 0x66f   :  { %1680 = vmatpush1.msra.mxu0 %v5727_v10  ;;  %4315 = vmatpush3.msra.mxu1 %v5818_v46  ;;  %v7257_v10 = vld [vmem:[#allocation32_spill] sm:$0xff] }
 0x670   :  { %1681 = vmatprep.subr.mxu0 %v5731_v62  ;;  %4316 = vmatprep.subr.mxu1 %v7215_v0  ;;  %v7258_v62 = vld [vmem:[#allocation24_spill] sm:$0xff] }
 0x671   :  { %1682 = vmatpush1.msra.mxu0 %v5735_v4  ;;  %4317 = vmatpush3.msra.mxu1 %v5824_v48  ;;  %v7259_v4 = vld [vmem:[#allocation33_spill] sm:$0xff] }
 0x672   :  { %1683 = vmatprep.subr.mxu0 %v5739_v16  ;;  %4318 = vmatprep.subr.mxu1 %v7215_v0  ;;  %v7260_v16 = vld [vmem:[#allocation45_spill] sm:$0xff] }
 0x673   :  { %1684 = vmatpush1.msra.mxu0 %v5743_v25  ;;  %4319 = vmatpush3.msra.mxu1 %v5830_v51  ;;  %v7261_v25 = vld [vmem:[#allocation28_spill] sm:$0xff]  ;;  %v7262_v51 = vld [vmem:[#allocation47_spill] sm:$0xff] }
 0x674   :  { %1685 = vmatprep.subr.mxu0 %v5833_v50  ;;  %4320 = vmatprep.subr.mxu1 %v7215_v0 }
 0x675   :  { %1686 = vmatpush1.msra.mxu0 %v5837_v26  ;;  %4321 = vmatpush3.msra.mxu1 %v5840_v39 }
 0x676   :  { %1687 = vmatprep.subr.mxu0 %v5843_v43  ;;  %4322 = vmatprep.subr.mxu1 %v7215_v0  ;;  %v7263_v43 = vld [vmem:[#allocation43_spill] sm:$0xff] }
 0x677   :  { %1688 = vmatpush1.msra.mxu0 %v5847_v11  ;;  %4323 = vmatpush3.msra.mxu1 %v5850_v49 }
 0x678   :  { %1689 = vmatprep.subr.mxu0 %v5853_v44  ;;  %4324 = vmatprep.subr.mxu1 %v7215_v0 }
 0x679   :  { %1690 = vmatpush1.msra.mxu0 %v5857_v61  ;;  %4325 = vmatpush3.msra.mxu1 %v5860_v42  ;;  %v7264_v61 = vld [vmem:[#allocation44_spill] sm:$0xff] }
 0x67a   :  { %1691 = vmatprep.subr.mxu0 %v5863_v41  ;;  %4326 = vmatprep.subr.mxu1 %v7215_v0 }
 0x67b   :  { %1692 = vmatpush1.msra.mxu0 %v5867_v22  ;;  %4327 = vmatpush3.msra.mxu1 %v5984_v47  ;;  %v1956_v47 = vld [vmem:[#allocation10 + $0x140] sm:$0xff] }
 0x67c   :  { %1693 = vmatprep.subr.mxu0 %v5871_v5  ;;  %4328 = vmatprep.subr.mxu1 %v7215_v0 }
 0x67d   :  { %1694 = vmatpush1.msra.mxu0 %v5875_v54  ;;  %4329 = vmatpush3.msra.mxu1 %v5990_v52  ;;  %v1957_v52 = vld [vmem:[#allocation10 + $0x148] sm:$0xff] }
 0x67e   :  { %1695 = vmatprep.subr.mxu0 %v5879_v57  ;;  %4330 = vmatprep.subr.mxu1 %v7215_v0 }
 0x67f   :  { %1696 = vmatpush1.msra.mxu0 %v5883_v59  ;;  %4331 = vmatpush3.msra.mxu1 %v5996_v18  ;;  %v1955_v18 = vld [vmem:[#allocation10 + $0x138] sm:$0xff] }
 0x680   :  { %1697 = vmatprep.subr.mxu0 %v5887_v32  ;;  %4332 = vmatprep.subr.mxu1 %v7215_v0 }
 0x681   :  { %1698 = vmatpush1.msra.mxu0 %v5891_v60  ;;  %4333 = vmatpush3.msra.mxu1 %v6002_v19  ;;  %v7266_v19 = vld [vmem:[#allocation55_spill] sm:$0xff] }
 0x682   :  { %1699 = vmatprep.subr.mxu0 %v5895_v33  ;;  %4334 = vmatprep.subr.mxu1 %v7215_v0  ;;  %v7265_v33 = vld [vmem:[#allocation54_spill] sm:$0xff] }
 0x683   :  { %1700 = vmatpush1.msra.mxu0 %v5899_v63  ;;  %4335 = vmatpush3.msra.mxu1 %v6008_v21  ;;  %v1953_v21 = vld [vmem:[#allocation10 + $0x128] sm:$0xff] }
 0x684   :  { %1701 = vmatprep.subr.mxu0 %v5903_v34  ;;  %4336 = vmatprep.subr.mxu1 %v7215_v0 }
 0x685   :  { %1702 = vmatpush1.msra.mxu0 %v5907_v1  ;;  %4337 = vmatpush3.msra.mxu1 %v6014_v27  ;;  %v1954_v27 = vld [vmem:[#allocation10 + $0x130] sm:$0xff] }
 0x686   :  { %1703 = vmatprep.subr.mxu0 %v5911_v35  ;;  %4338 = vmatprep.subr.mxu1 %v7215_v0 }
 0x687   :  { %1704 = vmatpush1.msra.mxu0 %v5915_v2  ;;  %4339 = vmatpush3.msra.mxu1 %v6020_v28  ;;  %v1952_v28 = vld [vmem:[#allocation10 + $0x120] sm:$0xff] }
 0x688   :  { %1705 = vmatprep.subr.mxu0 %v5919_v36  ;;  %4340 = vmatprep.subr.mxu1 %v7215_v0 }
 0x689   :  { %1706 = vmatpush1.msra.mxu0 %v5923_v3  ;;  %4341 = vmatpush3.msra.mxu1 %v6026_v29  ;;  %v1950_v29 = vld [vmem:[#allocation10 + $0x110] sm:$0xff] }
 0x68a   :  { %1707 = vmatprep.subr.mxu0 %v5927_v37  ;;  %4342 = vmatprep.subr.mxu1 %v7215_v0  ;;  %v1961_v37 = vld [vmem:[#allocation10 + $0x168] sm:$0xff] }
 0x68b   :  { %1708 = vmatpush1.msra.mxu0 %v7257_v10  ;;  %4343 = vmatpush3.msra.mxu1 %v7258_v62  ;;  %v1939_v10 = vld [vmem:[#allocation10 + $0xb8] sm:$0xff]  ;;  %v1937_v62 = vld [vmem:[#allocation10 + $0xa8] sm:$0xff] }
 0x68c   :  { %1709 = vmatprep.subr.mxu0 %v7259_v4  ;;  %4344 = vmatprep.subr.mxu1 %v7215_v0  ;;  %v1935_v4 = vld [vmem:[#allocation10 + $0x98] sm:$0xff] }
 0x68d   :  { %1710 = vmatpush1.msra.mxu0 %v7260_v16  ;;  %4345 = vmatpush3.msra.mxu1 %v7261_v25  ;;  %v1936_v16 = vld [vmem:[#allocation10 + $0xa0] sm:$0xff]  ;;  %v1934_v25 = vld [vmem:[#allocation10 + $0x90] sm:$0xff] }
 0x68e   :  { %1743 = vmatprep.mubr.f32.mxu0 %v7215_v0  ;;  %4346 = vmatprep.mubr.msk.f32.mxu1 %vm5138_vm0, %v7215_v0 }
 0x68f   :  { %1981 = vmatprep.subr.mxu0 %v1962_v58  ;;  %4349 = vmatprep.subr.mxu1 %v1963_v40  ;;  %v1932_v58 = vld [vmem:[#allocation10 + $0x80] sm:$0xff] }
 0x72e   :  { %v1577_v46 = vpop.f32.mrf.mxu0  ;;  %v1648_v48 = vpop.f32.mrf.mxu1 }
 0x72f   :  { %v1578_v50 = vadd.f32 %v1577_v46, %v7262_v51  ;;  %v1649_v59 = vadd.f32 %v1648_v48, %v5564_v56  ;;  %v1931_v46 = vld [vmem:[#allocation10 + $0x78] sm:$0xff]  ;;  %v1929_v48 = vld [vmem:[#allocation10 + $0x68] sm:$0xff] }
 0x730   :  { %v1579_v26 = vpop.f32.mrf.mxu0  ;;  %v4313_v39 = vpop.f32.mrf.mxu1 }
 0x731   :  { %v1652_v11 = vadd.f32 %v1578_v50, %v7263_v43  ;;  %v1580_v44 = vadd.f32 %v1579_v26, %v5548_v23  ;;  %v1930_v50 = vld [vmem:[#allocation10 + $0x70] sm:$0xff]  ;;  %v1928_v26 = vld [vmem:[#allocation10 + $0x60] sm:$0xff]  ;;  %v1927_v43 = vld [vmem:[#allocation10 + $0x58] sm:$0xff] }
 0x732   :  { %v1926_v39 = vld [vmem:[#allocation10 + $0x50] sm:$0xff] }
 0x733   :  { %v3667_v49 = vmul.f32 -1.442695, %v1652_v11  ;;  %v1659_v42 = vadd.f32 %v1580_v44, %v7264_v61  ;;  %v1925_v11 = vld [vmem:[#allocation10 + $0x48] sm:$0xff]  ;;  %v1924_v44 = vld [vmem:[#allocation10 + $0x40] sm:$0xff]  ;;  %v1922_v61 = vld [vmem:[#allocation10 + $0x30] sm:$0xff] }
 0x735   :  { %4781 = vpow2.f32 %v3667_v49  ;;  %v3668_v41 = vmul.f32 -1.442695, %v1659_v42  ;;  %v1923_v49 = vld [vmem:[#allocation10 + $0x38] sm:$0xff]  ;;  %v1920_v42 = vld [vmem:[#allocation10 + $0x20] sm:$0xff] }
 0x737   :  { %4783 = vpow2.f32 %v3668_v41  ;;  %v1921_v41 = vld [vmem:[#allocation10 + $0x28] sm:$0xff] }
 0x742   :  { %v4782_v22 = vpop.eup %4781 }
 0x743   :  { %v1656_v5 = vadd.f32 1.0, %v4782_v22  ;;  %v1919_v22 = vld [vmem:[#allocation10 + $0x18] sm:$0xff] }
 0x744   :  { %v4784_v54 = vpop.eup %4783 }
 0x745   :  { %4785 = vrcp.f32 %v1656_v5  ;;  %v1663_v57 = vadd.f32 1.0, %v4784_v54  ;;  %v1917_v5 = vld [vmem:[#allocation10 + $0x8] sm:$0xff]  ;;  %v1918_v54 = vld [vmem:[#allocation10 + $0x10] sm:$0xff] }
 0x747   :  { %4787 = vrcp.f32 %v1663_v57  ;;  %v1916_v57 = vld [vmem:[#allocation10] sm:$0xff] }
 0x752   :  { %v4786_v32 = vpop.eup %4785 }
 0x753   :  { %v1666_v60 = vmul.f32 %v4786_v32, %v1649_v59  ;;  %v7267_v59 = vld [vmem:[#allocation22_spill] sm:$0xff]  ;;  %v7268_v32 = vld [vmem:[#allocation27_spill] sm:$0xff] }
 0x754   :  { %v4788_v34 = vpop.eup %4787 }
 0x755   :  { %v1667_v63 = vadd.f32 %v1666_v60, %v7265_v33  ;;  %v1669_v1 = vsub.f32 1.0, %v4788_v34  ;;  %v1671_v36 = vmul.f32 %v4788_v34, %v6053_v24  ;;  %v7269_v60 = vld [vmem:[#allocation23_spill] sm:$0xff]  ;;  %v6156_v33 = vld [vmem:[#allocation12 + $0x170] sm:$0xff] }
 0x756   :  { %7270 = vst [vmem:[#allocation25_spill] sm:$0xff] %v6156_v33  ;;  %v6162_v34 = vld [vmem:[#allocation12 + $0x158] sm:$0xff] }
 0x757   :  { %4789 = vtanh.f32 %v1667_v63  ;;  %v6159_v63 = vld [vmem:[#allocation12 + $0x168] sm:$0xff] }
 0x764   :  { %v4790_v35 = vpop.eup %4789 }
 0x765   :  { %v1670_v2 = vmul.f32 %v4790_v35, %v1669_v1  ;;  %v6171_v1 = vld [vmem:[#allocation12 + $0x138] sm:$0xff]  ;;  %v6174_v35 = vld [vmem:[#allocation12 + $0x128] sm:$0xff] }
 0x767   :  { %v6129_v3 = vadd.f32 %v1671_v36, %v1670_v2  ;;  %v6177_v2 = vld [vmem:[#allocation12 + $0x120] sm:$0xff]  ;;  %v6180_v36 = vld [vmem:[#allocation12 + $0x110] sm:$0xff] }
 0x769   :  { %1744 = vmatmul.mubr.f32.vlgmr.msra.gmra.mxu0 %v6129_v3  ;;  %4347 = vmatmul.mubr.f32.vlgmr.msra.gmra.mxu1 %v6129_v3 }
 0x76a   :  { %1982 = vmatpush1.msra.mxu0 %v1961_v37  ;;  %4350 = vmatpush3.msra.mxu1 %v1963_v40  ;;  %v1933_v40 = vld [vmem:[#allocation10 + $0x88] sm:$0xff] }
 0x76b   :  { %1983 = vmatprep.subr.mxu0 %v1959_v6  ;;  %4351 = vmatprep.subr.mxu1 %v1960_v38  ;;  %v6183_v37 = vld [vmem:[#allocation12 + $0x108] sm:$0xff]  ;;  %v6186_v6 = vld [vmem:[#allocation12 + $0xf8] sm:$0xff] }
 0x76c   :  { %4381 = vmatprep.mubr.f32.mxu1 %v7266_v19  ;;  %1984 = vmatpush1.msra.mxu0 %v1958_v7  ;;  %v6192_v7 = vld [vmem:[#allocation12 + $0xe0] sm:$0xff] }
 0x76d   :  { %4352 = vmatpush3.msra.mxu1 %v1960_v38  ;;  %1985 = vmatprep.subr.mxu0 %v1956_v47  ;;  %v6189_v38 = vld [vmem:[#allocation12 + $0xf0] sm:$0xff]  ;;  %v6195_v47 = vld [vmem:[#allocation12 + $0xd8] sm:$0xff] }
 0x76e   :  { %4353 = vmatprep.subr.mxu1 %v1957_v52  ;;  %1986 = vmatpush1.msra.mxu0 %v1955_v18  ;;  %v6201_v18 = vld [vmem:[#allocation12 + $0xc0] sm:$0xff] }
 0x76f   :  { %4354 = vmatpush3.msra.mxu1 %v1957_v52  ;;  %1987 = vmatprep.subr.mxu0 %v1953_v21  ;;  %v6198_v52 = vld [vmem:[#allocation12 + $0xc8] sm:$0xff] }
 0x770   :  { %4355 = vmatprep.subr.mxu1 %v1954_v27  ;;  %1988 = vmatpush1.msra.mxu0 %v1952_v28  ;;  %v6207_v21 = vld [vmem:[#allocation12 + $0xa8] sm:$0xff]  ;;  %v6213_v28 = vld [vmem:[#allocation12 + $0x90] sm:$0xff] }
 0x771   :  { %4356 = vmatpush3.msra.mxu1 %v1954_v27  ;;  %1989 = vmatprep.subr.mxu0 %v1950_v29  ;;  %v6210_v27 = vld [vmem:[#allocation12 + $0x98] sm:$0xff]  ;;  %v6216_v29 = vld [vmem:[#allocation12 + $0x80] sm:$0xff] }
 0x772   :  { %4357 = vmatprep.subr.mxu1 %v1951_v30  ;;  %1990 = vmatpush1.msra.mxu0 %v1949_v31  ;;  %v6222_v31 = vld [vmem:[#allocation12 + $0x68] sm:$0xff] }
 0x773   :  { %4358 = vmatpush3.msra.mxu1 %v1951_v30  ;;  %1991 = vmatprep.subr.mxu0 %v1947_v45  ;;  %v6219_v30 = vld [vmem:[#allocation12 + $0x78] sm:$0xff]  ;;  %v6225_v45 = vld [vmem:[#allocation12 + $0x60] sm:$0xff] }
 0x774   :  { %4359 = vmatprep.subr.mxu1 %v1948_v53  ;;  %1992 = vmatpush1.msra.mxu0 %v1946_v20  ;;  %v6231_v20 = vld [vmem:[#allocation12 + $0x48] sm:$0xff] }
 0x775   :  { %4360 = vmatpush3.msra.mxu1 %v1948_v53  ;;  %1993 = vmatprep.subr.mxu0 %v1944_v9  ;;  %v6228_v53 = vld [vmem:[#allocation12 + $0x50] sm:$0xff]  ;;  %v6234_v9 = vld [vmem:[#allocation12 + $0x38] sm:$0xff] }
 0x776   :  { %4361 = vmatprep.subr.mxu1 %v1945_v8  ;;  %1994 = vmatpush1.msra.mxu0 %v1943_v13  ;;  %v6240_v13 = vld [vmem:[#allocation12 + $0x20] sm:$0xff] }
 0x777   :  { %4362 = vmatpush3.msra.mxu1 %v1945_v8  ;;  %1995 = vmatprep.subr.mxu0 %v1941_v12  ;;  %v6237_v8 = vld [vmem:[#allocation12 + $0x30] sm:$0xff]  ;;  %7272 = vst [vmem:[#allocation29_spill] sm:$0xff] %v6240_v13  ;;  %v6242_v12 = vld [vmem:[#allocation12 + $0x18] sm:$0xff] }
 0x778   :  { %4363 = vmatprep.subr.mxu1 %v1942_v14  ;;  %1996 = vmatpush1.msra.mxu0 %v1940_v15  ;;  %7271 = vst [vmem:[#allocation26_spill] sm:$0xff] %v6237_v8  ;;  %7273 = vst [vmem:[#allocation21_spill] sm:$0xff] %v6242_v12  ;;  %v6247_v15 = vld [vmem:[#allocation12] sm:$0xff] }
 0x779   :  { %4364 = vmatpush3.msra.mxu1 %v1942_v14  ;;  %1997 = vmatprep.subr.mxu0 %v1938_v55  ;;  %v6244_v14 = vld [vmem:[#allocation12 + $0x8] sm:$0xff]  ;;  %7275 = vst [vmem:[#allocation35_spill] sm:$0xff] %v6247_v15  ;;  %v6251_v55 = vld [vmem:[#allocation12 + $0x178] sm:$0xff] }
 0x77a   :  { %4365 = vmatprep.subr.mxu1 %v1939_v10  ;;  %1998 = vmatpush1.msra.mxu0 %v1937_v62  ;;  %7274 = vst [vmem:[#allocation34_spill] sm:$0xff] %v6244_v14  ;;  %v6258_v62 = vld [vmem:[#allocation12 + $0x148] sm:$0xff] }
 0x77b   :  { %4366 = vmatpush3.msra.mxu1 %v1939_v10  ;;  %1999 = vmatprep.subr.mxu0 %v1935_v4  ;;  %v6253_v10 = vld [vmem:[#allocation12 + $0x160] sm:$0xff]  ;;  %v6263_v4 = vld [vmem:[#allocation12 + $0x130] sm:$0xff] }
 0x77c   :  { %4367 = vmatprep.subr.mxu1 %v1936_v16  ;;  %2000 = vmatpush1.msra.mxu0 %v1934_v25  ;;  %v6271_v25 = vld [vmem:[#allocation12 + $0x100] sm:$0xff] }
 0x77d   :  { %4368 = vmatpush3.msra.mxu1 %v1936_v16  ;;  %2001 = vmatprep.subr.mxu0 %v1932_v58  ;;  %v6267_v16 = vld [vmem:[#allocation12 + $0x118] sm:$0xff]  ;;  %v6275_v58 = vld [vmem:[#allocation12 + $0xe8] sm:$0xff] }
 0x77e   :  { %4369 = vmatprep.subr.mxu1 %v1933_v40  ;;  %2002 = vmatpush1.msra.mxu0 %v1931_v46  ;;  %v6283_v46 = vld [vmem:[#allocation12 + $0xb8] sm:$0xff] }
 0x77f   :  { %4370 = vmatpush3.msra.mxu1 %v1933_v40  ;;  %2003 = vmatprep.subr.mxu0 %v1929_v48  ;;  %v6279_v40 = vld [vmem:[#allocation12 + $0xd0] sm:$0xff]  ;;  %v6287_v48 = vld [vmem:[#allocation12 + $0xa0] sm:$0xff] }
 0x780   :  { %4371 = vmatprep.subr.mxu1 %v1930_v50  ;;  %2004 = vmatpush1.msra.mxu0 %v1928_v26  ;;  %v6295_v26 = vld [vmem:[#allocation12 + $0x70] sm:$0xff] }
 0x781   :  { %4372 = vmatpush3.msra.mxu1 %v1930_v50  ;;  %2005 = vmatprep.subr.mxu0 %v1926_v39  ;;  %v6291_v50 = vld [vmem:[#allocation12 + $0x88] sm:$0xff]  ;;  %v6299_v39 = vld [vmem:[#allocation12 + $0x58] sm:$0xff] }
 0x782   :  { %4373 = vmatprep.subr.mxu1 %v1927_v43  ;;  %2006 = vmatpush1.msra.mxu0 %v1925_v11  ;;  %v6307_v11 = vld [vmem:[#allocation12 + $0x28] sm:$0xff] }
 0x783   :  { %4374 = vmatpush3.msra.mxu1 %v1927_v43  ;;  %2007 = vmatprep.subr.mxu0 %v1923_v49  ;;  %v6303_v43 = vld [vmem:[#allocation12 + $0x40] sm:$0xff]  ;;  %7277 = vst [vmem:[#allocation36_spill] sm:$0xff] %v6307_v11  ;;  %v6311_v49 = vld [vmem:[#allocation12 + $0x10] sm:$0xff] }
 0x784   :  { %4375 = vmatprep.subr.mxu1 %v1924_v44  ;;  %2008 = vmatpush1.msra.mxu0 %v1922_v61  ;;  %7276 = vst [vmem:[#allocation50_spill] sm:$0xff] %v6303_v43  ;;  %7278 = vst [vmem:[#allocation37_spill] sm:$0xff] %v6311_v49 }
 0x785   :  { %4376 = vmatpush3.msra.mxu1 %v1924_v44  ;;  %2009 = vmatprep.subr.mxu0 %v1920_v42 }
 0x786   :  { %4377 = vmatprep.subr.mxu1 %v1921_v41  ;;  %2010 = vmatpush1.msra.mxu0 %v1919_v22 }
 0x787   :  { %4378 = vmatpush3.msra.mxu1 %v1921_v41  ;;  %2011 = vmatprep.subr.mxu0 %v1917_v5  ;;  %v7279_v5 = vld [vmem:[#allocation46_spill] sm:$0xff] }
 0x788   :  { %4379 = vmatprep.subr.mxu1 %v1918_v54  ;;  %2012 = vmatpush1.msra.mxu0 %v1916_v57 }
 0x789   :  { %2045 = vmatprep.mubr.f32.mxu0 %v7215_v0  ;;  %4380 = vmatpush3.msra.mxu1 %v1918_v54 }
 0x78a   :  { %2046 = vmatmul.mubr.f32.vlgmr.msra.gmra.mxu0 %v7266_v19  ;;  %4382 = vmatmul.mubr.f32.vlgmr.msra.gmra.mxu1 %v7267_v59  ;;  %v6204_v19 = vld [vmem:[#allocation12 + $0xb0] sm:$0xff] }
 0x78b   :  { %4384 = vmatprep.mubr.f32.mxu1 %v7268_v32  ;;  %2051 = vmatprep.mubr.f32.mxu0 %v7215_v0 }
 0x78c   :  { %4393 = vmatprep.subr.mxu1 %v7215_v0  ;;  %2226 = vmatprep.subr.mxu0 %v6156_v33 }
 0x78d   :  { %2227 = vmatpush1.msra.mxu0 %v6159_v63  ;;  %4394 = vmatpush3.msra.mxu1 %v6251_v55 }
 0x78e   :  { %2052 = vmatmul.mubr.f32.gmra.mxu0 %v7267_v59  ;;  %4385 = vmatmul.mubr.f32.gmra.mxu1 %v7269_v60 }
 0x78f   :  { %4387 = vmatprep.mubr.f32.mxu1 %v5955_v17  ;;  %2057 = vmatprep.mubr.f32.mxu0 %v7215_v0 }
 0x790   :  { %2228 = vmatprep.subr.mxu0 %v6162_v34  ;;  %4395 = vmatprep.subr.mxu1 %v7215_v0 }
 0x791   :  { %4396 = vmatpush3.msra.mxu1 %v6253_v10 }
 0x792   :  { %2058 = vmatmul.mubr.f32.gmra.mxu0 %v7268_v32  ;;  %4388 = vmatmul.mubr.f32.gmra.mxu1 %v6053_v24  ;;  %v7280_v32 = vld [vmem:[#allocation48_spill] sm:$0xff] }
 0x793   :  { %4390 = vmatprep.mubr.f32.mxu1 %v6129_v3  ;;  %2063 = vmatprep.mubr.f32.mxu0 %v7215_v0 }
 0x794   :  { %4397 = vmatprep.subr.mxu1 %v7215_v0 }
 0x795   :  { %4398 = vmatpush3.msra.mxu1 %v6258_v62 }
 0x796   :  { %2064 = vmatmul.mubr.f32.gmra.mxu0 %v7269_v60  ;;  %4399 = vmatprep.subr.mxu1 %v7215_v0 }
 0x797   :  { %2069 = vmatprep.mubr.f32.mxu0 %v7215_v0  ;;  %4400 = vmatpush3.msra.mxu1 %v6263_v4 }
 0x798   :  { %4401 = vmatprep.subr.mxu1 %v7215_v0 }
 0x799   :  { %4402 = vmatpush3.msra.mxu1 %v6267_v16 }
 0x79a   :  { %2070 = vmatmul.mubr.f32.gmra.mxu0 %v5955_v17  ;;  %v6165_v17 = vld [vmem:[#allocation12 + $0x150] sm:$0xff]  ;;  %4403 = vmatprep.subr.mxu1 %v7215_v0 }
 0x79b   :  { %2075 = vmatprep.mubr.f32.mxu0 %v7215_v0  ;;  %2229 = vmatpush1.msra.mxu0 %v6165_v17 }
 0x79c   :  { %4404 = vmatpush3.msra.mxu1 %v6271_v25 }
 0x79d   :  { %4405 = vmatprep.subr.mxu1 %v7215_v0 }
 0x79e   :  { %2076 = vmatmul.mubr.f32.gmra.mxu0 %v6053_v24  ;;  %v6168_v24 = vld [vmem:[#allocation12 + $0x140] sm:$0xff]  ;;  %4406 = vmatpush3.msra.mxu1 %v6275_v58 }
 0x79f   :  { %2081 = vmatprep.mubr.f32.mxu0 %v7215_v0  ;;  %2230 = vmatprep.subr.mxu0 %v6168_v24 }
 0x7a0   :  { %2231 = vmatpush1.msra.mxu0 %v6171_v1  ;;  %4407 = vmatprep.subr.mxu1 %v7215_v0 }
 0x7a1   :  { %2232 = vmatprep.subr.mxu0 %v6174_v35  ;;  %4408 = vmatpush3.msra.mxu1 %v6279_v40 }
 0x7a2   :  { %2082 = vmatmul.mubr.f32.gmra.mxu0 %v6129_v3  ;;  %4409 = vmatprep.subr.mxu1 %v7215_v0 }
 0x7a3   :  { %2087 = vmatprep.mubr.f32.mxu0 %v7215_v0  ;;  %2233 = vmatpush1.msra.mxu0 %v6177_v2 }
 0x7a4   :  { %2234 = vmatprep.subr.mxu0 %v6180_v36  ;;  %4410 = vmatpush3.msra.mxu1 %v6283_v46 }
 0x7a5   :  { %2235 = vmatpush1.msra.mxu0 %v6183_v37  ;;  %4411 = vmatprep.subr.mxu1 %v7215_v0 }
 0x7a6   :  { %2236 = vmatprep.subr.mxu0 %v6186_v6  ;;  %4412 = vmatpush3.msra.mxu1 %v6287_v48 }
 0x7a7   :  { %2237 = vmatpush1.msra.mxu0 %v6189_v38  ;;  %4413 = vmatprep.subr.mxu1 %v7215_v0 }
 0x7a8   :  { %2238 = vmatprep.subr.mxu0 %v6192_v7  ;;  %4414 = vmatpush3.msra.mxu1 %v6291_v50 }
 0x7a9   :  { %2239 = vmatpush1.msra.mxu0 %v6195_v47  ;;  %4415 = vmatprep.subr.mxu1 %v7215_v0 }
 0x7aa   :  { %2240 = vmatprep.subr.mxu0 %v6198_v52  ;;  %4416 = vmatpush3.msra.mxu1 %v6295_v26 }
 0x7ab   :  { %2241 = vmatpush1.msra.mxu0 %v6201_v18  ;;  %4417 = vmatprep.subr.mxu1 %v7215_v0 }
 0x7ac   :  { %2242 = vmatprep.subr.mxu0 %v6204_v19  ;;  %4418 = vmatpush3.msra.mxu1 %v6299_v39 }
 0x7ad   :  { %2243 = vmatpush1.msra.mxu0 %v6207_v21  ;;  %4419 = vmatprep.subr.mxu1 %v7215_v0 }
 0x7ae   :  { %2244 = vmatprep.subr.mxu0 %v6210_v27  ;;  %4420 = vmatpush3.msra.mxu1 %v6303_v43 }
 0x7af   :  { %2245 = vmatpush1.msra.mxu0 %v6213_v28  ;;  %4421 = vmatprep.subr.mxu1 %v7215_v0 }
 0x7b0   :  { %2246 = vmatprep.subr.mxu0 %v6216_v29  ;;  %4422 = vmatpush3.msra.mxu1 %v6307_v11 }
 0x7b1   :  { %2247 = vmatpush1.msra.mxu0 %v6219_v30  ;;  %4423 = vmatprep.subr.mxu1 %v7215_v0 }
 0x7b2   :  { %2248 = vmatprep.subr.mxu0 %v6222_v31  ;;  %4424 = vmatpush3.msra.mxu1 %v6311_v49 }
 0x7b3   :  { %2249 = vmatpush1.msra.mxu0 %v6225_v45  ;;  %4428 = vmatprep.subr.mxu1 %v7215_v0 }
 0x7b4   :  { %2250 = vmatprep.subr.mxu0 %v6228_v53 }
 0x7b5   :  { %2251 = vmatpush1.msra.mxu0 %v6231_v20 }
 0x7b6   :  { %2252 = vmatprep.subr.mxu0 %v6234_v9 }
 0x7b7   :  { %2253 = vmatpush1.msra.mxu0 %v6237_v8 }
 0x7b8   :  { %2254 = vmatprep.subr.mxu0 %v6240_v13 }
 0x7b9   :  { %2255 = vmatpush1.msra.mxu0 %v6242_v12 }
 0x7ba   :  { %2256 = vmatprep.subr.mxu0 %v6244_v14 }
 0x7bb   :  { %2257 = vmatpush1.msra.mxu0 %v6247_v15 }
 0x7bc   :  { %2391 = vmatprep.subr.mxu0 %v6156_v33 }
 0x829   :  { %v1745_v44 = vpop.f32.mrf.mxu0  ;;  %v1816_v61 = vpop.f32.mrf.mxu1 }
 0x82a   :  { %v1746_v42 = vadd.f32 %v1745_v44, %v7262_v51  ;;  %v1817_v12 = vadd.f32 %v1816_v61, %v5564_v56  ;;  %v7282_v56 = vld [vmem:[#allocation21_spill] sm:$0xff] }
 0x82b   :  { %v1747_v41 = vpop.f32.mrf.mxu0  ;;  %v4348_v22 = vpop.f32.mrf.mxu1 }
 0x82c   :  { %v1820_v54 = vadd.f32 %v1746_v42, %v7279_v5  ;;  %v1748_v59 = vadd.f32 %v1747_v41, %v5548_v23  ;;  %v7281_v22 = vld [vmem:[#allocation53_spill] sm:$0xff] }
 0x82e   :  { %v3669_v57 = vmul.f32 -1.442695, %v1820_v54  ;;  %v1827_v60 = vadd.f32 %v1748_v59, %v7280_v32 }
 0x830   :  { %4791 = vpow2.f32 %v3669_v57  ;;  %v3670_v33 = vmul.f32 -1.442695, %v1827_v60 }
 0x832   :  { %4793 = vpow2.f32 %v3670_v33 }
 0x83d   :  { %v4792_v15 = vpop.eup %4791 }
 0x83e   :  { %v1824_v49 = vadd.f32 1.0, %v4792_v15  ;;  %v7286_v15 = vld [vmem:[#allocation37_spill] sm:$0xff] }
 0x83f   :  { %v4794_v14 = vpop.eup %4793 }
 0x840   :  { %4795 = vrcp.f32 %v1824_v49  ;;  %v1831_v11 = vadd.f32 1.0, %v4794_v14  ;;  %v7285_v14 = vld [vmem:[#allocation35_spill] sm:$0xff] }
 0x842   :  { %4797 = vrcp.f32 %v1831_v11  ;;  %v7287_v11 = vld [vmem:[#allocation25_spill] sm:$0xff] }
 0x84a   :  { %v2047_v49 = vpop.f32.mrf.mxu0 }
 0x84c   :  { %v2049_v61 = vpop.f32.mrf.mxu0 }
 0x84d   :  { %v4796_v51 = vpop.eup %4795 }
 0x84e   :  { %v1834_v44 = vmul.f32 %v4796_v51, %v1817_v12  ;;  %v7284_v12 = vld [vmem:[#allocation34_spill] sm:$0xff]  ;;  %v6396_v59 = vpop.f32.mrf.mxu0 }
 0x84f   :  { %v4798_v5 = vpop.eup %4797  ;;  %7288 = vst [vmem:[#allocation49_spill] sm:$0xff] %v6396_v59 }
 0x850   :  { %v1835_v42 = vadd.f32 %v1834_v44, %v7281_v22  ;;  %v1837_v23 = vsub.f32 1.0, %v4798_v5  ;;  %v1839_v57 = vmul.f32 %v4798_v5, %v6129_v3  ;;  %v7283_v3 = vld [vmem:[#allocation36_spill] sm:$0xff]  ;;  %v6398_v32 = vpop.f32.mrf.mxu0 }
 0x851   :  { %7289 = vst [vmem:[#allocation38_spill] sm:$0xff] %v6398_v32 }
 0x852   :  { %4799 = vtanh.f32 %v1835_v42  ;;  %v6400_v60 = vpop.f32.mrf.mxu0  ;;  %v6408_v42 = vpop.f32.mrf.mxu1 }
 0x853   :  { %7290 = vst [vmem:[#allocation39_spill] sm:$0xff] %v6400_v60  ;;  %7294 = vst [vmem:[#allocation51_spill] sm:$0xff] %v6408_v42 }
 0x854   :  { %v6402_v51 = vpop.f32.mrf.mxu0 }
 0x855   :  { %7291 = vst [vmem:[#allocation52_spill] sm:$0xff] %v6402_v51 }
 0x856   :  { %v6404_v44 = vpop.f32.mrf.mxu0 }
 0x857   :  { %7292 = vst [vmem:[#allocation41_spill] sm:$0xff] %v6404_v44 }
 0x858   :  { %v6406_v22 = vpop.f32.mrf.mxu0 }
 0x859   :  { %7293 = vst [vmem:[#allocation42_spill] sm:$0xff] %v6406_v22  ;;  %v1964_v22 = vld [vmem:[%s7093_s7] sm:$0x7] }
 0x85a   :  { %v6410_v5 = vpop.f32.mrf.mxu0 }
 0x85b   :  { %7295 = vst [vmem:[#allocation32_spill] sm:$0xff] %v6410_v5 }
 0x85f   :  { %v4800_v41 = vpop.eup %4799 }
 0x860   :  { %v1838_v54 = vmul.f32 %v4800_v41, %v1837_v23  ;;  %v2160_v23 = vpop.f32.mrf.mxu1  ;;  %v6412_v41 = vpop.f32.mrf.mxu0 }
 0x861   :  { %7296 = vst [vmem:[#allocation24_spill] sm:$0xff] %v6412_v41 }
 0x862   :  { %v1840_v33 = vadd.f32 %v1839_v57, %v1838_v54  ;;  %v6414_v54 = vpop.f32.mrf.mxu1  ;;  %v6416_v57 = vpop.f32.mrf.mxu0 }
 0x863   :  { %7297 = vst [vmem:[#allocation33_spill] sm:$0xff] %v6414_v54  ;;  %7298 = vst [vmem:[#allocation45_spill] sm:$0xff] %v6416_v57  ;;  %v1891_v57 = vld [vmem:[%s7094_s8] sm:$0x7] }
 0x864   :  { %2088 = vmatmul.mubr.f32.gmra.mxu0 %v1840_v33  ;;  %4391 = vmatmul.mubr.f32.gmra.mxu1 %v1840_v33  ;;  %v6418_v33 = vpop.f32.mrf.mxu1  ;;  %v6420_v60 = vpop.f32.mrf.mxu0 }
 0x865   :  { %2290 = vmatprep.mubr.f32.mxu0 %v7215_v0  ;;  %4425 = vmatprep.mubr.msk.f32.mxu1 %vm5138_vm0, %v7215_v0  ;;  %7299 = vst [vmem:[#allocation28_spill] sm:$0xff] %v6418_v33  ;;  %7300 = vst [vmem:[#allocation47_spill] sm:$0xff] %v6420_v60  ;;  %v7307_v60 = vld [vmem:[#allocation30_spill] sm:$0xff] }
 0x866   :  { %v6422_v51 = vpop.f32.mrf.mxu1  ;;  %v6424_v44 = vpop.f32.mrf.mxu0 }
 0x867   :  { %7301 = vst [vmem:[#allocation43_spill] sm:$0xff] %v6422_v51  ;;  %7302 = vst [vmem:[#allocation44_spill] sm:$0xff] %v6424_v44  ;;  %v6441_v51 = vrot.slane %v1964_v22, %v7307_v60  ;;  %v6444_v44 = vrot.slane %v1891_v57, %v7307_v60 }
 0x868   :  { %2291 = vmatmul.mubr.f32.vlgmr.msra.gmra.mxu0 %v7215_v0  ;;  %4426 = vmatmul.mubr.f32.vlgmr.msra.gmra.mxu1 %v7215_v0  ;;  %v6429_v5 = vpop.f32.mrf.mxu1  ;;  %v6431_v42 = vpop.f32.mrf.mxu0 }
 0x869   :  { %2392 = vmatpush1.msra.mxu0 %v6159_v63  ;;  %4429 = vmatpush3.msra.mxu1 %v6251_v55  ;;  %7303 = vst [vmem:[#allocation54_spill] sm:$0xff] %v6429_v5  ;;  %7304 = vst [vmem:[#allocation55_spill] sm:$0xff] %v6431_v42  ;;  %v2048_v59 = vadd.f32 %v2047_v49, %v6441_v51 }
 0x86a   :  { %2393 = vmatprep.subr.mxu0 %v6162_v34  ;;  %4430 = vmatprep.subr.mxu1 %v7215_v0  ;;  %7308 = vst [vmem:[#allocation23_spill] sm:$0xff] %v6441_v51  ;;  %7309 = vst [vmem:[#allocation46_spill] sm:$0xff] %v6444_v44 }
 0x86b   :  { %2394 = vmatpush1.msra.mxu0 %v6165_v17  ;;  %4431 = vmatpush3.msra.mxu1 %v6253_v10 }
 0x86c   :  { %2395 = vmatprep.subr.mxu0 %v6168_v24  ;;  %4432 = vmatprep.subr.mxu1 %v7215_v0 }
 0x86d   :  { %2396 = vmatpush1.msra.mxu0 %v6171_v1  ;;  %4433 = vmatpush3.msra.mxu1 %v6258_v62 }
 0x86e   :  { %2397 = vmatprep.subr.mxu0 %v6174_v35  ;;  %4434 = vmatprep.subr.mxu1 %v7215_v0 }
 0x86f   :  { %2398 = vmatpush1.msra.mxu0 %v6177_v2  ;;  %4435 = vmatpush3.msra.mxu1 %v6263_v4 }
 0x870   :  { %2399 = vmatprep.subr.mxu0 %v6180_v36  ;;  %4436 = vmatprep.subr.mxu1 %v7215_v0 }
 0x871   :  { %2400 = vmatpush1.msra.mxu0 %v6183_v37  ;;  %4437 = vmatpush3.msra.mxu1 %v6267_v16 }
 0x872   :  { %2401 = vmatprep.subr.mxu0 %v6186_v6  ;;  %4438 = vmatprep.subr.mxu1 %v7215_v0 }
 0x873   :  { %2402 = vmatpush1.msra.mxu0 %v6189_v38  ;;  %4439 = vmatpush3.msra.mxu1 %v6271_v25 }
 0x874   :  { %2403 = vmatprep.subr.mxu0 %v6192_v7  ;;  %4440 = vmatprep.subr.mxu1 %v7215_v0 }
 0x875   :  { %2404 = vmatpush1.msra.mxu0 %v6195_v47  ;;  %4441 = vmatpush3.msra.mxu1 %v6275_v58 }
 0x876   :  { %2405 = vmatprep.subr.mxu0 %v6198_v52  ;;  %4442 = vmatprep.subr.mxu1 %v7215_v0 }
 0x877   :  { %2406 = vmatpush1.msra.mxu0 %v6201_v18  ;;  %4443 = vmatpush3.msra.mxu1 %v6279_v40 }
 0x878   :  { %2407 = vmatprep.subr.mxu0 %v6204_v19  ;;  %4444 = vmatprep.subr.mxu1 %v7215_v0 }
 0x879   :  { %2408 = vmatpush1.msra.mxu0 %v6207_v21  ;;  %4445 = vmatpush3.msra.mxu1 %v6283_v46 }
 0x87a   :  { %2409 = vmatprep.subr.mxu0 %v6210_v27  ;;  %4446 = vmatprep.subr.mxu1 %v7215_v0 }
 0x87b   :  { %2410 = vmatpush1.msra.mxu0 %v6213_v28  ;;  %4447 = vmatpush3.msra.mxu1 %v6287_v48 }
 0x87c   :  { %2411 = vmatprep.subr.mxu0 %v6216_v29  ;;  %4448 = vmatprep.subr.mxu1 %v7215_v0 }
 0x87d   :  { %2412 = vmatpush1.msra.mxu0 %v6219_v30  ;;  %4449 = vmatpush3.msra.mxu1 %v6291_v50 }
 0x87e   :  { %2413 = vmatprep.subr.mxu0 %v6222_v31  ;;  %4450 = vmatprep.subr.mxu1 %v7215_v0 }
 0x87f   :  { %2414 = vmatpush1.msra.mxu0 %v6225_v45  ;;  %4451 = vmatpush3.msra.mxu1 %v6295_v26 }
 0x880   :  { %2415 = vmatprep.subr.mxu0 %v6228_v53  ;;  %4452 = vmatprep.subr.mxu1 %v7215_v0 }
 0x881   :  { %2416 = vmatpush1.msra.mxu0 %v6231_v20  ;;  %4453 = vmatpush3.msra.mxu1 %v6299_v39 }
 0x882   :  { %2417 = vmatprep.subr.mxu0 %v6234_v9  ;;  %4454 = vmatprep.subr.mxu1 %v7215_v0 }
 0x883   :  { %2418 = vmatpush1.msra.mxu0 %v6237_v8  ;;  %4455 = vmatpush3.msra.mxu1 %v6303_v43 }
 0x884   :  { %2419 = vmatprep.subr.mxu0 %v6240_v13  ;;  %4456 = vmatprep.subr.mxu1 %v7215_v0 }
 0x885   :  { %2420 = vmatpush1.msra.mxu0 %v7282_v56  ;;  %4457 = vmatpush3.msra.mxu1 %v7283_v3 }
 0x886   :  { %2421 = vmatprep.subr.mxu0 %v7284_v12  ;;  %4458 = vmatprep.subr.mxu1 %v7215_v0 }
 0x887   :  { %2422 = vmatpush1.msra.mxu0 %v7285_v14  ;;  %2455 = vmatprep.mubr.f32.mxu0 %v7215_v0 }
 0x888   :  { %4459 = vmatpush3.msra.mxu1 %v7286_v15  ;;  %4460 = vmatprep.mubr.msk.f32.mxu1 %vm5138_vm0, %v7215_v0  ;;  %v7312_v15 = vld [vmem:[#allocation31_spill] sm:$0xff] }
 0x889   :  { %2556 = vmatprep.subr.mxu0 %v7287_v11  ;;  %4463 = vmatprep.subr.mxu1 %v7215_v0  ;;  %v6456_v12 = vrot.slane %v1964_v22, %v7312_v15 }
 0x924   :  { %v6436_v41 = vpop.f32.mrf.mxu0  ;;  %v6438_v54 = vpop.f32.mrf.mxu1 }
 0x925   :  { %7305 = vst [vmem:[#allocation22_spill] sm:$0xff] %v6436_v41  ;;  %7306 = vst [vmem:[#allocation27_spill] sm:$0xff] %v6438_v54  ;;  %v6453_v41 = vrot.slane %v1891_v57, %v7312_v15 }
 0x926   :  { %v6446_v33 = vpop.f32.mrf.mxu0  ;;  %v6448_v32 = vpop.f32.mrf.mxu1 }
 0x927   :  { %7310 = vst [vmem:[#allocation48_spill] sm:$0xff] %v6446_v33  ;;  %7311 = vst [vmem:[#allocation53_spill] sm:$0xff] %v6448_v32  ;;  %v2050_v32 = vadd.f32 %v2049_v61, %v6456_v12 }
 0x928   :  { %v2292_v5 = vpop.f32.mrf.mxu0  ;;  %v2363_v42 = vpop.f32.mrf.mxu1 }
 0x929   :  { %v2293_v11 = vadd.f32 %v2292_v5, %v6444_v44  ;;  %v7313_v44 = vld [vmem:[#allocation40_spill] sm:$0xff] }
 0x92a   :  { %v2294_v54 = vpop.f32.mrf.mxu0  ;;  %v4427_v14 = vpop.f32.mrf.mxu1  ;;  %v6461_v51 = vrot.slane %v1891_v57, %v7313_v44 }
 0x92b   :  { %v2367_v60 = vadd.f32 %v2293_v11, %v2048_v59  ;;  %v2295_v33 = vadd.f32 %v2294_v54, %v6453_v41  ;;  %v6465_v11 = vrot.slane %v1964_v22, %v7313_v44  ;;  %v7315_v44 = vld [vmem:[#allocation29_spill] sm:$0xff] }
 0x92c   :  { %v2364_v15 = vadd.f32 %v2363_v42, %v6461_v51  ;;  %v7316_v22 = vld [vmem:[#allocation21_spill] sm:$0xff]  ;;  %v7317_v42 = vld [vmem:[#allocation36_spill] sm:$0xff] }
 0x92d   :  { %v3671_v3 = vmul.f32 -1.442695, %v2367_v60  ;;  %v2374_v56 = vadd.f32 %v2295_v33, %v2050_v32  ;;  %v2161_v61 = vadd.f32 %v2160_v23, %v6465_v11  ;;  %v7318_v23 = vld [vmem:[#allocation34_spill] sm:$0xff] }
 0x92f   :  { %4801 = vpow2.f32 %v3671_v3  ;;  %v3672_v13 = vmul.f32 -1.442695, %v2374_v56 }
 0x931   :  { %4803 = vpow2.f32 %v3672_v13 }
 0x93c   :  { %v4802_v49 = vpop.eup %4801 }
 0x93d   :  { %v2371_v5 = vadd.f32 1.0, %v4802_v49  ;;  %v7319_v49 = vld [vmem:[#allocation35_spill] sm:$0xff] }
 0x93e   :  { %v4804_v14 = vpop.eup %4803 }
 0x93f   :  { %4805 = vrcp.f32 %v2371_v5  ;;  %v2378_v43 = vadd.f32 1.0, %v4804_v14  ;;  %v7320_v5 = vld [vmem:[#allocation37_spill] sm:$0xff] }
 0x940   :  { %v7321_v14 = vld [vmem:[#allocation25_spill] sm:$0xff] }
 0x941   :  { %4807 = vrcp.f32 %v2378_v43  ;;  %v7314_v43 = vld [vmem:[#allocation50_spill] sm:$0xff] }
 0x94c   :  { %v4806_v59 = vpop.eup %4805 }
 0x94d   :  { %v2381_v3 = vmul.f32 %v4806_v59, %v2364_v15 }
 0x94e   :  { %v4808_v13 = vpop.eup %4807 }
 0x94f   :  { %v2382_v56 = vadd.f32 %v2381_v3, %v2161_v61  ;;  %v2384_v32 = vsub.f32 1.0, %v4808_v13  ;;  %v2386_v57 = vmul.f32 0.0, %v4808_v13  ;;  %v7322_v61 = vld [vmem:[#allocation23_spill] sm:$0xff]  ;;  %v7323_v3 = vld [vmem:[#allocation49_spill] sm:$0xff]  ;;  %v7324_v13 = vld [vmem:[#allocation46_spill] sm:$0xff] }
 0x951   :  { %4809 = vtanh.f32 %v2382_v56  ;;  %v2054_v56 = vadd.f32 %v7323_v3, %v7322_v61 }
 0x95e   :  { %v4810_v54 = vpop.eup %4809 }
 0x95f   :  { %v2385_v33 = vmul.f32 %v4810_v54, %v2384_v32 }
 0x961   :  { %v6468_v60 = vadd.f32 %v2386_v57, %v2385_v33 }
 0x963   :  { %2456 = vmatmul.mubr.f32.vlgmr.msra.gmra.mxu0 %v6468_v60  ;;  %4461 = vmatmul.mubr.f32.vlgmr.msra.gmra.mxu1 %v6468_v60 }
 0x964   :  { %2557 = vmatpush1.msra.mxu0 %v6159_v63  ;;  %4464 = vmatpush3.msra.mxu1 %v6251_v55 }
 0x965   :  { %2558 = vmatprep.subr.mxu0 %v6162_v34  ;;  %4465 = vmatprep.subr.mxu1 %v7215_v0 }
 0x966   :  { %2559 = vmatpush1.msra.mxu0 %v6165_v17  ;;  %4466 = vmatpush3.msra.mxu1 %v6253_v10 }
 0x967   :  { %2560 = vmatprep.subr.mxu0 %v6168_v24  ;;  %4467 = vmatprep.subr.mxu1 %v7215_v0 }
 0x968   :  { %2561 = vmatpush1.msra.mxu0 %v6171_v1  ;;  %4468 = vmatpush3.msra.mxu1 %v6258_v62 }
 0x969   :  { %2562 = vmatprep.subr.mxu0 %v6174_v35  ;;  %4469 = vmatprep.subr.mxu1 %v7215_v0 }
 0x96a   :  { %2563 = vmatpush1.msra.mxu0 %v6177_v2  ;;  %4470 = vmatpush3.msra.mxu1 %v6263_v4 }
 0x96b   :  { %2564 = vmatprep.subr.mxu0 %v6180_v36  ;;  %4471 = vmatprep.subr.mxu1 %v7215_v0 }
 0x96c   :  { %2565 = vmatpush1.msra.mxu0 %v6183_v37  ;;  %4472 = vmatpush3.msra.mxu1 %v6267_v16 }
 0x96d   :  { %2566 = vmatprep.subr.mxu0 %v6186_v6  ;;  %4473 = vmatprep.subr.mxu1 %v7215_v0 }
 0x96e   :  { %2567 = vmatpush1.msra.mxu0 %v6189_v38  ;;  %4474 = vmatpush3.msra.mxu1 %v6271_v25 }
 0x96f   :  { %2568 = vmatprep.subr.mxu0 %v6192_v7  ;;  %4475 = vmatprep.subr.mxu1 %v7215_v0 }
 0x970   :  { %2569 = vmatpush1.msra.mxu0 %v6195_v47  ;;  %4476 = vmatpush3.msra.mxu1 %v6275_v58 }
 0x971   :  { %2570 = vmatprep.subr.mxu0 %v6198_v52  ;;  %4477 = vmatprep.subr.mxu1 %v7215_v0 }
 0x972   :  { %2571 = vmatpush1.msra.mxu0 %v6201_v18  ;;  %4478 = vmatpush3.msra.mxu1 %v6279_v40 }
 0x973   :  { %2572 = vmatprep.subr.mxu0 %v6204_v19  ;;  %4479 = vmatprep.subr.mxu1 %v7215_v0 }
 0x974   :  { %2573 = vmatpush1.msra.mxu0 %v6207_v21  ;;  %4480 = vmatpush3.msra.mxu1 %v6283_v46 }
 0x975   :  { %2574 = vmatprep.subr.mxu0 %v6210_v27  ;;  %4481 = vmatprep.subr.mxu1 %v7215_v0 }
 0x976   :  { %2575 = vmatpush1.msra.mxu0 %v6213_v28  ;;  %4482 = vmatpush3.msra.mxu1 %v6287_v48 }
 0x977   :  { %2576 = vmatprep.subr.mxu0 %v6216_v29  ;;  %4483 = vmatprep.subr.mxu1 %v7215_v0 }
 0x978   :  { %2577 = vmatpush1.msra.mxu0 %v6219_v30  ;;  %4484 = vmatpush3.msra.mxu1 %v6291_v50 }
 0x979   :  { %2578 = vmatprep.subr.mxu0 %v6222_v31  ;;  %4485 = vmatprep.subr.mxu1 %v7215_v0 }
 0x97a   :  { %2579 = vmatpush1.msra.mxu0 %v6225_v45  ;;  %4486 = vmatpush3.msra.mxu1 %v6295_v26 }
 0x97b   :  { %2580 = vmatprep.subr.mxu0 %v6228_v53  ;;  %4487 = vmatprep.subr.mxu1 %v7215_v0 }
 0x97c   :  { %2581 = vmatpush1.msra.mxu0 %v6231_v20  ;;  %4488 = vmatpush3.msra.mxu1 %v6299_v39 }
 0x97d   :  { %2582 = vmatprep.subr.mxu0 %v6234_v9  ;;  %4489 = vmatprep.subr.mxu1 %v7215_v0 }
 0x97e   :  { %2583 = vmatpush1.msra.mxu0 %v6237_v8  ;;  %4490 = vmatpush3.msra.mxu1 %v7314_v43 }
 0x97f   :  { %2584 = vmatprep.subr.mxu0 %v7315_v44  ;;  %4491 = vmatprep.subr.mxu1 %v7215_v0 }
 0x980   :  { %2585 = vmatpush1.msra.mxu0 %v7316_v22  ;;  %4492 = vmatpush3.msra.mxu1 %v7317_v42 }
 0x981   :  { %2586 = vmatprep.subr.mxu0 %v7318_v23  ;;  %4493 = vmatprep.subr.mxu1 %v7215_v0  ;;  %v7325_v23 = vld [vmem:[#allocation38_spill] sm:$0xff] }
 0x982   :  { %2587 = vmatpush1.msra.mxu0 %v7319_v49  ;;  %2620 = vmatprep.mubr.f32.mxu0 %v7215_v0  ;;  %v2056_v42 = vadd.f32 %v7325_v23, %v6456_v12 }
 0x983   :  { %4494 = vmatpush3.msra.mxu1 %v7320_v5  ;;  %4495 = vmatprep.mubr.msk.f32.mxu1 %vm5138_vm0, %v7215_v0 }
 0x984   :  { %2721 = vmatprep.subr.mxu0 %v7321_v14  ;;  %4498 = vmatprep.subr.mxu1 %v7215_v0 }
 0xa23   :  { %v2457_v15 = vpop.f32.mrf.mxu0  ;;  %v2528_v59 = vpop.f32.mrf.mxu1 }
 0xa24   :  { %v2458_v32 = vadd.f32 %v2457_v15, %v7324_v13  ;;  %v2529_v15 = vadd.f32 %v2528_v59, %v6461_v51  ;;  %v7331_v59 = vld [vmem:[#allocation36_spill] sm:$0xff] }
 0xa25   :  { %v2459_v54 = vpop.f32.mrf.mxu0  ;;  %v4462_v33 = vpop.f32.mrf.mxu1 }
 0xa26   :  { %v2532_v57 = vadd.f32 %v2458_v32, %v2054_v56  ;;  %v2460_v5 = vadd.f32 %v2459_v54, %v6453_v41  ;;  %v7326_v56 = vld [vmem:[#allocation51_spill] sm:$0xff] }
 0xa27   :  { %v2166_v32 = vadd.f32 %v7326_v56, %v6465_v11 }
 0xa28   :  { %v3673_v49 = vmul.f32 -1.442695, %v2532_v57  ;;  %v2539_v14 = vadd.f32 %v2460_v5, %v2056_v42  ;;  %v7333_v57 = vld [vmem:[#allocation35_spill] sm:$0xff] }
 0xa2a   :  { %4811 = vpow2.f32 %v3673_v49  ;;  %v3674_v22 = vmul.f32 -1.442695, %v2539_v14  ;;  %v7330_v14 = vld [vmem:[#allocation21_spill] sm:$0xff] }
 0xa2c   :  { %4813 = vpow2.f32 %v3674_v22 }
 0xa37   :  { %v4812_v44 = vpop.eup %4811 }
 0xa38   :  { %v2536_v43 = vadd.f32 1.0, %v4812_v44 }
 0xa39   :  { %v4814_v8 = vpop.eup %4813 }
 0xa3a   :  { %4815 = vrcp.f32 %v2536_v43  ;;  %v2543_v3 = vadd.f32 1.0, %v4814_v8  ;;  %v7327_v8 = vld [vmem:[#allocation26_spill] sm:$0xff]  ;;  %v7329_v43 = vld [vmem:[#allocation29_spill] sm:$0xff] }
 0xa3c   :  { %4817 = vrcp.f32 %v2543_v3  ;;  %v7334_v3 = vld [vmem:[#allocation37_spill] sm:$0xff] }
 0xa47   :  { %v4816_v13 = vpop.eup %4815 }
 0xa48   :  { %v2546_v33 = vmul.f32 %v4816_v13, %v2529_v15  ;;  %v7332_v13 = vld [vmem:[#allocation34_spill] sm:$0xff]  ;;  %v7335_v15 = vld [vmem:[#allocation25_spill] sm:$0xff] }
 0xa49   :  { %v4818_v23 = vpop.eup %4817 }
 0xa4a   :  { %v2547_v54 = vadd.f32 %v2546_v33, %v2166_v32  ;;  %v2549_v49 = vsub.f32 1.0, %v4818_v23  ;;  %v2551_v22 = vmul.f32 %v4818_v23, %v6468_v60  ;;  %v7328_v60 = vld [vmem:[#allocation50_spill] sm:$0xff]  ;;  %v7336_v33 = vld [vmem:[#allocation39_spill] sm:$0xff] }
 0xa4b   :  { %v7337_v23 = vld [vmem:[#allocation46_spill] sm:$0xff] }
 0xa4c   :  { %4819 = vtanh.f32 %v2547_v54  ;;  %v2060_v54 = vadd.f32 %v7336_v33, %v7322_v61 }
 0xa59   :  { %v4820_v42 = vpop.eup %4819 }
 0xa5a   :  { %v2550_v5 = vmul.f32 %v4820_v42, %v2549_v49 }
 0xa5c   :  { %v6549_v44 = vadd.f32 %v2551_v22, %v2550_v5 }
 0xa5e   :  { %2621 = vmatmul.mubr.f32.vlgmr.msra.gmra.mxu0 %v6549_v44  ;;  %4496 = vmatmul.mubr.f32.vlgmr.msra.gmra.mxu1 %v6549_v44 }
 0xa5f   :  { %2722 = vmatpush1.msra.mxu0 %v6159_v63  ;;  %4499 = vmatpush3.msra.mxu1 %v6251_v55 }
 0xa60   :  { %2723 = vmatprep.subr.mxu0 %v6162_v34  ;;  %4500 = vmatprep.subr.mxu1 %v7215_v0 }
 0xa61   :  { %2724 = vmatpush1.msra.mxu0 %v6165_v17  ;;  %4501 = vmatpush3.msra.mxu1 %v6253_v10 }
 0xa62   :  { %2725 = vmatprep.subr.mxu0 %v6168_v24  ;;  %4502 = vmatprep.subr.mxu1 %v7215_v0 }
 0xa63   :  { %2726 = vmatpush1.msra.mxu0 %v6171_v1  ;;  %4503 = vmatpush3.msra.mxu1 %v6258_v62 }
 0xa64   :  { %2727 = vmatprep.subr.mxu0 %v6174_v35  ;;  %4504 = vmatprep.subr.mxu1 %v7215_v0 }
 0xa65   :  { %2728 = vmatpush1.msra.mxu0 %v6177_v2  ;;  %4505 = vmatpush3.msra.mxu1 %v6263_v4 }
 0xa66   :  { %2729 = vmatprep.subr.mxu0 %v6180_v36  ;;  %4506 = vmatprep.subr.mxu1 %v7215_v0 }
 0xa67   :  { %2730 = vmatpush1.msra.mxu0 %v6183_v37  ;;  %4507 = vmatpush3.msra.mxu1 %v6267_v16 }
 0xa68   :  { %2731 = vmatprep.subr.mxu0 %v6186_v6  ;;  %4508 = vmatprep.subr.mxu1 %v7215_v0 }
 0xa69   :  { %2732 = vmatpush1.msra.mxu0 %v6189_v38  ;;  %4509 = vmatpush3.msra.mxu1 %v6271_v25 }
 0xa6a   :  { %2733 = vmatprep.subr.mxu0 %v6192_v7  ;;  %4510 = vmatprep.subr.mxu1 %v7215_v0 }
 0xa6b   :  { %2734 = vmatpush1.msra.mxu0 %v6195_v47  ;;  %4511 = vmatpush3.msra.mxu1 %v6275_v58 }
 0xa6c   :  { %2735 = vmatprep.subr.mxu0 %v6198_v52  ;;  %4512 = vmatprep.subr.mxu1 %v7215_v0 }
 0xa6d   :  { %2736 = vmatpush1.msra.mxu0 %v6201_v18  ;;  %4513 = vmatpush3.msra.mxu1 %v6279_v40 }
 0xa6e   :  { %2737 = vmatprep.subr.mxu0 %v6204_v19  ;;  %4514 = vmatprep.subr.mxu1 %v7215_v0 }
 0xa6f   :  { %2738 = vmatpush1.msra.mxu0 %v6207_v21  ;;  %4515 = vmatpush3.msra.mxu1 %v6283_v46 }
 0xa70   :  { %2739 = vmatprep.subr.mxu0 %v6210_v27  ;;  %4516 = vmatprep.subr.mxu1 %v7215_v0 }
 0xa71   :  { %2740 = vmatpush1.msra.mxu0 %v6213_v28  ;;  %4517 = vmatpush3.msra.mxu1 %v6287_v48 }
 0xa72   :  { %2741 = vmatprep.subr.mxu0 %v6216_v29  ;;  %4518 = vmatprep.subr.mxu1 %v7215_v0 }
 0xa73   :  { %2742 = vmatpush1.msra.mxu0 %v6219_v30  ;;  %4519 = vmatpush3.msra.mxu1 %v6291_v50 }
 0xa74   :  { %2743 = vmatprep.subr.mxu0 %v6222_v31  ;;  %4520 = vmatprep.subr.mxu1 %v7215_v0 }
 0xa75   :  { %2744 = vmatpush1.msra.mxu0 %v6225_v45  ;;  %4521 = vmatpush3.msra.mxu1 %v6295_v26 }
 0xa76   :  { %2745 = vmatprep.subr.mxu0 %v6228_v53  ;;  %4522 = vmatprep.subr.mxu1 %v7215_v0 }
 0xa77   :  { %2746 = vmatpush1.msra.mxu0 %v6231_v20  ;;  %4523 = vmatpush3.msra.mxu1 %v6299_v39 }
 0xa78   :  { %2747 = vmatprep.subr.mxu0 %v6234_v9  ;;  %4524 = vmatprep.subr.mxu1 %v7215_v0 }
 0xa79   :  { %2748 = vmatpush1.msra.mxu0 %v7327_v8  ;;  %4525 = vmatpush3.msra.mxu1 %v7328_v60 }
 0xa7a   :  { %2749 = vmatprep.subr.mxu0 %v7329_v43  ;;  %4526 = vmatprep.subr.mxu1 %v7215_v0 }
 0xa7b   :  { %2750 = vmatpush1.msra.mxu0 %v7330_v14  ;;  %4527 = vmatpush3.msra.mxu1 %v7331_v59 }
 0xa7c   :  { %2751 = vmatprep.subr.mxu0 %v7332_v13  ;;  %4528 = vmatprep.subr.mxu1 %v7215_v0  ;;  %v7338_v13 = vld [vmem:[#allocation52_spill] sm:$0xff] }
 0xa7d   :  { %2752 = vmatpush1.msra.mxu0 %v7333_v57  ;;  %2785 = vmatprep.mubr.f32.mxu0 %v7215_v0  ;;  %v2062_v59 = vadd.f32 %v7338_v13, %v6456_v12 }
 0xa7e   :  { %4529 = vmatpush3.msra.mxu1 %v7334_v3  ;;  %4530 = vmatprep.mubr.msk.f32.mxu1 %vm5138_vm0, %v7215_v0 }
 0xa7f   :  { %2886 = vmatprep.subr.mxu0 %v7335_v15  ;;  %4533 = vmatprep.subr.mxu1 %v7215_v0 }
 0xb1e   :  { %v2622_v56 = vpop.f32.mrf.mxu0  ;;  %v2693_v32 = vpop.f32.mrf.mxu1 }
 0xb1f   :  { %v2623_v49 = vadd.f32 %v2622_v56, %v7337_v23  ;;  %v2694_v56 = vadd.f32 %v2693_v32, %v6461_v51  ;;  %v6723_v32 = vld [vmem:[#allocation12 + $0x158] sm:$0xff] }
 0xb20   :  { %v2624_v42 = vpop.f32.mrf.mxu0  ;;  %v4497_v5 = vpop.f32.mrf.mxu1 }
 0xb21   :  { %v2697_v22 = vadd.f32 %v2623_v49, %v2060_v54  ;;  %v2625_v3 = vadd.f32 %v2624_v42, %v6453_v41  ;;  %v7339_v54 = vld [vmem:[#allocation28_spill] sm:$0xff] }
 0xb22   :  { %v2171_v49 = vadd.f32 %v7339_v54, %v6465_v11  ;;  %v6743_v54 = vld [vmem:[#allocation12 + $0x128] sm:$0xff] }
 0xb23   :  { %v3675_v57 = vmul.f32 -1.442695, %v2697_v22  ;;  %v2704_v15 = vadd.f32 %v2625_v3, %v2062_v59  ;;  %v6730_v22 = vld [vmem:[#allocation12 + $0x160] sm:$0xff] }
 0xb25   :  { %4821 = vpow2.f32 %v3675_v57  ;;  %v3676_v14 = vmul.f32 -1.442695, %v2704_v15  ;;  %v6733_v15 = vld [vmem:[#allocation12 + $0x140] sm:$0xff] }
 0xb27   :  { %4823 = vpow2.f32 %v3676_v14 }
 0xb32   :  { %v4822_v43 = vpop.eup %4821 }
 0xb33   :  { %v2701_v60 = vadd.f32 1.0, %v4822_v43 }
 0xb34   :  { %v4824_v8 = vpop.eup %4823 }
 0xb35   :  { %4825 = vrcp.f32 %v2701_v60  ;;  %v2708_v33 = vadd.f32 1.0, %v4824_v8  ;;  %v6717_v8 = vld [vmem:[#allocation12 + $0x168] sm:$0xff]  ;;  %v6720_v60 = vld [vmem:[#allocation12 + $0x178] sm:$0xff] }
 0xb37   :  { %4827 = vrcp.f32 %v2708_v33  ;;  %v6737_v33 = vld [vmem:[#allocation12 + $0x138] sm:$0xff] }
 0xb42   :  { %v4826_v23 = vpop.eup %4825 }
 0xb43   :  { %v2711_v5 = vmul.f32 %v4826_v23, %v2694_v56  ;;  %v6727_v23 = vld [vmem:[#allocation12 + $0x150] sm:$0xff]  ;;  %v6740_v56 = vld [vmem:[#allocation12 + $0x148] sm:$0xff] }
 0xb44   :  { %v4828_v13 = vpop.eup %4827 }
 0xb45   :  { %v2712_v42 = vadd.f32 %v2711_v5, %v2171_v49  ;;  %v2714_v57 = vsub.f32 1.0, %v4828_v13  ;;  %v2716_v14 = vmul.f32 %v4828_v13, %v6549_v44  ;;  %v6747_v49 = vld [vmem:[#allocation12 + $0x120] sm:$0xff]  ;;  %v6750_v5 = vld [vmem:[#allocation12 + $0x130] sm:$0xff]  ;;  %v6757_v13 = vld [vmem:[#allocation12 + $0x108] sm:$0xff] }
 0xb47   :  { %4829 = vtanh.f32 %v2712_v42  ;;  %v6753_v42 = vld [vmem:[#allocation12 + $0x110] sm:$0xff] }
 0xb54   :  { %v4830_v59 = vpop.eup %4829 }
 0xb55   :  { %v2715_v3 = vmul.f32 %v4830_v59, %v2714_v57  ;;  %v6760_v57 = vld [vmem:[#allocation12 + $0x118] sm:$0xff] }
 0xb56   :  { %v6763_v59 = vld [vmem:[#allocation12 + $0xf8] sm:$0xff] }
 0xb57   :  { %v6630_v43 = vadd.f32 %v2716_v14, %v2715_v3  ;;  %v6767_v3 = vld [vmem:[#allocation12 + $0xf0] sm:$0xff]  ;;  %v6770_v14 = vld [vmem:[#allocation12 + $0x100] sm:$0xff] }
 0xb59   :  { %2786 = vmatmul.mubr.f32.vlgmr.msra.gmra.mxu0 %v6630_v43  ;;  %4531 = vmatmul.mubr.f32.vlgmr.msra.gmra.mxu1 %v6630_v43 }
 0xb5a   :  { %2887 = vmatpush1.msra.mxu0 %v6159_v63  ;;  %4534 = vmatpush3.msra.mxu1 %v6251_v55  ;;  %v7340_v63 = vld [vmem:[#allocation26_spill] sm:$0xff] }
 0xb5b   :  { %2888 = vmatprep.subr.mxu0 %v6162_v34  ;;  %4535 = vmatprep.subr.mxu1 %v7215_v0  ;;  %v7341_v34 = vld [vmem:[#allocation50_spill] sm:$0xff] }
 0xb5c   :  { %2889 = vmatpush1.msra.mxu0 %v6165_v17  ;;  %4536 = vmatpush3.msra.mxu1 %v6253_v10  ;;  %v7342_v17 = vld [vmem:[#allocation29_spill] sm:$0xff] }
 0xb5d   :  { %2890 = vmatprep.subr.mxu0 %v6168_v24  ;;  %4537 = vmatprep.subr.mxu1 %v7215_v0  ;;  %v7343_v24 = vld [vmem:[#allocation21_spill] sm:$0xff] }
 0xb5e   :  { %2891 = vmatpush1.msra.mxu0 %v6171_v1  ;;  %4538 = vmatpush3.msra.mxu1 %v6258_v62  ;;  %v7344_v1 = vld [vmem:[#allocation36_spill] sm:$0xff] }
 0xb5f   :  { %2892 = vmatprep.subr.mxu0 %v6174_v35  ;;  %4539 = vmatprep.subr.mxu1 %v7215_v0  ;;  %v7345_v35 = vld [vmem:[#allocation34_spill] sm:$0xff] }
 0xb60   :  { %2893 = vmatpush1.msra.mxu0 %v6177_v2  ;;  %4540 = vmatpush3.msra.mxu1 %v6263_v4  ;;  %v7346_v2 = vld [vmem:[#allocation35_spill] sm:$0xff] }
 0xb61   :  { %2894 = vmatprep.subr.mxu0 %v6180_v36  ;;  %4541 = vmatprep.subr.mxu1 %v7215_v0  ;;  %v7347_v36 = vld [vmem:[#allocation37_spill] sm:$0xff] }
 0xb62   :  { %2895 = vmatpush1.msra.mxu0 %v6183_v37  ;;  %4542 = vmatpush3.msra.mxu1 %v6267_v16  ;;  %v6699_v37 = vld [vmem:[#allocation12 + $0x170] sm:$0xff]  ;;  %v7352_v16 = vld [vmem:[#allocation33_spill] sm:$0xff] }
 0xb63   :  { %2896 = vmatprep.subr.mxu0 %v6186_v6  ;;  %4543 = vmatprep.subr.mxu1 %v7215_v0  ;;  %7348 = vst [vmem:[#allocation30_spill] sm:$0xff] %v6699_v37 }
 0xb64   :  { %2897 = vmatpush1.msra.mxu0 %v6189_v38  ;;  %4544 = vmatpush3.msra.mxu1 %v6271_v25  ;;  %v2176_v25 = vadd.f32 %v7352_v16, %v6465_v11  ;;  %v6871_v16 = vld [vmem:[#allocation12 + $0x10] sm:$0xff] }
 0xb65   :  { %2898 = vmatprep.subr.mxu0 %v6192_v7  ;;  %4545 = vmatprep.subr.mxu1 %v7215_v0  ;;  %v7349_v7 = vld [vmem:[#allocation41_spill] sm:$0xff]  ;;  %7360 = vst [vmem:[#allocation39_spill] sm:$0xff] %v6871_v16 }
 0xb66   :  { %2899 = vmatpush1.msra.mxu0 %v6195_v47  ;;  %4546 = vmatpush3.msra.mxu1 %v6275_v58  ;;  %v2066_v47 = vadd.f32 %v7349_v7, %v7322_v61  ;;  %v6810_v7 = vld [vmem:[#allocation12 + $0xa0] sm:$0xff] }
 0xb67   :  { %2900 = vmatprep.subr.mxu0 %v6198_v52  ;;  %4547 = vmatprep.subr.mxu1 %v7215_v0  ;;  %v7350_v52 = vld [vmem:[#allocation46_spill] sm:$0xff] }
 0xb68   :  { %2901 = vmatpush1.msra.mxu0 %v6201_v18  ;;  %4548 = vmatpush3.msra.mxu1 %v6279_v40 }
 0xb69   :  { %2902 = vmatprep.subr.mxu0 %v6204_v19  ;;  %4549 = vmatprep.subr.mxu1 %v7215_v0 }
 0xb6a   :  { %2903 = vmatpush1.msra.mxu0 %v6207_v21  ;;  %4550 = vmatpush3.msra.mxu1 %v6283_v46 }
 0xb6b   :  { %2904 = vmatprep.subr.mxu0 %v6210_v27  ;;  %4551 = vmatprep.subr.mxu1 %v7215_v0 }
 0xb6c   :  { %2905 = vmatpush1.msra.mxu0 %v6213_v28  ;;  %4552 = vmatpush3.msra.mxu1 %v6287_v48 }
 0xb6d   :  { %2906 = vmatprep.subr.mxu0 %v6216_v29  ;;  %4553 = vmatprep.subr.mxu1 %v7215_v0 }
 0xb6e   :  { %2907 = vmatpush1.msra.mxu0 %v6219_v30  ;;  %4554 = vmatpush3.msra.mxu1 %v6291_v50  ;;  %v7351_v30 = vld [vmem:[#allocation42_spill] sm:$0xff] }
 0xb6f   :  { %2908 = vmatprep.subr.mxu0 %v6222_v31  ;;  %4555 = vmatprep.subr.mxu1 %v7215_v0  ;;  %v2068_v31 = vadd.f32 %v7351_v30, %v6456_v12  ;;  %v6837_v30 = vld [vmem:[#allocation12 + $0x48] sm:$0xff] }
 0xb70   :  { %2909 = vmatpush1.msra.mxu0 %v6225_v45  ;;  %4556 = vmatpush3.msra.mxu1 %v6295_v26 }
 0xb71   :  { %2910 = vmatprep.subr.mxu0 %v6228_v53  ;;  %4557 = vmatprep.subr.mxu1 %v7215_v0 }
 0xb72   :  { %2911 = vmatpush1.msra.mxu0 %v6231_v20  ;;  %4558 = vmatpush3.msra.mxu1 %v6299_v39 }
 0xb73   :  { %2912 = vmatprep.subr.mxu0 %v6234_v9  ;;  %4559 = vmatprep.subr.mxu1 %v7215_v0 }
 0xb74   :  { %2913 = vmatpush1.msra.mxu0 %v7340_v63  ;;  %4560 = vmatpush3.msra.mxu1 %v7341_v34  ;;  %v6777_v63 = vld [vmem:[#allocation12 + $0xd8] sm:$0xff]  ;;  %v6780_v34 = vld [vmem:[#allocation12 + $0xe8] sm:$0xff] }
 0xb75   :  { %2914 = vmatprep.subr.mxu0 %v7342_v17  ;;  %4561 = vmatprep.subr.mxu1 %v7215_v0  ;;  %v6783_v17 = vld [vmem:[#allocation12 + $0xc8] sm:$0xff] }
 0xb76   :  { %2915 = vmatpush1.msra.mxu0 %v7343_v24  ;;  %4562 = vmatpush3.msra.mxu1 %v7344_v1  ;;  %v6787_v24 = vld [vmem:[#allocation12 + $0xc0] sm:$0xff]  ;;  %v6790_v1 = vld [vmem:[#allocation12 + $0xd0] sm:$0xff] }
 0xb77   :  { %2916 = vmatprep.subr.mxu0 %v7345_v35  ;;  %4563 = vmatprep.subr.mxu1 %v7215_v0  ;;  %v6793_v35 = vld [vmem:[#allocation12 + $0xb0] sm:$0xff] }
 0xb78   :  { %2917 = vmatpush1.msra.mxu0 %v7346_v2  ;;  %2950 = vmatprep.mubr.f32.mxu0 %v7215_v0  ;;  %v6797_v2 = vld [vmem:[#allocation12 + $0xa8] sm:$0xff] }
 0xb79   :  { %4564 = vmatpush3.msra.mxu1 %v7347_v36  ;;  %4565 = vmatprep.mubr.msk.f32.mxu1 %vm5138_vm0, %v7215_v0  ;;  %v6800_v36 = vld [vmem:[#allocation12 + $0xb8] sm:$0xff] }
 0xb7a   :  { %3051 = vmatprep.subr.mxu0 %v6699_v37  ;;  %4568 = vmatprep.subr.mxu1 %v7215_v0 }
 0xc19   :  { %v2787_v6 = vpop.f32.mrf.mxu0  ;;  %v2858_v38 = vpop.f32.mrf.mxu1 }
 0xc1a   :  { %v2788_v18 = vadd.f32 %v2787_v6, %v7350_v52  ;;  %v2859_v62 = vadd.f32 %v2858_v38, %v6461_v51  ;;  %v6803_v6 = vld [vmem:[#allocation12 + $0x98] sm:$0xff]  ;;  %v6807_v38 = vld [vmem:[#allocation12 + $0x90] sm:$0xff] }
 0xc1b   :  { %v2789_v19 = vpop.f32.mrf.mxu0  ;;  %v4532_v21 = vpop.f32.mrf.mxu1 }
 0xc1c   :  { %v2862_v27 = vadd.f32 %v2788_v18, %v2066_v47  ;;  %v2790_v29 = vadd.f32 %v2789_v19, %v6453_v41  ;;  %v6813_v47 = vld [vmem:[#allocation12 + $0x80] sm:$0xff]  ;;  %v6817_v18 = vld [vmem:[#allocation12 + $0x78] sm:$0xff]  ;;  %v6820_v19 = vld [vmem:[#allocation12 + $0x88] sm:$0xff] }
 0xc1d   :  { %v6823_v21 = vld [vmem:[#allocation12 + $0x68] sm:$0xff] }
 0xc1e   :  { %v3677_v28 = vmul.f32 -1.442695, %v2862_v27  ;;  %v2869_v45 = vadd.f32 %v2790_v29, %v2068_v31  ;;  %v6827_v27 = vld [vmem:[#allocation12 + $0x60] sm:$0xff]  ;;  %v6833_v29 = vld [vmem:[#allocation12 + $0x50] sm:$0xff]  ;;  %v6840_v31 = vld [vmem:[#allocation12 + $0x58] sm:$0xff] }
 0xc20   :  { %4831 = vpow2.f32 %v3677_v28  ;;  %v3678_v53 = vmul.f32 -1.442695, %v2869_v45  ;;  %v6830_v28 = vld [vmem:[#allocation12 + $0x70] sm:$0xff]  ;;  %v6843_v45 = vld [vmem:[#allocation12 + $0x38] sm:$0xff] }
 0xc22   :  { %4833 = vpow2.f32 %v3678_v53  ;;  %v6847_v53 = vld [vmem:[#allocation12 + $0x30] sm:$0xff] }
 0xc23   :  { %7353 = vst [vmem:[#allocation31_spill] sm:$0xff] %v6847_v53 }
 0xc2d   :  { %v4832_v20 = vpop.eup %4831 }
 0xc2e   :  { %v2866_v9 = vadd.f32 1.0, %v4832_v20  ;;  %v6850_v20 = vld [vmem:[#allocation12 + $0x40] sm:$0xff] }
 0xc2f   :  { %v4834_v55 = vpop.eup %4833  ;;  %7354 = vst [vmem:[#allocation40_spill] sm:$0xff] %v6850_v20 }
 0xc30   :  { %4835 = vrcp.f32 %v2866_v9  ;;  %v2873_v10 = vadd.f32 1.0, %v4834_v55  ;;  %v6853_v9 = vld [vmem:[#allocation12 + $0x20] sm:$0xff]  ;;  %v6857_v55 = vld [vmem:[#allocation12 + $0x18] sm:$0xff] }
 0xc31   :  { %7355 = vst [vmem:[#allocation23_spill] sm:$0xff] %v6853_v9  ;;  %7356 = vst [vmem:[#allocation49_spill] sm:$0xff] %v6857_v55 }
 0xc32   :  { %4837 = vrcp.f32 %v2873_v10  ;;  %v6860_v10 = vld [vmem:[#allocation12 + $0x28] sm:$0xff] }
 0xc33   :  { %7357 = vst [vmem:[#allocation38_spill] sm:$0xff] %v6860_v10 }
 0xc3d   :  { %v4836_v4 = vpop.eup %4835 }
 0xc3e   :  { %v2876_v58 = vmul.f32 %v4836_v4, %v2859_v62  ;;  %v6863_v62 = vld [vmem:[#allocation12 + $0x8] sm:$0xff]  ;;  %v6867_v4 = vld [vmem:[#allocation12] sm:$0xff] }
 0xc3f   :  { %v4838_v46 = vpop.eup %4837  ;;  %7358 = vst [vmem:[#allocation51_spill] sm:$0xff] %v6863_v62  ;;  %7359 = vst [vmem:[#allocation25_spill] sm:$0xff] %v6867_v4 }
 0xc40   :  { %v2877_v40 = vadd.f32 %v2876_v58, %v2176_v25  ;;  %v2879_v48 = vsub.f32 1.0, %v4838_v46  ;;  %v2881_v39 = vmul.f32 %v4838_v46, %v6630_v43  ;;  %v6773_v43 = vld [vmem:[#allocation12 + $0xe0] sm:$0xff] }
 0xc42   :  { %4839 = vtanh.f32 %v2877_v40  ;;  %v7361_v40 = vld [vmem:[#allocation32_spill] sm:$0xff] }
 0xc43   :  { %v2072_v46 = vadd.f32 %v7361_v40, %v7322_v61 }
 0xc4f   :  { %v4840_v50 = vpop.eup %4839 }
 0xc50   :  { %v2880_v26 = vmul.f32 %v4840_v50, %v2879_v48 }
 0xc52   :  { %v6713_v44 = vadd.f32 %v2881_v39, %v2880_v26 }
 0xc54   :  { %2951 = vmatmul.mubr.f32.vlgmr.msra.gmra.mxu0 %v6713_v44  ;;  %4566 = vmatmul.mubr.f32.vlgmr.msra.gmra.mxu1 %v6713_v44 }
 0xc55   :  { %3052 = vmatpush1.msra.mxu0 %v6717_v8  ;;  %4569 = vmatpush3.msra.mxu1 %v6720_v60 }
 0xc56   :  { %3053 = vmatprep.subr.mxu0 %v6723_v32  ;;  %4570 = vmatprep.subr.mxu1 %v7215_v0 }
 0xc57   :  { %3054 = vmatpush1.msra.mxu0 %v6727_v23  ;;  %4571 = vmatpush3.msra.mxu1 %v6730_v22 }
 0xc58   :  { %3055 = vmatprep.subr.mxu0 %v6733_v15  ;;  %4572 = vmatprep.subr.mxu1 %v7215_v0 }
 0xc59   :  { %3056 = vmatpush1.msra.mxu0 %v6737_v33  ;;  %4573 = vmatpush3.msra.mxu1 %v6740_v56 }
 0xc5a   :  { %3057 = vmatprep.subr.mxu0 %v6743_v54  ;;  %4574 = vmatprep.subr.mxu1 %v7215_v0 }
 0xc5b   :  { %3058 = vmatpush1.msra.mxu0 %v6747_v49  ;;  %4575 = vmatpush3.msra.mxu1 %v6750_v5 }
 0xc5c   :  { %3059 = vmatprep.subr.mxu0 %v6753_v42  ;;  %4576 = vmatprep.subr.mxu1 %v7215_v0 }
 0xc5d   :  { %3060 = vmatpush1.msra.mxu0 %v6757_v13  ;;  %4577 = vmatpush3.msra.mxu1 %v6760_v57 }
 0xc5e   :  { %3061 = vmatprep.subr.mxu0 %v6763_v59  ;;  %4578 = vmatprep.subr.mxu1 %v7215_v0 }
 0xc5f   :  { %3062 = vmatpush1.msra.mxu0 %v6767_v3  ;;  %4579 = vmatpush3.msra.mxu1 %v6770_v14 }
 0xc60   :  { %3063 = vmatprep.subr.mxu0 %v6773_v43  ;;  %4580 = vmatprep.subr.mxu1 %v7215_v0 }
 0xc61   :  { %3064 = vmatpush1.msra.mxu0 %v6777_v63  ;;  %4581 = vmatpush3.msra.mxu1 %v6780_v34 }
 0xc62   :  { %3065 = vmatprep.subr.mxu0 %v6783_v17  ;;  %4582 = vmatprep.subr.mxu1 %v7215_v0 }
 0xc63   :  { %3066 = vmatpush1.msra.mxu0 %v6787_v24  ;;  %4583 = vmatpush3.msra.mxu1 %v6790_v1 }
 0xc64   :  { %3067 = vmatprep.subr.mxu0 %v6793_v35  ;;  %4584 = vmatprep.subr.mxu1 %v7215_v0 }
 0xc65   :  { %3068 = vmatpush1.msra.mxu0 %v6797_v2  ;;  %4585 = vmatpush3.msra.mxu1 %v6800_v36 }
 0xc66   :  { %3069 = vmatprep.subr.mxu0 %v6803_v6  ;;  %4586 = vmatprep.subr.mxu1 %v7215_v0 }
 0xc67   :  { %3070 = vmatpush1.msra.mxu0 %v6807_v38  ;;  %4587 = vmatpush3.msra.mxu1 %v6810_v7 }
 0xc68   :  { %3071 = vmatprep.subr.mxu0 %v6813_v47  ;;  %4588 = vmatprep.subr.mxu1 %v7215_v0 }
 0xc69   :  { %3072 = vmatpush1.msra.mxu0 %v6817_v18  ;;  %4589 = vmatpush3.msra.mxu1 %v6820_v19 }
 0xc6a   :  { %3073 = vmatprep.subr.mxu0 %v6823_v21  ;;  %4590 = vmatprep.subr.mxu1 %v7215_v0 }
 0xc6b   :  { %3074 = vmatpush1.msra.mxu0 %v6827_v27  ;;  %4591 = vmatpush3.msra.mxu1 %v6830_v28 }
 0xc6c   :  { %3075 = vmatprep.subr.mxu0 %v6833_v29  ;;  %4592 = vmatprep.subr.mxu1 %v7215_v0 }
 0xc6d   :  { %3076 = vmatpush1.msra.mxu0 %v6837_v30  ;;  %4593 = vmatpush3.msra.mxu1 %v6840_v31 }
 0xc6e   :  { %3077 = vmatprep.subr.mxu0 %v6843_v45  ;;  %4594 = vmatprep.subr.mxu1 %v7215_v0 }
 0xc6f   :  { %3078 = vmatpush1.msra.mxu0 %v6847_v53  ;;  %4595 = vmatpush3.msra.mxu1 %v6850_v20 }
 0xc70   :  { %3079 = vmatprep.subr.mxu0 %v6853_v9  ;;  %4596 = vmatprep.subr.mxu1 %v7215_v0 }
 0xc71   :  { %3080 = vmatpush1.msra.mxu0 %v6857_v55  ;;  %4597 = vmatpush3.msra.mxu1 %v6860_v10 }
 0xc72   :  { %3081 = vmatprep.subr.mxu0 %v6863_v62  ;;  %4598 = vmatprep.subr.mxu1 %v7215_v0  ;;  %v7362_v62 = vld [vmem:[#allocation24_spill] sm:$0xff] }
 0xc73   :  { %3082 = vmatpush1.msra.mxu0 %v6867_v4  ;;  %3115 = vmatprep.mubr.f32.mxu0 %v7215_v0  ;;  %v2074_v10 = vadd.f32 %v7362_v62, %v6456_v12 }
 0xc74   :  { %4599 = vmatpush3.msra.mxu1 %v6871_v16  ;;  %4600 = vmatprep.mubr.msk.f32.mxu1 %vm5138_vm0, %v7215_v0 }
 0xc75   :  { %3216 = vmatprep.subr.mxu0 %v6699_v37  ;;  %4603 = vmatprep.subr.mxu1 %v7215_v0 }
 0xd14   :  { %v2952_v25 = vpop.f32.mrf.mxu0  ;;  %v3023_v58 = vpop.f32.mrf.mxu1 }
 0xd15   :  { %v2953_v48 = vadd.f32 %v2952_v25, %v7350_v52  ;;  %v3024_v25 = vadd.f32 %v3023_v58, %v6461_v51  ;;  %v7369_v58 = vld [vmem:[#allocation51_spill] sm:$0xff] }
 0xd16   :  { %v2954_v50 = vpop.f32.mrf.mxu0  ;;  %v4567_v26 = vpop.f32.mrf.mxu1 }
 0xd17   :  { %v3027_v39 = vadd.f32 %v2953_v48, %v2072_v46  ;;  %v2955_v16 = vadd.f32 %v2954_v50, %v6453_v41  ;;  %v7363_v46 = vld [vmem:[#allocation54_spill] sm:$0xff] }
 0xd18   :  { %v2181_v48 = vadd.f32 %v7363_v46, %v6465_v11 }
 0xd19   :  { %v3679_v4 = vmul.f32 -1.442695, %v3027_v39  ;;  %v3034_v37 = vadd.f32 %v2955_v16, %v2074_v10  ;;  %v7368_v16 = vld [vmem:[#allocation38_spill] sm:$0xff]  ;;  %v7370_v39 = vld [vmem:[#allocation25_spill] sm:$0xff] }
 0xd1b   :  { %4841 = vpow2.f32 %v3679_v4  ;;  %v3680_v55 = vmul.f32 -1.442695, %v3034_v37 }
 0xd1d   :  { %4843 = vpow2.f32 %v3680_v55 }
 0xd28   :  { %v4842_v9 = vpop.eup %4841 }
 0xd29   :  { %v3031_v20 = vadd.f32 1.0, %v4842_v9 }
 0xd2a   :  { %v4844_v53 = vpop.eup %4843 }
 0xd2b   :  { %4845 = vrcp.f32 %v3031_v20  ;;  %v3038_v40 = vadd.f32 1.0, %v4844_v53  ;;  %v7366_v53 = vld [vmem:[#allocation23_spill] sm:$0xff]  ;;  %v7367_v20 = vld [vmem:[#allocation49_spill] sm:$0xff] }
 0xd2d   :  { %4847 = vrcp.f32 %v3038_v40  ;;  %v7371_v40 = vld [vmem:[#allocation39_spill] sm:$0xff] }
 0xd38   :  { %v4846_v52 = vpop.eup %4845 }
 0xd39   :  { %v3041_v26 = vmul.f32 %v4846_v52, %v3024_v25  ;;  %v7364_v52 = vld [vmem:[#allocation31_spill] sm:$0xff]  ;;  %v7372_v25 = vld [vmem:[#allocation30_spill] sm:$0xff] }
 0xd3a   :  { %v4848_v62 = vpop.eup %4847 }
 0xd3b   :  { %v3042_v50 = vadd.f32 %v3041_v26, %v2181_v48  ;;  %v3044_v4 = vsub.f32 1.0, %v4848_v62  ;;  %v3046_v55 = vmul.f32 %v4848_v62, %v6713_v44  ;;  %v7365_v44 = vld [vmem:[#allocation40_spill] sm:$0xff]  ;;  %v7373_v26 = vld [vmem:[#allocation45_spill] sm:$0xff]  ;;  %v7374_v62 = vld [vmem:[#allocation46_spill] sm:$0xff] }
 0xd3d   :  { %4849 = vtanh.f32 %v3042_v50  ;;  %v2078_v50 = vadd.f32 %v7373_v26, %v7322_v61 }
 0xd4a   :  { %v4850_v10 = vpop.eup %4849 }
 0xd4b   :  { %v3045_v37 = vmul.f32 %v4850_v10, %v3044_v4 }
 0xd4d   :  { %v6888_v9 = vadd.f32 %v3046_v55, %v3045_v37 }
 0xd4f   :  { %3116 = vmatmul.mubr.f32.vlgmr.msra.gmra.mxu0 %v6888_v9  ;;  %4601 = vmatmul.mubr.f32.vlgmr.msra.gmra.mxu1 %v6888_v9 }
 0xd50   :  { %3217 = vmatpush1.msra.mxu0 %v6717_v8  ;;  %4604 = vmatpush3.msra.mxu1 %v6720_v60 }
 0xd51   :  { %3218 = vmatprep.subr.mxu0 %v6723_v32  ;;  %4605 = vmatprep.subr.mxu1 %v7215_v0 }
 0xd52   :  { %3219 = vmatpush1.msra.mxu0 %v6727_v23  ;;  %4606 = vmatpush3.msra.mxu1 %v6730_v22 }
 0xd53   :  { %3220 = vmatprep.subr.mxu0 %v6733_v15  ;;  %4607 = vmatprep.subr.mxu1 %v7215_v0 }
 0xd54   :  { %3221 = vmatpush1.msra.mxu0 %v6737_v33  ;;  %4608 = vmatpush3.msra.mxu1 %v6740_v56 }
 0xd55   :  { %3222 = vmatprep.subr.mxu0 %v6743_v54  ;;  %4609 = vmatprep.subr.mxu1 %v7215_v0 }
 0xd56   :  { %3223 = vmatpush1.msra.mxu0 %v6747_v49  ;;  %4610 = vmatpush3.msra.mxu1 %v6750_v5 }
 0xd57   :  { %3224 = vmatprep.subr.mxu0 %v6753_v42  ;;  %4611 = vmatprep.subr.mxu1 %v7215_v0 }
 0xd58   :  { %3225 = vmatpush1.msra.mxu0 %v6757_v13  ;;  %4612 = vmatpush3.msra.mxu1 %v6760_v57 }
 0xd59   :  { %3226 = vmatprep.subr.mxu0 %v6763_v59  ;;  %4613 = vmatprep.subr.mxu1 %v7215_v0 }
 0xd5a   :  { %3227 = vmatpush1.msra.mxu0 %v6767_v3  ;;  %4614 = vmatpush3.msra.mxu1 %v6770_v14 }
 0xd5b   :  { %3228 = vmatprep.subr.mxu0 %v6773_v43  ;;  %4615 = vmatprep.subr.mxu1 %v7215_v0 }
 0xd5c   :  { %3229 = vmatpush1.msra.mxu0 %v6777_v63  ;;  %4616 = vmatpush3.msra.mxu1 %v6780_v34 }
 0xd5d   :  { %3230 = vmatprep.subr.mxu0 %v6783_v17  ;;  %4617 = vmatprep.subr.mxu1 %v7215_v0 }
 0xd5e   :  { %3231 = vmatpush1.msra.mxu0 %v6787_v24  ;;  %4618 = vmatpush3.msra.mxu1 %v6790_v1 }
 0xd5f   :  { %3232 = vmatprep.subr.mxu0 %v6793_v35  ;;  %4619 = vmatprep.subr.mxu1 %v7215_v0 }
 0xd60   :  { %3233 = vmatpush1.msra.mxu0 %v6797_v2  ;;  %4620 = vmatpush3.msra.mxu1 %v6800_v36 }
 0xd61   :  { %3234 = vmatprep.subr.mxu0 %v6803_v6  ;;  %4621 = vmatprep.subr.mxu1 %v7215_v0 }
 0xd62   :  { %3235 = vmatpush1.msra.mxu0 %v6807_v38  ;;  %4622 = vmatpush3.msra.mxu1 %v6810_v7 }
 0xd63   :  { %3236 = vmatprep.subr.mxu0 %v6813_v47  ;;  %4623 = vmatprep.subr.mxu1 %v7215_v0 }
 0xd64   :  { %3237 = vmatpush1.msra.mxu0 %v6817_v18  ;;  %4624 = vmatpush3.msra.mxu1 %v6820_v19 }
 0xd65   :  { %3238 = vmatprep.subr.mxu0 %v6823_v21  ;;  %4625 = vmatprep.subr.mxu1 %v7215_v0 }
 0xd66   :  { %3239 = vmatpush1.msra.mxu0 %v6827_v27  ;;  %4626 = vmatpush3.msra.mxu1 %v6830_v28 }
 0xd67   :  { %3240 = vmatprep.subr.mxu0 %v6833_v29  ;;  %4627 = vmatprep.subr.mxu1 %v7215_v0 }
 0xd68   :  { %3241 = vmatpush1.msra.mxu0 %v6837_v30  ;;  %4628 = vmatpush3.msra.mxu1 %v6840_v31 }
 0xd69   :  { %3242 = vmatprep.subr.mxu0 %v6843_v45  ;;  %4629 = vmatprep.subr.mxu1 %v7215_v0 }
 0xd6a   :  { %3243 = vmatpush1.msra.mxu0 %v7364_v52  ;;  %4630 = vmatpush3.msra.mxu1 %v7365_v44 }
 0xd6b   :  { %3244 = vmatprep.subr.mxu0 %v7366_v53  ;;  %4631 = vmatprep.subr.mxu1 %v7215_v0 }
 0xd6c   :  { %3245 = vmatpush1.msra.mxu0 %v7367_v20  ;;  %4632 = vmatpush3.msra.mxu1 %v7368_v16 }
 0xd6d   :  { %3246 = vmatprep.subr.mxu0 %v7369_v58  ;;  %4633 = vmatprep.subr.mxu1 %v7215_v0  ;;  %v7375_v58 = vld [vmem:[#allocation47_spill] sm:$0xff] }
 0xd6e   :  { %3247 = vmatpush1.msra.mxu0 %v7370_v39  ;;  %3280 = vmatprep.mubr.f32.mxu0 %v7215_v0  ;;  %v2080_v16 = vadd.f32 %v7375_v58, %v6456_v12 }
 0xd6f   :  { %4634 = vmatpush3.msra.mxu1 %v7371_v40  ;;  %4635 = vmatprep.mubr.msk.f32.mxu1 %vm5138_vm0, %v7215_v0 }
 0xd70   :  { %3381 = vmatprep.subr.mxu0 %v7372_v25  ;;  %4638 = vmatprep.subr.mxu1 %v7215_v0 }
 0xe0f   :  { %v3117_v46 = vpop.f32.mrf.mxu0  ;;  %v3188_v48 = vpop.f32.mrf.mxu1 }
 0xe10   :  { %v3118_v4 = vadd.f32 %v3117_v46, %v7374_v62  ;;  %v3189_v46 = vadd.f32 %v3188_v48, %v6461_v51  ;;  %v3555_v48 = vld [vmem:[#allocation13 + $0x60] sm:$0xff] }
 0xe11   :  { %v3119_v10 = vpop.f32.mrf.mxu0  ;;  %v4602_v37 = vpop.f32.mrf.mxu1 }
 0xe12   :  { %v3192_v55 = vadd.f32 %v3118_v4, %v2078_v50  ;;  %v3120_v40 = vadd.f32 %v3119_v10, %v6453_v41  ;;  %v7376_v50 = vld [vmem:[#allocation43_spill] sm:$0xff] }
 0xe13   :  { %v2186_v4 = vadd.f32 %v7376_v50, %v6465_v11  ;;  %v3549_v50 = vld [vmem:[#allocation13 + $0x30] sm:$0xff] }
 0xe14   :  { %v3681_v39 = vmul.f32 -1.442695, %v3192_v55  ;;  %v3199_v25 = vadd.f32 %v3120_v40, %v2080_v16  ;;  %v3553_v55 = vld [vmem:[#allocation13 + $0x50] sm:$0xff] }
 0xe16   :  { %4851 = vpow2.f32 %v3681_v39  ;;  %v3682_v20 = vmul.f32 -1.442695, %v3199_v25  ;;  %v3552_v25 = vld [vmem:[#allocation13 + $0x48] sm:$0xff] }
 0xe18   :  { %4853 = vpow2.f32 %v3682_v20 }
 0xe23   :  { %v4852_v53 = vpop.eup %4851 }
 0xe24   :  { %v3196_v44 = vadd.f32 1.0, %v4852_v53 }
 0xe25   :  { %v4854_v52 = vpop.eup %4853 }
 0xe26   :  { %4855 = vrcp.f32 %v3196_v44  ;;  %v3203_v26 = vadd.f32 1.0, %v4854_v52  ;;  %v3557_v52 = vld [vmem:[#allocation13 + $0x70] sm:$0xff]  ;;  %v3556_v44 = vld [vmem:[#allocation13 + $0x68] sm:$0xff] }
 0xe28   :  { %4857 = vrcp.f32 %v3203_v26  ;;  %v3551_v26 = vld [vmem:[#allocation13 + $0x40] sm:$0xff] }
 0xe33   :  { %v4856_v62 = vpop.eup %4855 }
 0xe34   :  { %v3206_v37 = vmul.f32 %v4856_v62, %v3189_v46  ;;  %v3554_v62 = vld [vmem:[#allocation13 + $0x58] sm:$0xff] }
 0xe35   :  { %v4858_v58 = vpop.eup %4857  ;;  %v3550_v46 = vld [vmem:[#allocation13 + $0x38] sm:$0xff] }
 0xe36   :  { %v3207_v10 = vadd.f32 %v3206_v37, %v2186_v4  ;;  %v3209_v39 = vsub.f32 1.0, %v4858_v58  ;;  %v3211_v20 = vmul.f32 %v4858_v58, %v6888_v9  ;;  %v3558_v9 = vld [vmem:[#allocation13 + $0x78] sm:$0xff]  ;;  %v3548_v4 = vld [vmem:[#allocation13 + $0x28] sm:$0xff]  ;;  %v3547_v37 = vld [vmem:[#allocation13 + $0x20] sm:$0xff] }
 0xe37   :  { %v3545_v58 = vld [vmem:[#allocation13 + $0x10] sm:$0xff] }
 0xe38   :  { %4859 = vtanh.f32 %v3207_v10  ;;  %v3546_v10 = vld [vmem:[#allocation13 + $0x18] sm:$0xff] }
 0xe45   :  { %v4860_v16 = vpop.eup %4859 }
 0xe46   :  { %v3210_v40 = vmul.f32 %v4860_v16, %v3209_v39  ;;  %v3544_v39 = vld [vmem:[#allocation13 + $0x8] sm:$0xff]  ;;  %v3543_v16 = vld [vmem:[#allocation13] sm:$0xff] }
 0xe48   :  { %v6969_v53 = vadd.f32 %v3211_v20, %v3210_v40 }
 0xe4a   :  { %3281 = vmatmul.mubr.f32.vlgmr.msra.gmra.mxu0 %v6969_v53  ;;  %4636 = vmatmul.mubr.f32.vlgmr.msra.gmra.mxu1 %v6969_v53 }
 0xe4b   :  { %3382 = vmatpush1.msra.mxu0 %v6717_v8  ;;  %4639 = vmatpush3.msra.mxu1 %v6720_v60  ;;  %v7377_v8 = vld [vmem:[#allocation31_spill] sm:$0xff]  ;;  %v7378_v60 = vld [vmem:[#allocation40_spill] sm:$0xff] }
 0xe4c   :  { %3383 = vmatprep.subr.mxu0 %v6723_v32  ;;  %4640 = vmatprep.subr.mxu1 %v7215_v0  ;;  %v7379_v32 = vld [vmem:[#allocation23_spill] sm:$0xff] }
 0xe4d   :  { %3384 = vmatpush1.msra.mxu0 %v6727_v23  ;;  %4641 = vmatpush3.msra.mxu1 %v6730_v22  ;;  %v7380_v23 = vld [vmem:[#allocation49_spill] sm:$0xff]  ;;  %v7381_v22 = vld [vmem:[#allocation38_spill] sm:$0xff] }
 0xe4e   :  { %3385 = vmatprep.subr.mxu0 %v6733_v15  ;;  %4642 = vmatprep.subr.mxu1 %v7215_v0  ;;  %v7382_v15 = vld [vmem:[#allocation51_spill] sm:$0xff] }
 0xe4f   :  { %3386 = vmatpush1.msra.mxu0 %v6737_v33  ;;  %4643 = vmatpush3.msra.mxu1 %v6740_v56  ;;  %v7383_v33 = vld [vmem:[#allocation25_spill] sm:$0xff]  ;;  %v7384_v56 = vld [vmem:[#allocation39_spill] sm:$0xff] }
 0xe50   :  { %3387 = vmatprep.subr.mxu0 %v6743_v54  ;;  %4644 = vmatprep.subr.mxu1 %v7215_v0 }
 0xe51   :  { %3388 = vmatpush1.msra.mxu0 %v6747_v49  ;;  %4645 = vmatpush3.msra.mxu1 %v6750_v5  ;;  %v7385_v5 = vld [vmem:[#allocation44_spill] sm:$0xff] }
 0xe52   :  { %3389 = vmatprep.subr.mxu0 %v6753_v42  ;;  %4646 = vmatprep.subr.mxu1 %v7215_v0  ;;  %v2084_v42 = vadd.f32 %v7385_v5, %v7322_v61 }
 0xe53   :  { %3390 = vmatpush1.msra.mxu0 %v6757_v13  ;;  %4647 = vmatpush3.msra.mxu1 %v6760_v57  ;;  %v7386_v13 = vld [vmem:[#allocation46_spill] sm:$0xff] }
 0xe54   :  { %3391 = vmatprep.subr.mxu0 %v6763_v59  ;;  %4648 = vmatprep.subr.mxu1 %v7215_v0 }
 0xe55   :  { %3392 = vmatpush1.msra.mxu0 %v6767_v3  ;;  %4649 = vmatpush3.msra.mxu1 %v6770_v14 }
 0xe56   :  { %3393 = vmatprep.subr.mxu0 %v6773_v43  ;;  %4650 = vmatprep.subr.mxu1 %v7215_v0 }
 0xe57   :  { %3394 = vmatpush1.msra.mxu0 %v6777_v63  ;;  %4651 = vmatpush3.msra.mxu1 %v6780_v34  ;;  %v7387_v34 = vld [vmem:[#allocation55_spill] sm:$0xff] }
 0xe58   :  { %3395 = vmatprep.subr.mxu0 %v6783_v17  ;;  %4652 = vmatprep.subr.mxu1 %v7215_v0  ;;  %v2086_v17 = vadd.f32 %v7387_v34, %v6456_v12 }
 0xe59   :  { %3396 = vmatpush1.msra.mxu0 %v6787_v24  ;;  %4653 = vmatpush3.msra.mxu1 %v6790_v1 }
 0xe5a   :  { %3397 = vmatprep.subr.mxu0 %v6793_v35  ;;  %4654 = vmatprep.subr.mxu1 %v7215_v0 }
 0xe5b   :  { %3398 = vmatpush1.msra.mxu0 %v6797_v2  ;;  %4655 = vmatpush3.msra.mxu1 %v6800_v36 }
 0xe5c   :  { %3399 = vmatprep.subr.mxu0 %v6803_v6  ;;  %4656 = vmatprep.subr.mxu1 %v7215_v0 }
 0xe5d   :  { %3400 = vmatpush1.msra.mxu0 %v6807_v38  ;;  %4657 = vmatpush3.msra.mxu1 %v6810_v7 }
 0xe5e   :  { %3401 = vmatprep.subr.mxu0 %v6813_v47  ;;  %4658 = vmatprep.subr.mxu1 %v7215_v0  ;;  %v7388_v47 = vld [vmem:[#allocation53_spill] sm:$0xff] }
 0xe5f   :  { %3402 = vmatpush1.msra.mxu0 %v6817_v18  ;;  %4659 = vmatpush3.msra.mxu1 %v6820_v19  ;;  %v2191_v18 = vadd.f32 %v7388_v47, %v6465_v11 }
 0xe60   :  { %3403 = vmatprep.subr.mxu0 %v6823_v21  ;;  %4660 = vmatprep.subr.mxu1 %v7215_v0 }
 0xe61   :  { %3404 = vmatpush1.msra.mxu0 %v6827_v27  ;;  %4661 = vmatpush3.msra.mxu1 %v6830_v28 }
 0xe62   :  { %3405 = vmatprep.subr.mxu0 %v6833_v29  ;;  %4662 = vmatprep.subr.mxu1 %v7215_v0 }
 0xe63   :  { %3406 = vmatpush1.msra.mxu0 %v6837_v30  ;;  %4663 = vmatpush3.msra.mxu1 %v6840_v31 }
 0xe64   :  { %3407 = vmatprep.subr.mxu0 %v6843_v45  ;;  %4664 = vmatprep.subr.mxu1 %v7215_v0 }
 0xe65   :  { %3408 = vmatpush1.msra.mxu0 %v7377_v8  ;;  %4665 = vmatpush3.msra.mxu1 %v7378_v60 }
 0xe66   :  { %3409 = vmatprep.subr.mxu0 %v7379_v32  ;;  %4666 = vmatprep.subr.mxu1 %v7215_v0 }
 0xe67   :  { %3410 = vmatpush1.msra.mxu0 %v7380_v23  ;;  %4667 = vmatpush3.msra.mxu1 %v7381_v22 }
 0xe68   :  { %3411 = vmatprep.subr.mxu0 %v7382_v15  ;;  %4668 = vmatprep.subr.mxu1 %v7215_v0 }
 0xe69   :  { %3412 = vmatpush1.msra.mxu0 %v7383_v33  ;;  %3445 = vmatprep.mubr.f32.mxu0 %v7215_v0 }
 0xe6a   :  { %4669 = vmatpush3.msra.mxu1 %v7384_v56  ;;  %4670 = vmatprep.mubr.msk.f32.mxu1 %vm5138_vm0, %v7215_v0  ;;  %v7390_v56 = vld [vmem:[#allocation48_spill] sm:$0xff] }
 0xe6b   :  { %4673 = vmatprep.subr.mxu0 %v7215_v0 }
 0xf0a   :  { %v3282_v54 = vpop.f32.mrf.mxu0  ;;  %v3353_v49 = vpop.f32.mrf.mxu1 }
 0xf0b   :  { %v3283_v57 = vadd.f32 %v3282_v54, %v7386_v13  ;;  %v3354_v38 = vadd.f32 %v3353_v49, %v6461_v51  ;;  %v2092_v54 = vadd.f32 %v7390_v56, %v6456_v12 }
 0xf0c   :  { %v3284_v59 = vpop.f32.mrf.mxu0  ;;  %v4637_v3 = vpop.f32.mrf.mxu1 }
 0xf0d   :  { %v3357_v14 = vadd.f32 %v3283_v57, %v2084_v42  ;;  %v3285_v63 = vadd.f32 %v3284_v59, %v6453_v41  ;;  %v7391_v3 = vld [vmem:[#allocation27_spill] sm:$0xff] }
 0xf0f   :  { %v3683_v43 = vmul.f32 -1.442695, %v3357_v14  ;;  %v3364_v24 = vadd.f32 %v3285_v63, %v2086_v17  ;;  %v2196_v14 = vadd.f32 %v7391_v3, %v6465_v11 }
 0xf11   :  { %4861 = vpow2.f32 %v3683_v43  ;;  %v3684_v1 = vmul.f32 -1.442695, %v3364_v24 }
 0xf13   :  { %4863 = vpow2.f32 %v3684_v1 }
 0xf1e   :  { %v4862_v35 = vpop.eup %4861 }
 0xf1f   :  { %v3361_v2 = vadd.f32 1.0, %v4862_v35 }
 0xf20   :  { %v4864_v36 = vpop.eup %4863 }
 0xf21   :  { %4865 = vrcp.f32 %v3361_v2  ;;  %v3368_v6 = vadd.f32 1.0, %v4864_v36 }
 0xf23   :  { %4867 = vrcp.f32 %v3368_v6 }
 0xf2e   :  { %v4866_v7 = vpop.eup %4865 }
 0xf2f   :  { %v3371_v19 = vmul.f32 %v4866_v7, %v3354_v38 }
 0xf30   :  { %v4868_v27 = vpop.eup %4867 }
 0xf31   :  { %v3372_v21 = vadd.f32 %v3371_v19, %v2191_v18  ;;  %v3374_v28 = vsub.f32 1.0, %v4868_v27  ;;  %v3376_v31 = vmul.f32 %v4868_v27, %v6969_v53  ;;  %v7389_v53 = vld [vmem:[#allocation22_spill] sm:$0xff] }
 0xf32   :  { %v2090_v8 = vadd.f32 %v7389_v53, %v7322_v61 }
 0xf33   :  { %4869 = vtanh.f32 %v3372_v21 }
 0xf40   :  { %v4870_v29 = vpop.eup %4869 }
 0xf41   :  { %v3375_v30 = vmul.f32 %v4870_v29, %v3374_v28 }
 0xf43   :  { %v7049_v45 = vadd.f32 %v3376_v31, %v3375_v30 }
 0xf45   :  { %3446 = vmatmul.mubr.f32.vlgmr.msra.gmra.mxu0 %v7049_v45  ;;  %4671 = vmatmul.mubr.f32.vlgmr.msra.gmra.mxu1 %v7049_v45 }
 0xf46   :  { %4705 = vmatprep.mubr.msk.f32.mxu0 %vm5138_vm0, %v7215_v0  ;;  %4674 = vmatpush3.msra.mxu0 %v3558_v9 }
 0xf47   :  { %4675 = vmatprep.subr.mxu0 %v7215_v0 }
 0xf48   :  { %4676 = vmatpush3.msra.mxu0 %v3557_v52 }
 0xf49   :  { %4677 = vmatprep.subr.mxu0 %v7215_v0 }
 0xf4a   :  { %4678 = vmatpush3.msra.mxu0 %v3556_v44 }
 0xf4b   :  { %4679 = vmatprep.subr.mxu0 %v7215_v0 }
 0xf4c   :  { %4680 = vmatpush3.msra.mxu0 %v3555_v48 }
 0xf4d   :  { %4681 = vmatprep.subr.mxu0 %v7215_v0 }
 0xf4e   :  { %4682 = vmatpush3.msra.mxu0 %v3554_v62 }
 0xf4f   :  { %4683 = vmatprep.subr.mxu0 %v7215_v0 }
 0xf50   :  { %4684 = vmatpush3.msra.mxu0 %v3553_v55 }
 0xf51   :  { %4685 = vmatprep.subr.mxu0 %v7215_v0 }
 0xf52   :  { %4686 = vmatpush3.msra.mxu0 %v3552_v25 }
 0xf53   :  { %4687 = vmatprep.subr.mxu0 %v7215_v0 }
 0xf54   :  { %4688 = vmatpush3.msra.mxu0 %v3551_v26 }
 0xf55   :  { %4689 = vmatprep.subr.mxu0 %v7215_v0 }
 0xf56   :  { %4690 = vmatpush3.msra.mxu0 %v3550_v46 }
 0xf57   :  { %4691 = vmatprep.subr.mxu0 %v7215_v0 }
 0xf58   :  { %4692 = vmatpush3.msra.mxu0 %v3549_v50 }
 0xf59   :  { %4693 = vmatprep.subr.mxu0 %v7215_v0 }
 0xf5a   :  { %4694 = vmatpush3.msra.mxu0 %v3548_v4 }
 0xf5b   :  { %4695 = vmatprep.subr.mxu0 %v7215_v0 }
 0xf5c   :  { %4696 = vmatpush3.msra.mxu0 %v3547_v37 }
 0xf5d   :  { %4697 = vmatprep.subr.mxu0 %v7215_v0 }
 0xf5e   :  { %4698 = vmatpush3.msra.mxu0 %v3546_v10 }
 0xf5f   :  { %4699 = vmatprep.subr.mxu0 %v7215_v0 }
 0xf60   :  { %4700 = vmatpush3.msra.mxu0 %v3545_v58 }
 0xf61   :  { %4701 = vmatprep.subr.mxu0 %v7215_v0 }
 0xf62   :  { %4702 = vmatpush3.msra.mxu0 %v3544_v39 }
 0xf63   :  { %4703 = vmatprep.subr.mxu0 %v7215_v0 }
 0xf64   :  { %4704 = vmatpush3.msra.mxu0 %v3543_v16 }
0x1005   :  { %v3447_v40 = vpop.f32.mrf.mxu0  ;;  %v3518_v20 = vpop.f32.mrf.mxu1 }
0x1006   :  { %v3448_v60 = vadd.f32 %v3447_v40, %v7386_v13  ;;  %v3519_v13 = vadd.f32 %v3518_v20, %v6461_v51  ;;  %v3687_v51 = vld [vmem:[%s7096_s10] ss:$0 sm:$0xff] }
0x1007   :  { %v3449_v32 = vpop.f32.mrf.mxu0  ;;  %v4672_v23 = vpop.f32.mrf.mxu1 }
0x1008   :  { %v3522_v22 = vadd.f32 %v3448_v60, %v2090_v8  ;;  %v3450_v33 = vadd.f32 %v3449_v32, %v6453_v41 }
0x100a   :  { %v3685_v15 = vmul.f32 -1.442695, %v3522_v22  ;;  %v3529_v49 = vadd.f32 %v3450_v33, %v2092_v54 }
0x100c   :  { %4871 = vpow2.f32 %v3685_v15  ;;  %v3686_v0 = vmul.f32 -1.442695, %v3529_v49 }
0x100e   :  { %4873 = vpow2.f32 %v3686_v0 }
0x1019   :  { %v4872_v5 = vpop.eup %4871 }
0x101a   :  { %v3526_v42 = vadd.f32 1.0, %v4872_v5 }
0x101b   :  { %v4874_v57 = vpop.eup %4873 }
0x101c   :  { %4875 = vrcp.f32 %v3526_v42  ;;  %v3533_v61 = vadd.f32 1.0, %v4874_v57 }
0x101e   :  { %4877 = vrcp.f32 %v3533_v61 }
0x1029   :  { %v4876_v59 = vpop.eup %4875 }
0x102a   :  { %v3536_v43 = vmul.f32 %v4876_v59, %v3519_v13 }
0x102b   :  { %v4878_v12 = vpop.eup %4877 }
0x102c   :  { %v3537_v41 = vadd.f32 %v3536_v43, %v2196_v14  ;;  %v3539_v63 = vsub.f32 1.0, %v4878_v12  ;;  %v3541_v24 = vmul.f32 %v4878_v12, %v7049_v45 }
0x102e   :  { %4879 = vtanh.f32 %v3537_v41 }
0x103b   :  { %v4880_v34 = vpop.eup %4879 }
0x103c   :  { %v3540_v17 = vmul.f32 %v4880_v34, %v3539_v63 }
0x103e   :  { %v3542_v1 = vadd.f32 %v3541_v24, %v3540_v17 }
0x1040   :  { %4706 = vmatmul.mubr.f32.vlgmr.msra.gmra.mxu0 %v3542_v1 }
0x1100   :  { %v3632_v35 = vpop.f32.mrf.mxu0 }
0x1101   :  { %v3633_v11 = vadd.f32 %v3687_v51, %v3632_v35 }
0x1102   :  { %v4707_v2 = vpop.f32.mrf.mxu0 }
0x1103   :  { %3636 = vst [vmem:[#allocation15] sm:$0xff] %v3633_v11 }
0x1104   :  { %5108 = shalt.err (!%p5105_p6)
}
0x1105   :  { %3646 = dma.vmem_to_hbm [thread:$0]  %s3644_s13, 128, %s7097_s11, [#allocation6]  }
0x1106   :  { %5125 = dma.done.wait [#allocation6], 128  }
0x1107   :  { %5126 = vsyncadd [#allocation6], 4294967168 }
0x1108   :  { %3650 = vsyncpa [#allocation5], 1 }
0x1109   :  { %3651 = vsyncpa [#allocation8], 1 }
0x110a   :  { %3652 = vsyncpa [#allocation11], 1 }
0x110b   :  { %3653 = vsyncpa [#allocation14], 1 }
0x110c   :  { %3654 = vsyncpa [#allocation6], 1 }

</bundles_post_ra>
